<compile_context>
chip_gen: v7x
topology: tpu7x:2x2x1
jax: 0.10.0
libtpu: 0.0.40
codegen_flags: <defaults>
</compile_context>

<pallas_src>
import functools

import jax
import jax.numpy as jnp
from jax.experimental import pallas as pl
from jax.experimental.pallas import tpu as pltpu


def _social_lstm_kernel(
    xy_ref,        # (T*B, I)     (x, y) coordinates, frame-major flattened
    grid_ref,      # (T, G2*B, B) pre-permuted occupancy grids: [t, g*B+p, o]
    h0_ref,        # (B, H)
    c0_ref,        # (B, H)
    w_emb_ref,     # (I, E)       input_embedding_layer weight (transposed)
    b_emb_ref,     # (1, E)
    w_ih_in_ref,   # (E, 4H)      input-embedding half of W_ih (transposed)
    gate_b_ref,    # (1, 4H)      b_ih + b_hh
    w_ih_soc_ref,  # (E, 4H)      tensor-embedding half of W_ih (transposed)
    w_hh_ref,      # (H, 4H)      W_hh (transposed)
    w_t_ref,       # (G2*H, E)    tensor_embedding_layer weight (transposed)
    b_t_ref,       # (1, E)
    w_out_ref,     # (H, O)
    b_out_ref,     # (1, O)
    out_ref,       # (T*B, O)
    hf_ref,        # (B, H)
    cf_ref,        # (B, H)
    social_scr,    # VMEM (B, G2*H)
    hall_scr,      # VMEM (T*B, H)
    *, T, B, H, E, G2,
):
    f32 = jnp.float32

    # ---- hoisted, h-independent input path: one batched matmul over all frames.
    emb = jnp.dot(xy_ref[...], w_emb_ref[...], preferred_element_type=f32) + b_emb_ref[...]
    emb = jnp.maximum(emb, 0.0)                                               # (T*B, E)
    xg_all = jnp.dot(emb, w_ih_in_ref[...], preferred_element_type=f32) + gate_b_ref[...]  # (T*B, 4H)

    # Hoisted broadcast (JAX does not CSE broadcast_in_dim inside the loop).
    b_t = jnp.broadcast_to(b_t_ref[...], (B, E))

    h = h0_ref[...]
    c = c0_ref[...]

    # ---- serial recurrence, fully unrolled (T is small and static).
    for t in range(T):
        # Social pooling: social_gp[g*B + p, :] = sum_o grid[t, p, o, g] * h[o, :]
        social_gp = jnp.dot(grid_ref[t], h, preferred_element_type=f32)       # (G2*B, H)

        # Re-lay (g, p)-rows into lane blocks:
        #   social_scr[p, g*H + hh] = social_gp[g*B + p, hh]
        # Source slices are sublane-aligned (offsets multiples of 8); the target
        # lane offsets are static, so this is a fixed sequence of vector stores.
        for g in range(G2):
            social_scr[:, g * H:(g + 1) * H] = social_gp[g * B:(g + 1) * B, :]

        tensor_emb = jnp.dot(social_scr[...], w_t_ref[...], preferred_element_type=f32) + b_t
        tensor_emb = jnp.maximum(tensor_emb, 0.0)                             # (B, E)

        # Gate pre-activations: hoisted input term + two small serial matmuls
        # (no scratch concat round-trip on the critical path).
        gates = (xg_all[t * B:(t + 1) * B, :]
                 + jnp.dot(tensor_emb, w_ih_soc_ref[...], preferred_element_type=f32)
                 + jnp.dot(h, w_hh_ref[...], preferred_element_type=f32))     # (B, 4H)

        # PyTorch LSTMCell gate order: i, f, g, o.
        sig = jax.nn.sigmoid(gates)
        i_g = sig[:, 0 * H:1 * H]
        f_g = sig[:, 1 * H:2 * H]
        o_g = sig[:, 3 * H:4 * H]
        g_g = jnp.tanh(gates[:, 2 * H:3 * H])

        c = f_g * c + i_g * g_g
        h = o_g * jnp.tanh(c)

        hall_scr[t * B:(t + 1) * B, :] = h

    # ---- batched output projection off the serial chain + single bulk store.
    y = jnp.dot(hall_scr[...], w_out_ref[...], preferred_element_type=f32) + b_out_ref[...]
    out_ref[...] = y
    hf_ref[...] = h
    cf_ref[...] = c


def social_lstm_forward(scene, grids, h0, c0, params):
    """scene: (T, B, 3) [ped_id, x, y]; grids: (T, B, B, G^2); h0, c0: (B, H)."""
    T, B, _ = scene.shape
    G2 = grids.shape[-1]
    H = h0.shape[1]
    E = params["b_in"].shape[0]
    O = params["w_out"].shape[0]
    f32 = jnp.float32

    # ---- layout prep (cheap XLA reshapes/transposes, done once at trace time).
    xy_flat = scene[:, :, 1:3].reshape(T * B, 2).astype(f32)                  # (T*B, I)
    I = xy_flat.shape[1]
    # grid_slab[t, g*B + p, o] = grids[t, p, o, g]
    grid_slab = jnp.transpose(grids.astype(f32), (0, 3, 1, 2)).reshape(T, G2 * B, B)

    w_emb = params["w_in"].T.astype(f32)                    # (I, E)
    b_emb = params["b_in"].reshape(1, E).astype(f32)
    w_ih_in = params["w_ih"][:, :E].T.astype(f32)           # (E, 4H)  input-embedded half
    w_ih_soc = params["w_ih"][:, E:2 * E].T.astype(f32)     # (E, 4H)  tensor-embedded half
    w_hh_t = params["w_hh"].T.astype(f32)                   # (H, 4H)
    gate_b = (params["b_ih"] + params["b_hh"]).reshape(1, 4 * H).astype(f32)
    w_t = params["w_t"].T.astype(f32)                       # (G2*H, E)
    b_t = params["b_t"].reshape(1, E).astype(f32)
    w_out = params["w_out"].T.astype(f32)                   # (H, O)
    b_out = params["b_out"].reshape(1, O).astype(f32)

    full = lambda shape: pl.BlockSpec(shape, lambda i, _s=shape: (0,) * len(_s))

    kernel = functools.partial(_social_lstm_kernel, T=T, B=B, H=H, E=E, G2=G2)

    out_flat, h_f, c_f = pl.pallas_call(
        kernel,
        out_shape=(
            jax.ShapeDtypeStruct((T * B, O), f32),
            jax.ShapeDtypeStruct((B, H), f32),
            jax.ShapeDtypeStruct((B, H), f32),
        ),
        grid_spec=pltpu.PrefetchScalarGridSpec(
            num_scalar_prefetch=0,
            grid=(1,),                                   # whole forward in one invocation
            in_specs=[
                full((T * B, I)),                        # xy coordinates
                full((T, G2 * B, B)),                    # permuted grids
                full((B, H)), full((B, H)),              # h0, c0
                full((I, E)), full((1, E)),              # input embedding
                full((E, 4 * H)), full((1, 4 * H)),      # hoisted gate contribution
                full((E, 4 * H)),                        # W_ih (social half)
                full((H, 4 * H)),                        # W_hh
                full((G2 * H, E)), full((1, E)),         # tensor embedding
                full((H, O)), full((1, O)),              # output layer
            ],
            out_specs=[
                full((T * B, O)),
                full((B, H)),
                full((B, H)),
            ],
            scratch_shapes=[
                pltpu.VMEM((B, G2 * H), f32),            # social tensor (re-laid)
                pltpu.VMEM((T * B, H), f32),             # all hidden states
            ],
        ),
        compiler_params=pltpu.CompilerParams(
            dimension_semantics=("arbitrary",),          # sequential recurrence
        ),
    )(xy_flat, grid_slab, h0.astype(f32), c0.astype(f32),
      w_emb, b_emb, w_ih_in, gate_b, w_ih_soc, w_hh_t, w_t, b_t, w_out, b_out)

    outputs = out_flat.reshape(T, B, O)                  # time-major, like the module
    return outputs, h_f, c_f


def _reference_forward(scene, grids, h0, c0, params):
    """Pure-JAX reference mirroring SocialLSTM.forward (dropout = identity)."""
    T, B, _ = scene.shape
    G2 = grids.shape[-1]
    H = h0.shape[1]
    h, c = h0, c0
    outs = []
    for t in range(T):
        frame = scene[t]
        grid = grids[t].astype(jnp.float32)                             # (B, B, G2)
        social = jnp.einsum("pog,oh->pgh", grid, h).reshape(B, G2 * H)  # getSocialTensor
        inp_emb = jax.nn.relu(frame[:, 1:3] @ params["w_in"].T + params["b_in"])
        ten_emb = jax.nn.relu(social @ params["w_t"].T + params["b_t"])
        concat = jnp.concatenate([inp_emb, ten_emb], axis=1)
        gates = (concat @ params["w_ih"].T + params["b_ih"]
                 + h @ params["w_hh"].T + params["b_hh"])
        i = jax.nn.sigmoid(gates[:, 0 * H:1 * H])
        f = jax.nn.sigmoid(gates[:, 1 * H:2 * H])
        g = jnp.tanh(gates[:, 2 * H:3 * H])
        o = jax.nn.sigmoid(gates[:, 3 * H:4 * H])
        c = f * c + i * g
        h = o * jnp.tanh(c)
        outs.append(h @ params["w_out"].T + params["b_out"])
    return jnp.stack(outs, axis=0), h, c


if __name__ == "__main__":
    T = 8      # sequence_length
    B = 8      # nb_peds
    I = 2      # input_size (x, y)
    E = 64     # embedding_size
    G = 4      # grid_size -> G*G = 16 cells
    H = 32     # hidden_size
    O = 5      # output_size (bivariate-Gaussian params used by sample())
    G2 = G * G

    key = jax.random.PRNGKey(0)
    ks = jax.random.split(key, 16)

    params = {
        "w_in":  jax.random.normal(ks[0], (E, I), jnp.float32) * 0.3,
        "b_in":  jax.random.normal(ks[1], (E,), jnp.float32) * 0.1,
        "w_t":   jax.random.normal(ks[2], (E, G2 * H), jnp.float32) * 0.05,
        "b_t":   jax.random.normal(ks[3], (E,), jnp.float32) * 0.1,
        "w_ih":  jax.random.normal(ks[4], (4 * H, 2 * E), jnp.float32) * 0.1,
        "b_ih":  jax.random.normal(ks[5], (4 * H,), jnp.float32) * 0.1,
        "w_hh":  jax.random.normal(ks[6], (4 * H, H), jnp.float32) * 0.1,
        "b_hh":  jax.random.normal(ks[7], (4 * H,), jnp.float32) * 0.1,
        "w_out": jax.random.normal(ks[8], (O, H), jnp.float32) * 0.3,
        "b_out": jax.random.normal(ks[9], (O,), jnp.float32) * 0.1,
    }

    # Scene: column 0 = pedestrian id, columns 1:3 = (x, y).
    ped_ids = jnp.tile(jnp.arange(B, dtype=jnp.float32)[None, :, None], (T, 1, 1))
    coords = jax.random.uniform(ks[10], (T, B, 2), jnp.float32, minval=-1.0, maxval=1.0)
    scene = jnp.concatenate([ped_ids, coords], axis=-1)            # (T, B, 3)

    # Binary occupancy grids; a pedestrian never pools its own hidden state.
    grids = (jax.random.uniform(ks[11], (T, B, B, G2)) < 0.25).astype(jnp.float32)
    eye = jnp.eye(B, dtype=jnp.float32)[None, :, :, None]
    grids = grids * (1.0 - eye)

    h0 = jax.random.normal(ks[12], (B, H), jnp.float32) * 0.1
    c0 = jax.random.normal(ks[13], (B, H), jnp.float32) * 0.1

    outputs, h_f, c_f = social_lstm_forward(scene, grids, h0, c0, params)
    jax.block_until_ready((outputs, h_f, c_f))

    with jax.default_matmul_precision("highest"):
        ref_out, ref_h, ref_c = _reference_forward(scene, grids, h0, c0, params)

    assert outputs.shape == (T, B, O)
    assert jnp.allclose(outputs, ref_out, atol=1e-4, rtol=1e-3), \
        float(jnp.max(jnp.abs(outputs - ref_out)))
    assert jnp.allclose(h_f, ref_h, atol=1e-4, rtol=1e-3)
    assert jnp.allclose(c_f, ref_c, atol=1e-4, rtol=1e-3)

    print("KERNEL_OK")
</pallas_src>

<mosaic_0001>
module attributes {stable_mosaic.version = 11 : i64} {
  func.func @_social_lstm_kernel(%arg0: i32, %arg1: memref<64x2xf32, #tpu.memory_space<vmem>>, %arg2: memref<8x128x8xf32, #tpu.memory_space<vmem>>, %arg3: memref<8x32xf32, #tpu.memory_space<vmem>>, %arg4: memref<8x32xf32, #tpu.memory_space<vmem>>, %arg5: memref<2x64xf32, #tpu.memory_space<vmem>>, %arg6: memref<1x64xf32, #tpu.memory_space<vmem>>, %arg7: memref<64x128xf32, #tpu.memory_space<vmem>>, %arg8: memref<1x128xf32, #tpu.memory_space<vmem>>, %arg9: memref<64x128xf32, #tpu.memory_space<vmem>>, %arg10: memref<32x128xf32, #tpu.memory_space<vmem>>, %arg11: memref<512x64xf32, #tpu.memory_space<vmem>>, %arg12: memref<1x64xf32, #tpu.memory_space<vmem>>, %arg13: memref<32x5xf32, #tpu.memory_space<vmem>>, %arg14: memref<1x5xf32, #tpu.memory_space<vmem>>, %arg15: memref<64x5xf32, #tpu.memory_space<vmem>>, %arg16: memref<8x32xf32, #tpu.memory_space<vmem>>, %arg17: memref<8x32xf32, #tpu.memory_space<vmem>>, %arg18: memref<8x512xf32, #tpu.memory_space<vmem>>, %arg19: memref<64x32xf32, #tpu.memory_space<vmem>>) attributes {dimension_semantics = [#tpu.dimension_semantics<arbitrary>], iteration_bounds = array<i64: 1>, scalar_prefetch = 0 : i64, scratch_operands = 2 : i64, tpu.core_type = #tpu.core_type<tc>, window_params = [{pipeline_mode = #tpu.pipeline_mode<synchronous>, transform_indices = @transform_0, window_bounds = array<i64: 64, 2>}, {pipeline_mode = #tpu.pipeline_mode<synchronous>, transform_indices = @transform_1, window_bounds = array<i64: 8, 128, 8>}, {pipeline_mode = #tpu.pipeline_mode<synchronous>, transform_indices = @transform_2, window_bounds = array<i64: 8, 32>}, {pipeline_mode = #tpu.pipeline_mode<synchronous>, transform_indices = @transform_3, window_bounds = array<i64: 8, 32>}, {pipeline_mode = #tpu.pipeline_mode<synchronous>, transform_indices = @transform_4, window_bounds = array<i64: 2, 64>}, {pipeline_mode = #tpu.pipeline_mode<synchronous>, transform_indices = @transform_5, window_bounds = array<i64: 1, 64>}, {pipeline_mode = #tpu.pipeline_mode<synchronous>, transform_indices = @transform_6, window_bounds = array<i64: 64, 128>}, {pipeline_mode = #tpu.pipeline_mode<synchronous>, transform_indices = @transform_7, window_bounds = array<i64: 1, 128>}, {pipeline_mode = #tpu.pipeline_mode<synchronous>, transform_indices = @transform_8, window_bounds = array<i64: 64, 128>}, {pipeline_mode = #tpu.pipeline_mode<synchronous>, transform_indices = @transform_9, window_bounds = array<i64: 32, 128>}, {pipeline_mode = #tpu.pipeline_mode<synchronous>, transform_indices = @transform_10, window_bounds = array<i64: 512, 64>}, {pipeline_mode = #tpu.pipeline_mode<synchronous>, transform_indices = @transform_11, window_bounds = array<i64: 1, 64>}, {pipeline_mode = #tpu.pipeline_mode<synchronous>, transform_indices = @transform_12, window_bounds = array<i64: 32, 5>}, {pipeline_mode = #tpu.pipeline_mode<synchronous>, transform_indices = @transform_13, window_bounds = array<i64: 1, 5>}, {pipeline_mode = #tpu.pipeline_mode<synchronous>, transform_indices = @transform_14, window_bounds = array<i64: 64, 5>}, {pipeline_mode = #tpu.pipeline_mode<synchronous>, transform_indices = @transform_15, window_bounds = array<i64: 8, 32>}, {pipeline_mode = #tpu.pipeline_mode<synchronous>, transform_indices = @transform_16, window_bounds = array<i64: 8, 32>}]} {
    %c0 = arith.constant 0 : index
    %c0_0 = arith.constant 0 : index
    %0 = vector.load %arg1[%c0, %c0_0] : memref<64x2xf32, #tpu.memory_space<vmem>>, vector<64x2xf32>
    %c0_1 = arith.constant 0 : index
    %c0_2 = arith.constant 0 : index
    %1 = vector.load %arg5[%c0_1, %c0_2] : memref<2x64xf32, #tpu.memory_space<vmem>>, vector<2x64xf32>
    %cst = arith.constant dense<0.000000e+00> : vector<64x64xf32>
    %2 = tpu.matmul %0, %1, %cst {dimension_numbers = #tpu.dot_dimension_numbers<[1], [0], [0], [1], [0, 0, 1, 1], [], []>} : vector<64x2xf32>, vector<2x64xf32>, vector<64x64xf32> -> vector<64x64xf32>
    %c0_3 = arith.constant 0 : index
    %c0_4 = arith.constant 0 : index
    %3 = vector.load %arg6[%c0_3, %c0_4] : memref<1x64xf32, #tpu.memory_space<vmem>>, vector<1x64xf32>
    %4 = vector.broadcast %3 : vector<1x64xf32> to vector<64x64xf32>
    %5 = arith.addf %2, %4 : vector<64x64xf32>
    %cst_5 = arith.constant 0.000000e+00 : f32
    %6 = vector.broadcast %cst_5 : f32 to vector<64x64xf32>
    %7 = arith.maximumf %5, %6 : vector<64x64xf32>
    %c0_6 = arith.constant 0 : index
    %c0_7 = arith.constant 0 : index
    %8 = vector.load %arg7[%c0_6, %c0_7] : memref<64x128xf32, #tpu.memory_space<vmem>>, vector<64x128xf32>
    %cst_8 = arith.constant dense<0.000000e+00> : vector<64x128xf32>
    %9 = tpu.matmul %7, %8, %cst_8 {dimension_numbers = #tpu.dot_dimension_numbers<[1], [0], [0], [1], [0, 0, 1, 1], [], []>} : vector<64x64xf32>, vector<64x128xf32>, vector<64x128xf32> -> vector<64x128xf32>
    %c0_9 = arith.constant 0 : index
    %c0_10 = arith.constant 0 : index
    %10 = vector.load %arg8[%c0_9, %c0_10] : memref<1x128xf32, #tpu.memory_space<vmem>>, vector<1x128xf32>
    %11 = vector.broadcast %10 : vector<1x128xf32> to vector<64x128xf32>
    %12 = arith.addf %9, %11 : vector<64x128xf32>
    %c0_11 = arith.constant 0 : index
    %c0_12 = arith.constant 0 : index
    %13 = vector.load %arg12[%c0_11, %c0_12] : memref<1x64xf32, #tpu.memory_space<vmem>>, vector<1x64xf32>
    %14 = vector.shape_cast %13 : vector<1x64xf32> to vector<1x64xf32>
    %15 = vector.broadcast %14 : vector<1x64xf32> to vector<8x64xf32>
    %c0_13 = arith.constant 0 : index
    %c0_14 = arith.constant 0 : index
    %16 = vector.load %arg3[%c0_13, %c0_14] : memref<8x32xf32, #tpu.memory_space<vmem>>, vector<8x32xf32>
    %c0_15 = arith.constant 0 : index
    %c0_16 = arith.constant 0 : index
    %17 = vector.load %arg4[%c0_15, %c0_16] : memref<8x32xf32, #tpu.memory_space<vmem>>, vector<8x32xf32>
    %c0_17 = arith.constant 0 : index
    %c0_18 = arith.constant 0 : index
    %c0_19 = arith.constant 0 : index
    %18 = vector.load %arg2[%c0_17, %c0_18, %c0_19] : memref<8x128x8xf32, #tpu.memory_space<vmem>>, vector<1x128x8xf32>
    %19 = vector.shape_cast %18 : vector<1x128x8xf32> to vector<128x8xf32>
    %cst_20 = arith.constant dense<0.000000e+00> : vector<128x32xf32>
    %20 = tpu.matmul %19, %16, %cst_20 {dimension_numbers = #tpu.dot_dimension_numbers<[1], [0], [0], [1], [0, 0, 1, 1], [], []>} : vector<128x8xf32>, vector<8x32xf32>, vector<128x32xf32> -> vector<128x32xf32>
    %21 = vector.extract_strided_slice %20 {offsets = [0, 0], sizes = [8, 32], strides = [1, 1]} : vector<128x32xf32> to vector<8x32xf32>
    %c0_21 = arith.constant 0 : index
    %c0_22 = arith.constant 0 : index
    %22 = vector.load %arg18[%c0_21, %c0_22] : memref<8x512xf32, #tpu.memory_space<vmem>>, vector<8x32xf32>
    tpu.vector_store %arg18[%c0_21, %c0_22], %21 {strides = array<i32>} : memref<8x512xf32, #tpu.memory_space<vmem>>, vector<8x32xf32>,
    %23 = vector.extract_strided_slice %20 {offsets = [8, 0], sizes = [8, 32], strides = [1, 1]} : vector<128x32xf32> to vector<8x32xf32>
    %c0_23 = arith.constant 0 : index
    %c32 = arith.constant 32 : index
    %24 = vector.load %arg18[%c0_23, %c32] : memref<8x512xf32, #tpu.memory_space<vmem>>, vector<8x32xf32>
    tpu.vector_store %arg18[%c0_23, %c32], %23 {strides = array<i32>} : memref<8x512xf32, #tpu.memory_space<vmem>>, vector<8x32xf32>,
    %25 = vector.extract_strided_slice %20 {offsets = [16, 0], sizes = [8, 32], strides = [1, 1]} : vector<128x32xf32> to vector<8x32xf32>
    %c0_24 = arith.constant 0 : index
    %c64 = arith.constant 64 : index
    %26 = vector.load %arg18[%c0_24, %c64] : memref<8x512xf32, #tpu.memory_space<vmem>>, vector<8x32xf32>
    tpu.vector_store %arg18[%c0_24, %c64], %25 {strides = array<i32>} : memref<8x512xf32, #tpu.memory_space<vmem>>, vector<8x32xf32>,
    %27 = vector.extract_strided_slice %20 {offsets = [24, 0], sizes = [8, 32], strides = [1, 1]} : vector<128x32xf32> to vector<8x32xf32>
    %c0_25 = arith.constant 0 : index
    %c96 = arith.constant 96 : index
    %28 = vector.load %arg18[%c0_25, %c96] : memref<8x512xf32, #tpu.memory_space<vmem>>, vector<8x32xf32>
    tpu.vector_store %arg18[%c0_25, %c96], %27 {strides = array<i32>} : memref<8x512xf32, #tpu.memory_space<vmem>>, vector<8x32xf32>,
    %29 = vector.extract_strided_slice %20 {offsets = [32, 0], sizes = [8, 32], strides = [1, 1]} : vector<128x32xf32> to vector<8x32xf32>
    %c0_26 = arith.constant 0 : index
    %c128 = arith.constant 128 : index
    %30 = vector.load %arg18[%c0_26, %c128] : memref<8x512xf32, #tpu.memory_space<vmem>>, vector<8x32xf32>
    tpu.vector_store %arg18[%c0_26, %c128], %29 {strides = array<i32>} : memref<8x512xf32, #tpu.memory_space<vmem>>, vector<8x32xf32>,
    %31 = vector.extract_strided_slice %20 {offsets = [40, 0], sizes = [8, 32], strides = [1, 1]} : vector<128x32xf32> to vector<8x32xf32>
    %c0_27 = arith.constant 0 : index
    %c160 = arith.constant 160 : index
    %32 = vector.load %arg18[%c0_27, %c160] : memref<8x512xf32, #tpu.memory_space<vmem>>, vector<8x32xf32>
    tpu.vector_store %arg18[%c0_27, %c160], %31 {strides = array<i32>} : memref<8x512xf32, #tpu.memory_space<vmem>>, vector<8x32xf32>,
    %33 = vector.extract_strided_slice %20 {offsets = [48, 0], sizes = [8, 32], strides = [1, 1]} : vector<128x32xf32> to vector<8x32xf32>
    %c0_28 = arith.constant 0 : index
    %c192 = arith.constant 192 : index
    %34 = vector.load %arg18[%c0_28, %c192] : memref<8x512xf32, #tpu.memory_space<vmem>>, vector<8x32xf32>
    tpu.vector_store %arg18[%c0_28, %c192], %33 {strides = array<i32>} : memref<8x512xf32, #tpu.memory_space<vmem>>, vector<8x32xf32>,
    %35 = vector.extract_strided_slice %20 {offsets = [56, 0], sizes = [8, 32], strides = [1, 1]} : vector<128x32xf32> to vector<8x32xf32>
    %c0_29 = arith.constant 0 : index
    %c224 = arith.constant 224 : index
    %36 = vector.load %arg18[%c0_29, %c224] : memref<8x512xf32, #tpu.memory_space<vmem>>, vector<8x32xf32>
    tpu.vector_store %arg18[%c0_29, %c224], %35 {strides = array<i32>} : memref<8x512xf32, #tpu.memory_space<vmem>>, vector<8x32xf32>,
    %37 = vector.extract_strided_slice %20 {offsets = [64, 0], sizes = [8, 32], strides = [1, 1]} : vector<128x32xf32> to vector<8x32xf32>
    %c0_30 = arith.constant 0 : index
    %c256 = arith.constant 256 : index
    %38 = vector.load %arg18[%c0_30, %c256] : memref<8x512xf32, #tpu.memory_space<vmem>>, vector<8x32xf32>
    tpu.vector_store %arg18[%c0_30, %c256], %37 {strides = array<i32>} : memref<8x512xf32, #tpu.memory_space<vmem>>, vector<8x32xf32>,
    %39 = vector.extract_strided_slice %20 {offsets = [72, 0], sizes = [8, 32], strides = [1, 1]} : vector<128x32xf32> to vector<8x32xf32>
    %c0_31 = arith.constant 0 : index
    %c288 = arith.constant 288 : index
    %40 = vector.load %arg18[%c0_31, %c288] : memref<8x512xf32, #tpu.memory_space<vmem>>, vector<8x32xf32>
    tpu.vector_store %arg18[%c0_31, %c288], %39 {strides = array<i32>} : memref<8x512xf32, #tpu.memory_space<vmem>>, vector<8x32xf32>,
    %41 = vector.extract_strided_slice %20 {offsets = [80, 0], sizes = [8, 32], strides = [1, 1]} : vector<128x32xf32> to vector<8x32xf32>
    %c0_32 = arith.constant 0 : index
    %c320 = arith.constant 320 : index
    %42 = vector.load %arg18[%c0_32, %c320] : memref<8x512xf32, #tpu.memory_space<vmem>>, vector<8x32xf32>
    tpu.vector_store %arg18[%c0_32, %c320], %41 {strides = array<i32>} : memref<8x512xf32, #tpu.memory_space<vmem>>, vector<8x32xf32>,
    %43 = vector.extract_strided_slice %20 {offsets = [88, 0], sizes = [8, 32], strides = [1, 1]} : vector<128x32xf32> to vector<8x32xf32>
    %c0_33 = arith.constant 0 : index
    %c352 = arith.constant 352 : index
    %44 = vector.load %arg18[%c0_33, %c352] : memref<8x512xf32, #tpu.memory_space<vmem>>, vector<8x32xf32>
    tpu.vector_store %arg18[%c0_33, %c352], %43 {strides = array<i32>} : memref<8x512xf32, #tpu.memory_space<vmem>>, vector<8x32xf32>,
    %45 = vector.extract_strided_slice %20 {offsets = [96, 0], sizes = [8, 32], strides = [1, 1]} : vector<128x32xf32> to vector<8x32xf32>
    %c0_34 = arith.constant 0 : index
    %c384 = arith.constant 384 : index
    %46 = vector.load %arg18[%c0_34, %c384] : memref<8x512xf32, #tpu.memory_space<vmem>>, vector<8x32xf32>
    tpu.vector_store %arg18[%c0_34, %c384], %45 {strides = array<i32>} : memref<8x512xf32, #tpu.memory_space<vmem>>, vector<8x32xf32>,
    %47 = vector.extract_strided_slice %20 {offsets = [104, 0], sizes = [8, 32], strides = [1, 1]} : vector<128x32xf32> to vector<8x32xf32>
    %c0_35 = arith.constant 0 : index
    %c416 = arith.constant 416 : index
    %48 = vector.load %arg18[%c0_35, %c416] : memref<8x512xf32, #tpu.memory_space<vmem>>, vector<8x32xf32>
    tpu.vector_store %arg18[%c0_35, %c416], %47 {strides = array<i32>} : memref<8x512xf32, #tpu.memory_space<vmem>>, vector<8x32xf32>,
    %49 = vector.extract_strided_slice %20 {offsets = [112, 0], sizes = [8, 32], strides = [1, 1]} : vector<128x32xf32> to vector<8x32xf32>
    %c0_36 = arith.constant 0 : index
    %c448 = arith.constant 448 : index
    %50 = vector.load %arg18[%c0_36, %c448] : memref<8x512xf32, #tpu.memory_space<vmem>>, vector<8x32xf32>
    tpu.vector_store %arg18[%c0_36, %c448], %49 {strides = array<i32>} : memref<8x512xf32, #tpu.memory_space<vmem>>, vector<8x32xf32>,
    %51 = vector.extract_strided_slice %20 {offsets = [120, 0], sizes = [8, 32], strides = [1, 1]} : vector<128x32xf32> to vector<8x32xf32>
    %c0_37 = arith.constant 0 : index
    %c480 = arith.constant 480 : index
    %52 = vector.load %arg18[%c0_37, %c480] : memref<8x512xf32, #tpu.memory_space<vmem>>, vector<8x32xf32>
    tpu.vector_store %arg18[%c0_37, %c480], %51 {strides = array<i32>} : memref<8x512xf32, #tpu.memory_space<vmem>>, vector<8x32xf32>,
    %c0_38 = arith.constant 0 : index
    %c0_39 = arith.constant 0 : index
    %53 = vector.load %arg18[%c0_38, %c0_39] : memref<8x512xf32, #tpu.memory_space<vmem>>, vector<8x512xf32>
    %c0_40 = arith.constant 0 : index
    %c0_41 = arith.constant 0 : index
    %54 = vector.load %arg11[%c0_40, %c0_41] : memref<512x64xf32, #tpu.memory_space<vmem>>, vector<512x64xf32>
    %cst_42 = arith.constant dense<0.000000e+00> : vector<8x64xf32>
    %55 = tpu.matmul %53, %54, %cst_42 {dimension_numbers = #tpu.dot_dimension_numbers<[1], [0], [0], [1], [0, 0, 1, 1], [], []>} : vector<8x512xf32>, vector<512x64xf32>, vector<8x64xf32> -> vector<8x64xf32>
    %56 = arith.addf %55, %15 : vector<8x64xf32>
    %cst_43 = arith.constant 0.000000e+00 : f32
    %57 = vector.broadcast %cst_43 : f32 to vector<8x64xf32>
    %58 = arith.maximumf %56, %57 : vector<8x64xf32>
    %59 = vector.extract_strided_slice %12 {offsets = [0, 0], sizes = [8, 128], strides = [1, 1]} : vector<64x128xf32> to vector<8x128xf32>
    %c0_44 = arith.constant 0 : index
    %c0_45 = arith.constant 0 : index
    %60 = vector.load %arg9[%c0_44, %c0_45] : memref<64x128xf32, #tpu.memory_space<vmem>>, vector<64x128xf32>
    %cst_46 = arith.constant dense<0.000000e+00> : vector<8x128xf32>
    %61 = tpu.matmul %58, %60, %cst_46 {dimension_numbers = #tpu.dot_dimension_numbers<[1], [0], [0], [1], [0, 0, 1, 1], [], []>} : vector<8x64xf32>, vector<64x128xf32>, vector<8x128xf32> -> vector<8x128xf32>
    %62 = arith.addf %59, %61 : vector<8x128xf32>
    %c0_47 = arith.constant 0 : index
    %c0_48 = arith.constant 0 : index
    %63 = vector.load %arg10[%c0_47, %c0_48] : memref<32x128xf32, #tpu.memory_space<vmem>>, vector<32x128xf32>
    %cst_49 = arith.constant dense<0.000000e+00> : vector<8x128xf32>
    %64 = tpu.matmul %16, %63, %cst_49 {dimension_numbers = #tpu.dot_dimension_numbers<[1], [0], [0], [1], [0, 0, 1, 1], [], []>} : vector<8x32xf32>, vector<32x128xf32>, vector<8x128xf32> -> vector<8x128xf32>
    %65 = arith.addf %62, %64 : vector<8x128xf32>
    %66 = arith.negf %65 : vector<8x128xf32>
    %67 = math.exp %66 : vector<8x128xf32>
    %cst_50 = arith.constant 1.000000e+00 : f32
    %68 = vector.broadcast %cst_50 : f32 to vector<8x128xf32>
    %69 = arith.addf %68, %67 : vector<8x128xf32>
    %70 = arith.divf %68, %69 : vector<8x128xf32>
    %71 = vector.extract_strided_slice %70 {offsets = [0, 0], sizes = [8, 32], strides = [1, 1]} : vector<8x128xf32> to vector<8x32xf32>
    %72 = vector.extract_strided_slice %70 {offsets = [0, 32], sizes = [8, 32], strides = [1, 1]} : vector<8x128xf32> to vector<8x32xf32>
    %73 = vector.extract_strided_slice %70 {offsets = [0, 96], sizes = [8, 32], strides = [1, 1]} : vector<8x128xf32> to vector<8x32xf32>
    %74 = vector.extract_strided_slice %65 {offsets = [0, 64], sizes = [8, 32], strides = [1, 1]} : vector<8x128xf32> to vector<8x32xf32>
    %75 = math.tanh %74 : vector<8x32xf32>
    %76 = arith.mulf %72, %17 : vector<8x32xf32>
    %77 = arith.mulf %71, %75 : vector<8x32xf32>
    %78 = arith.addf %76, %77 : vector<8x32xf32>
    %79 = math.tanh %78 : vector<8x32xf32>
    %80 = arith.mulf %73, %79 : vector<8x32xf32>
    %c0_51 = arith.constant 0 : index
    %c0_52 = arith.constant 0 : index
    %81 = vector.load %arg19[%c0_51, %c0_52] : memref<64x32xf32, #tpu.memory_space<vmem>>, vector<8x32xf32>
    tpu.vector_store %arg19[%c0_51, %c0_52], %80 {strides = array<i32>} : memref<64x32xf32, #tpu.memory_space<vmem>>, vector<8x32xf32>,
    %c1 = arith.constant 1 : index
    %c0_53 = arith.constant 0 : index
    %c0_54 = arith.constant 0 : index
    %82 = vector.load %arg2[%c1, %c0_53, %c0_54] : memref<8x128x8xf32, #tpu.memory_space<vmem>>, vector<1x128x8xf32>
    %83 = vector.shape_cast %82 : vector<1x128x8xf32> to vector<128x8xf32>
    %cst_55 = arith.constant dense<0.000000e+00> : vector<128x32xf32>
    %84 = tpu.matmul %83, %80, %cst_55 {dimension_numbers = #tpu.dot_dimension_numbers<[1], [0], [0], [1], [0, 0, 1, 1], [], []>} : vector<128x8xf32>, vector<8x32xf32>, vector<128x32xf32> -> vector<128x32xf32>
    %85 = vector.extract_strided_slice %84 {offsets = [0, 0], sizes = [8, 32], strides = [1, 1]} : vector<128x32xf32> to vector<8x32xf32>
    %c0_56 = arith.constant 0 : index
    %c0_57 = arith.constant 0 : index
    %86 = vector.load %arg18[%c0_56, %c0_57] : memref<8x512xf32, #tpu.memory_space<vmem>>, vector<8x32xf32>
    tpu.vector_store %arg18[%c0_56, %c0_57], %85 {strides = array<i32>} : memref<8x512xf32, #tpu.memory_space<vmem>>, vector<8x32xf32>,
    %87 = vector.extract_strided_slice %84 {offsets = [8, 0], sizes = [8, 32], strides = [1, 1]} : vector<128x32xf32> to vector<8x32xf32>
    %c0_58 = arith.constant 0 : index
    %c32_59 = arith.constant 32 : index
    %88 = vector.load %arg18[%c0_58, %c32_59] : memref<8x512xf32, #tpu.memory_space<vmem>>, vector<8x32xf32>
    tpu.vector_store %arg18[%c0_58, %c32_59], %87 {strides = array<i32>} : memref<8x512xf32, #tpu.memory_space<vmem>>, vector<8x32xf32>,
    %89 = vector.extract_strided_slice %84 {offsets = [16, 0], sizes = [8, 32], strides = [1, 1]} : vector<128x32xf32> to vector<8x32xf32>
    %c0_60 = arith.constant 0 : index
    %c64_61 = arith.constant 64 : index
    %90 = vector.load %arg18[%c0_60, %c64_61] : memref<8x512xf32, #tpu.memory_space<vmem>>, vector<8x32xf32>
    tpu.vector_store %arg18[%c0_60, %c64_61], %89 {strides = array<i32>} : memref<8x512xf32, #tpu.memory_space<vmem>>, vector<8x32xf32>,
    %91 = vector.extract_strided_slice %84 {offsets = [24, 0], sizes = [8, 32], strides = [1, 1]} : vector<128x32xf32> to vector<8x32xf32>
    %c0_62 = arith.constant 0 : index
    %c96_63 = arith.constant 96 : index
    %92 = vector.load %arg18[%c0_62, %c96_63] : memref<8x512xf32, #tpu.memory_space<vmem>>, vector<8x32xf32>
    tpu.vector_store %arg18[%c0_62, %c96_63], %91 {strides = array<i32>} : memref<8x512xf32, #tpu.memory_space<vmem>>, vector<8x32xf32>,
    %93 = vector.extract_strided_slice %84 {offsets = [32, 0], sizes = [8, 32], strides = [1, 1]} : vector<128x32xf32> to vector<8x32xf32>
    %c0_64 = arith.constant 0 : index
    %c128_65 = arith.constant 128 : index
    %94 = vector.load %arg18[%c0_64, %c128_65] : memref<8x512xf32, #tpu.memory_space<vmem>>, vector<8x32xf32>
    tpu.vector_store %arg18[%c0_64, %c128_65], %93 {strides = array<i32>} : memref<8x512xf32, #tpu.memory_space<vmem>>, vector<8x32xf32>,
    %95 = vector.extract_strided_slice %84 {offsets = [40, 0], sizes = [8, 32], strides = [1, 1]} : vector<128x32xf32> to vector<8x32xf32>
    %c0_66 = arith.constant 0 : index
    %c160_67 = arith.constant 160 : index
    %96 = vector.load %arg18[%c0_66, %c160_67] : memref<8x512xf32, #tpu.memory_space<vmem>>, vector<8x32xf32>
    tpu.vector_store %arg18[%c0_66, %c160_67], %95 {strides = array<i32>} : memref<8x512xf32, #tpu.memory_space<vmem>>, vector<8x32xf32>,
    %97 = vector.extract_strided_slice %84 {offsets = [48, 0], sizes = [8, 32], strides = [1, 1]} : vector<128x32xf32> to vector<8x32xf32>
    %c0_68 = arith.constant 0 : index
    %c192_69 = arith.constant 192 : index
    %98 = vector.load %arg18[%c0_68, %c192_69] : memref<8x512xf32, #tpu.memory_space<vmem>>, vector<8x32xf32>
    tpu.vector_store %arg18[%c0_68, %c192_69], %97 {strides = array<i32>} : memref<8x512xf32, #tpu.memory_space<vmem>>, vector<8x32xf32>,
    %99 = vector.extract_strided_slice %84 {offsets = [56, 0], sizes = [8, 32], strides = [1, 1]} : vector<128x32xf32> to vector<8x32xf32>
    %c0_70 = arith.constant 0 : index
    %c224_71 = arith.constant 224 : index
    %100 = vector.load %arg18[%c0_70, %c224_71] : memref<8x512xf32, #tpu.memory_space<vmem>>, vector<8x32xf32>
    tpu.vector_store %arg18[%c0_70, %c224_71], %99 {strides = array<i32>} : memref<8x512xf32, #tpu.memory_space<vmem>>, vector<8x32xf32>,
    %101 = vector.extract_strided_slice %84 {offsets = [64, 0], sizes = [8, 32], strides = [1, 1]} : vector<128x32xf32> to vector<8x32xf32>
    %c0_72 = arith.constant 0 : index
    %c256_73 = arith.constant 256 : index
    %102 = vector.load %arg18[%c0_72, %c256_73] : memref<8x512xf32, #tpu.memory_space<vmem>>, vector<8x32xf32>
    tpu.vector_store %arg18[%c0_72, %c256_73], %101 {strides = array<i32>} : memref<8x512xf32, #tpu.memory_space<vmem>>, vector<8x32xf32>,
    %103 = vector.extract_strided_slice %84 {offsets = [72, 0], sizes = [8, 32], strides = [1, 1]} : vector<128x32xf32> to vector<8x32xf32>
    %c0_74 = arith.constant 0 : index
    %c288_75 = arith.constant 288 : index
    %104 = vector.load %arg18[%c0_74, %c288_75] : memref<8x512xf32, #tpu.memory_space<vmem>>, vector<8x32xf32>
    tpu.vector_store %arg18[%c0_74, %c288_75], %103 {strides = array<i32>} : memref<8x512xf32, #tpu.memory_space<vmem>>, vector<8x32xf32>,
    %105 = vector.extract_strided_slice %84 {offsets = [80, 0], sizes = [8, 32], strides = [1, 1]} : vector<128x32xf32> to vector<8x32xf32>
    %c0_76 = arith.constant 0 : index
    %c320_77 = arith.constant 320 : index
    %106 = vector.load %arg18[%c0_76, %c320_77] : memref<8x512xf32, #tpu.memory_space<vmem>>, vector<8x32xf32>
    tpu.vector_store %arg18[%c0_76, %c320_77], %105 {strides = array<i32>} : memref<8x512xf32, #tpu.memory_space<vmem>>, vector<8x32xf32>,
    %107 = vector.extract_strided_slice %84 {offsets = [88, 0], sizes = [8, 32], strides = [1, 1]} : vector<128x32xf32> to vector<8x32xf32>
    %c0_78 = arith.constant 0 : index
    %c352_79 = arith.constant 352 : index
    %108 = vector.load %arg18[%c0_78, %c352_79] : memref<8x512xf32, #tpu.memory_space<vmem>>, vector<8x32xf32>
    tpu.vector_store %arg18[%c0_78, %c352_79], %107 {strides = array<i32>} : memref<8x512xf32, #tpu.memory_space<vmem>>, vector<8x32xf32>,
    %109 = vector.extract_strided_slice %84 {offsets = [96, 0], sizes = [8, 32], strides = [1, 1]} : vector<128x32xf32> to vector<8x32xf32>
    %c0_80 = arith.constant 0 : index
    %c384_81 = arith.constant 384 : index
    %110 = vector.load %arg18[%c0_80, %c384_81] : memref<8x512xf32, #tpu.memory_space<vmem>>, vector<8x32xf32>
    tpu.vector_store %arg18[%c0_80, %c384_81], %109 {strides = array<i32>} : memref<8x512xf32, #tpu.memory_space<vmem>>, vector<8x32xf32>,
    %111 = vector.extract_strided_slice %84 {offsets = [104, 0], sizes = [8, 32], strides = [1, 1]} : vector<128x32xf32> to vector<8x32xf32>
    %c0_82 = arith.constant 0 : index
    %c416_83 = arith.constant 416 : index
    %112 = vector.load %arg18[%c0_82, %c416_83] : memref<8x512xf32, #tpu.memory_space<vmem>>, vector<8x32xf32>
    tpu.vector_store %arg18[%c0_82, %c416_83], %111 {strides = array<i32>} : memref<8x512xf32, #tpu.memory_space<vmem>>, vector<8x32xf32>,
    %113 = vector.extract_strided_slice %84 {offsets = [112, 0], sizes = [8, 32], strides = [1, 1]} : vector<128x32xf32> to vector<8x32xf32>
    %c0_84 = arith.constant 0 : index
    %c448_85 = arith.constant 448 : index
    %114 = vector.load %arg18[%c0_84, %c448_85] : memref<8x512xf32, #tpu.memory_space<vmem>>, vector<8x32xf32>
    tpu.vector_store %arg18[%c0_84, %c448_85], %113 {strides = array<i32>} : memref<8x512xf32, #tpu.memory_space<vmem>>, vector<8x32xf32>,
    %115 = vector.extract_strided_slice %84 {offsets = [120, 0], sizes = [8, 32], strides = [1, 1]} : vector<128x32xf32> to vector<8x32xf32>
    %c0_86 = arith.constant 0 : index
    %c480_87 = arith.constant 480 : index
    %116 = vector.load %arg18[%c0_86, %c480_87] : memref<8x512xf32, #tpu.memory_space<vmem>>, vector<8x32xf32>
    tpu.vector_store %arg18[%c0_86, %c480_87], %115 {strides = array<i32>} : memref<8x512xf32, #tpu.memory_space<vmem>>, vector<8x32xf32>,
    %c0_88 = arith.constant 0 : index
    %c0_89 = arith.constant 0 : index
    %117 = vector.load %arg18[%c0_88, %c0_89] : memref<8x512xf32, #tpu.memory_space<vmem>>, vector<8x512xf32>
    %c0_90 = arith.constant 0 : index
    %c0_91 = arith.constant 0 : index
    %118 = vector.load %arg11[%c0_90, %c0_91] : memref<512x64xf32, #tpu.memory_space<vmem>>, vector<512x64xf32>
    %cst_92 = arith.constant dense<0.000000e+00> : vector<8x64xf32>
    %119 = tpu.matmul %117, %118, %cst_92 {dimension_numbers = #tpu.dot_dimension_numbers<[1], [0], [0], [1], [0, 0, 1, 1], [], []>} : vector<8x512xf32>, vector<512x64xf32>, vector<8x64xf32> -> vector<8x64xf32>
    %120 = arith.addf %119, %15 : vector<8x64xf32>
    %cst_93 = arith.constant 0.000000e+00 : f32
    %121 = vector.broadcast %cst_93 : f32 to vector<8x64xf32>
    %122 = arith.maximumf %120, %121 : vector<8x64xf32>
    %123 = vector.extract_strided_slice %12 {offsets = [8, 0], sizes = [8, 128], strides = [1, 1]} : vector<64x128xf32> to vector<8x128xf32>
    %c0_94 = arith.constant 0 : index
    %c0_95 = arith.constant 0 : index
    %124 = vector.load %arg9[%c0_94, %c0_95] : memref<64x128xf32, #tpu.memory_space<vmem>>, vector<64x128xf32>
    %cst_96 = arith.constant dense<0.000000e+00> : vector<8x128xf32>
    %125 = tpu.matmul %122, %124, %cst_96 {dimension_numbers = #tpu.dot_dimension_numbers<[1], [0], [0], [1], [0, 0, 1, 1], [], []>} : vector<8x64xf32>, vector<64x128xf32>, vector<8x128xf32> -> vector<8x128xf32>
    %126 = arith.addf %123, %125 : vector<8x128xf32>
    %c0_97 = arith.constant 0 : index
    %c0_98 = arith.constant 0 : index
    %127 = vector.load %arg10[%c0_97, %c0_98] : memref<32x128xf32, #tpu.memory_space<vmem>>, vector<32x128xf32>
    %cst_99 = arith.constant dense<0.000000e+00> : vector<8x128xf32>
    %128 = tpu.matmul %80, %127, %cst_99 {dimension_numbers = #tpu.dot_dimension_numbers<[1], [0], [0], [1], [0, 0, 1, 1], [], []>} : vector<8x32xf32>, vector<32x128xf32>, vector<8x128xf32> -> vector<8x128xf32>
    %129 = arith.addf %126, %128 : vector<8x128xf32>
    %130 = arith.negf %129 : vector<8x128xf32>
    %131 = math.exp %130 : vector<8x128xf32>
    %cst_100 = arith.constant 1.000000e+00 : f32
    %132 = vector.broadcast %cst_100 : f32 to vector<8x128xf32>
    %133 = arith.addf %132, %131 : vector<8x128xf32>
    %134 = arith.divf %132, %133 : vector<8x128xf32>
    %135 = vector.extract_strided_slice %134 {offsets = [0, 0], sizes = [8, 32], strides = [1, 1]} : vector<8x128xf32> to vector<8x32xf32>
    %136 = vector.extract_strided_slice %134 {offsets = [0, 32], sizes = [8, 32], strides = [1, 1]} : vector<8x128xf32> to vector<8x32xf32>
    %137 = vector.extract_strided_slice %134 {offsets = [0, 96], sizes = [8, 32], strides = [1, 1]} : vector<8x128xf32> to vector<8x32xf32>
    %138 = vector.extract_strided_slice %129 {offsets = [0, 64], sizes = [8, 32], strides = [1, 1]} : vector<8x128xf32> to vector<8x32xf32>
    %139 = math.tanh %138 : vector<8x32xf32>
    %140 = arith.mulf %136, %78 : vector<8x32xf32>
    %141 = arith.mulf %135, %139 : vector<8x32xf32>
    %142 = arith.addf %140, %141 : vector<8x32xf32>
    %143 = math.tanh %142 : vector<8x32xf32>
    %144 = arith.mulf %137, %143 : vector<8x32xf32>
    %c8 = arith.constant 8 : index
    %c0_101 = arith.constant 0 : index
    %145 = vector.load %arg19[%c8, %c0_101] : memref<64x32xf32, #tpu.memory_space<vmem>>, vector<8x32xf32>
    tpu.vector_store %arg19[%c8, %c0_101], %144 {strides = array<i32>} : memref<64x32xf32, #tpu.memory_space<vmem>>, vector<8x32xf32>,
    %c2 = arith.constant 2 : index
    %c0_102 = arith.constant 0 : index
    %c0_103 = arith.constant 0 : index
    %146 = vector.load %arg2[%c2, %c0_102, %c0_103] : memref<8x128x8xf32, #tpu.memory_space<vmem>>, vector<1x128x8xf32>
    %147 = vector.shape_cast %146 : vector<1x128x8xf32> to vector<128x8xf32>
    %cst_104 = arith.constant dense<0.000000e+00> : vector<128x32xf32>
    %148 = tpu.matmul %147, %144, %cst_104 {dimension_numbers = #tpu.dot_dimension_numbers<[1], [0], [0], [1], [0, 0, 1, 1], [], []>} : vector<128x8xf32>, vector<8x32xf32>, vector<128x32xf32> -> vector<128x32xf32>
    %149 = vector.extract_strided_slice %148 {offsets = [0, 0], sizes = [8, 32], strides = [1, 1]} : vector<128x32xf32> to vector<8x32xf32>
    %c0_105 = arith.constant 0 : index
    %c0_106 = arith.constant 0 : index
    %150 = vector.load %arg18[%c0_105, %c0_106] : memref<8x512xf32, #tpu.memory_space<vmem>>, vector<8x32xf32>
    tpu.vector_store %arg18[%c0_105, %c0_106], %149 {strides = array<i32>} : memref<8x512xf32, #tpu.memory_space<vmem>>, vector<8x32xf32>,
    %151 = vector.extract_strided_slice %148 {offsets = [8, 0], sizes = [8, 32], strides = [1, 1]} : vector<128x32xf32> to vector<8x32xf32>
    %c0_107 = arith.constant 0 : index
    %c32_108 = arith.constant 32 : index
    %152 = vector.load %arg18[%c0_107, %c32_108] : memref<8x512xf32, #tpu.memory_space<vmem>>, vector<8x32xf32>
    tpu.vector_store %arg18[%c0_107, %c32_108], %151 {strides = array<i32>} : memref<8x512xf32, #tpu.memory_space<vmem>>, vector<8x32xf32>,
    %153 = vector.extract_strided_slice %148 {offsets = [16, 0], sizes = [8, 32], strides = [1, 1]} : vector<128x32xf32> to vector<8x32xf32>
    %c0_109 = arith.constant 0 : index
    %c64_110 = arith.constant 64 : index
    %154 = vector.load %arg18[%c0_109, %c64_110] : memref<8x512xf32, #tpu.memory_space<vmem>>, vector<8x32xf32>
    tpu.vector_store %arg18[%c0_109, %c64_110], %153 {strides = array<i32>} : memref<8x512xf32, #tpu.memory_space<vmem>>, vector<8x32xf32>,
    %155 = vector.extract_strided_slice %148 {offsets = [24, 0], sizes = [8, 32], strides = [1, 1]} : vector<128x32xf32> to vector<8x32xf32>
    %c0_111 = arith.constant 0 : index
    %c96_112 = arith.constant 96 : index
    %156 = vector.load %arg18[%c0_111, %c96_112] : memref<8x512xf32, #tpu.memory_space<vmem>>, vector<8x32xf32>
    tpu.vector_store %arg18[%c0_111, %c96_112], %155 {strides = array<i32>} : memref<8x512xf32, #tpu.memory_space<vmem>>, vector<8x32xf32>,
    %157 = vector.extract_strided_slice %148 {offsets = [32, 0], sizes = [8, 32], strides = [1, 1]} : vector<128x32xf32> to vector<8x32xf32>
    %c0_113 = arith.constant 0 : index
    %c128_114 = arith.constant 128 : index
    %158 = vector.load %arg18[%c0_113, %c128_114] : memref<8x512xf32, #tpu.memory_space<vmem>>, vector<8x32xf32>
    tpu.vector_store %arg18[%c0_113, %c128_114], %157 {strides = array<i32>} : memref<8x512xf32, #tpu.memory_space<vmem>>, vector<8x32xf32>,
    %159 = vector.extract_strided_slice %148 {offsets = [40, 0], sizes = [8, 32], strides = [1, 1]} : vector<128x32xf32> to vector<8x32xf32>
    %c0_115 = arith.constant 0 : index
    %c160_116 = arith.constant 160 : index
    %160 = vector.load %arg18[%c0_115, %c160_116] : memref<8x512xf32, #tpu.memory_space<vmem>>, vector<8x32xf32>
    tpu.vector_store %arg18[%c0_115, %c160_116], %159 {strides = array<i32>} : memref<8x512xf32, #tpu.memory_space<vmem>>, vector<8x32xf32>,
    %161 = vector.extract_strided_slice %148 {offsets = [48, 0], sizes = [8, 32], strides = [1, 1]} : vector<128x32xf32> to vector<8x32xf32>
    %c0_117 = arith.constant 0 : index
    %c192_118 = arith.constant 192 : index
    %162 = vector.load %arg18[%c0_117, %c192_118] : memref<8x512xf32, #tpu.memory_space<vmem>>, vector<8x32xf32>
    tpu.vector_store %arg18[%c0_117, %c192_118], %161 {strides = array<i32>} : memref<8x512xf32, #tpu.memory_space<vmem>>, vector<8x32xf32>,
    %163 = vector.extract_strided_slice %148 {offsets = [56, 0], sizes = [8, 32], strides = [1, 1]} : vector<128x32xf32> to vector<8x32xf32>
    %c0_119 = arith.constant 0 : index
    %c224_120 = arith.constant 224 : index
    %164 = vector.load %arg18[%c0_119, %c224_120] : memref<8x512xf32, #tpu.memory_space<vmem>>, vector<8x32xf32>
    tpu.vector_store %arg18[%c0_119, %c224_120], %163 {strides = array<i32>} : memref<8x512xf32, #tpu.memory_space<vmem>>, vector<8x32xf32>,
    %165 = vector.extract_strided_slice %148 {offsets = [64, 0], sizes = [8, 32], strides = [1, 1]} : vector<128x32xf32> to vector<8x32xf32>
    %c0_121 = arith.constant 0 : index
    %c256_122 = arith.constant 256 : index
    %166 = vector.load %arg18[%c0_121, %c256_122] : memref<8x512xf32, #tpu.memory_space<vmem>>, vector<8x32xf32>
    tpu.vector_store %arg18[%c0_121, %c256_122], %165 {strides = array<i32>} : memref<8x512xf32, #tpu.memory_space<vmem>>, vector<8x32xf32>,
    %167 = vector.extract_strided_slice %148 {offsets = [72, 0], sizes = [8, 32], strides = [1, 1]} : vector<128x32xf32> to vector<8x32xf32>
    %c0_123 = arith.constant 0 : index
    %c288_124 = arith.constant 288 : index
    %168 = vector.load %arg18[%c0_123, %c288_124] : memref<8x512xf32, #tpu.memory_space<vmem>>, vector<8x32xf32>
    tpu.vector_store %arg18[%c0_123, %c288_124], %167 {strides = array<i32>} : memref<8x512xf32, #tpu.memory_space<vmem>>, vector<8x32xf32>,
    %169 = vector.extract_strided_slice %148 {offsets = [80, 0], sizes = [8, 32], strides = [1, 1]} : vector<128x32xf32> to vector<8x32xf32>
    %c0_125 = arith.constant 0 : index
    %c320_126 = arith.constant 320 : index
    %170 = vector.load %arg18[%c0_125, %c320_126] : memref<8x512xf32, #tpu.memory_space<vmem>>, vector<8x32xf32>
    tpu.vector_store %arg18[%c0_125, %c320_126], %169 {strides = array<i32>} : memref<8x512xf32, #tpu.memory_space<vmem>>, vector<8x32xf32>,
    %171 = vector.extract_strided_slice %148 {offsets = [88, 0], sizes = [8, 32], strides = [1, 1]} : vector<128x32xf32> to vector<8x32xf32>
    %c0_127 = arith.constant 0 : index
    %c352_128 = arith.constant 352 : index
    %172 = vector.load %arg18[%c0_127, %c352_128] : memref<8x512xf32, #tpu.memory_space<vmem>>, vector<8x32xf32>
    tpu.vector_store %arg18[%c0_127, %c352_128], %171 {strides = array<i32>} : memref<8x512xf32, #tpu.memory_space<vmem>>, vector<8x32xf32>,
    %173 = vector.extract_strided_slice %148 {offsets = [96, 0], sizes = [8, 32], strides = [1, 1]} : vector<128x32xf32> to vector<8x32xf32>
    %c0_129 = arith.constant 0 : index
    %c384_130 = arith.constant 384 : index
    %174 = vector.load %arg18[%c0_129, %c384_130] : memref<8x512xf32, #tpu.memory_space<vmem>>, vector<8x32xf32>
    tpu.vector_store %arg18[%c0_129, %c384_130], %173 {strides = array<i32>} : memref<8x512xf32, #tpu.memory_space<vmem>>, vector<8x32xf32>,
    %175 = vector.extract_strided_slice %148 {offsets = [104, 0], sizes = [8, 32], strides = [1, 1]} : vector<128x32xf32> to vector<8x32xf32>
    %c0_131 = arith.constant 0 : index
    %c416_132 = arith.constant 416 : index
    %176 = vector.load %arg18[%c0_131, %c416_132] : memref<8x512xf32, #tpu.memory_space<vmem>>, vector<8x32xf32>
    tpu.vector_store %arg18[%c0_131, %c416_132], %175 {strides = array<i32>} : memref<8x512xf32, #tpu.memory_space<vmem>>, vector<8x32xf32>,
    %177 = vector.extract_strided_slice %148 {offsets = [112, 0], sizes = [8, 32], strides = [1, 1]} : vector<128x32xf32> to vector<8x32xf32>
    %c0_133 = arith.constant 0 : index
    %c448_134 = arith.constant 448 : index
    %178 = vector.load %arg18[%c0_133, %c448_134] : memref<8x512xf32, #tpu.memory_space<vmem>>, vector<8x32xf32>
    tpu.vector_store %arg18[%c0_133, %c448_134], %177 {strides = array<i32>} : memref<8x512xf32, #tpu.memory_space<vmem>>, vector<8x32xf32>,
    %179 = vector.extract_strided_slice %148 {offsets = [120, 0], sizes = [8, 32], strides = [1, 1]} : vector<128x32xf32> to vector<8x32xf32>
    %c0_135 = arith.constant 0 : index
    %c480_136 = arith.constant 480 : index
    %180 = vector.load %arg18[%c0_135, %c480_136] : memref<8x512xf32, #tpu.memory_space<vmem>>, vector<8x32xf32>
    tpu.vector_store %arg18[%c0_135, %c480_136], %179 {strides = array<i32>} : memref<8x512xf32, #tpu.memory_space<vmem>>, vector<8x32xf32>,
    %c0_137 = arith.constant 0 : index
    %c0_138 = arith.constant 0 : index
    %181 = vector.load %arg18[%c0_137, %c0_138] : memref<8x512xf32, #tpu.memory_space<vmem>>, vector<8x512xf32>
    %c0_139 = arith.constant 0 : index
    %c0_140 = arith.constant 0 : index
    %182 = vector.load %arg11[%c0_139, %c0_140] : memref<512x64xf32, #tpu.memory_space<vmem>>, vector<512x64xf32>
    %cst_141 = arith.constant dense<0.000000e+00> : vector<8x64xf32>
    %183 = tpu.matmul %181, %182, %cst_141 {dimension_numbers = #tpu.dot_dimension_numbers<[1], [0], [0], [1], [0, 0, 1, 1], [], []>} : vector<8x512xf32>, vector<512x64xf32>, vector<8x64xf32> -> vector<8x64xf32>
    %184 = arith.addf %183, %15 : vector<8x64xf32>
    %cst_142 = arith.constant 0.000000e+00 : f32
    %185 = vector.broadcast %cst_142 : f32 to vector<8x64xf32>
    %186 = arith.maximumf %184, %185 : vector<8x64xf32>
    %187 = vector.extract_strided_slice %12 {offsets = [16, 0], sizes = [8, 128], strides = [1, 1]} : vector<64x128xf32> to vector<8x128xf32>
    %c0_143 = arith.constant 0 : index
    %c0_144 = arith.constant 0 : index
    %188 = vector.load %arg9[%c0_143, %c0_144] : memref<64x128xf32, #tpu.memory_space<vmem>>, vector<64x128xf32>
    %cst_145 = arith.constant dense<0.000000e+00> : vector<8x128xf32>
    %189 = tpu.matmul %186, %188, %cst_145 {dimension_numbers = #tpu.dot_dimension_numbers<[1], [0], [0], [1], [0, 0, 1, 1], [], []>} : vector<8x64xf32>, vector<64x128xf32>, vector<8x128xf32> -> vector<8x128xf32>
    %190 = arith.addf %187, %189 : vector<8x128xf32>
    %c0_146 = arith.constant 0 : index
    %c0_147 = arith.constant 0 : index
    %191 = vector.load %arg10[%c0_146, %c0_147] : memref<32x128xf32, #tpu.memory_space<vmem>>, vector<32x128xf32>
    %cst_148 = arith.constant dense<0.000000e+00> : vector<8x128xf32>
    %192 = tpu.matmul %144, %191, %cst_148 {dimension_numbers = #tpu.dot_dimension_numbers<[1], [0], [0], [1], [0, 0, 1, 1], [], []>} : vector<8x32xf32>, vector<32x128xf32>, vector<8x128xf32> -> vector<8x128xf32>
    %193 = arith.addf %190, %192 : vector<8x128xf32>
    %194 = arith.negf %193 : vector<8x128xf32>
    %195 = math.exp %194 : vector<8x128xf32>
    %cst_149 = arith.constant 1.000000e+00 : f32
    %196 = vector.broadcast %cst_149 : f32 to vector<8x128xf32>
    %197 = arith.addf %196, %195 : vector<8x128xf32>
    %198 = arith.divf %196, %197 : vector<8x128xf32>
    %199 = vector.extract_strided_slice %198 {offsets = [0, 0], sizes = [8, 32], strides = [1, 1]} : vector<8x128xf32> to vector<8x32xf32>
    %200 = vector.extract_strided_slice %198 {offsets = [0, 32], sizes = [8, 32], strides = [1, 1]} : vector<8x128xf32> to vector<8x32xf32>
    %201 = vector.extract_strided_slice %198 {offsets = [0, 96], sizes = [8, 32], strides = [1, 1]} : vector<8x128xf32> to vector<8x32xf32>
    %202 = vector.extract_strided_slice %193 {offsets = [0, 64], sizes = [8, 32], strides = [1, 1]} : vector<8x128xf32> to vector<8x32xf32>
    %203 = math.tanh %202 : vector<8x32xf32>
    %204 = arith.mulf %200, %142 : vector<8x32xf32>
    %205 = arith.mulf %199, %203 : vector<8x32xf32>
    %206 = arith.addf %204, %205 : vector<8x32xf32>
    %207 = math.tanh %206 : vector<8x32xf32>
    %208 = arith.mulf %201, %207 : vector<8x32xf32>
    %c16 = arith.constant 16 : index
    %c0_150 = arith.constant 0 : index
    %209 = vector.load %arg19[%c16, %c0_150] : memref<64x32xf32, #tpu.memory_space<vmem>>, vector<8x32xf32>
    tpu.vector_store %arg19[%c16, %c0_150], %208 {strides = array<i32>} : memref<64x32xf32, #tpu.memory_space<vmem>>, vector<8x32xf32>,
    %c3 = arith.constant 3 : index
    %c0_151 = arith.constant 0 : index
    %c0_152 = arith.constant 0 : index
    %210 = vector.load %arg2[%c3, %c0_151, %c0_152] : memref<8x128x8xf32, #tpu.memory_space<vmem>>, vector<1x128x8xf32>
    %211 = vector.shape_cast %210 : vector<1x128x8xf32> to vector<128x8xf32>
    %cst_153 = arith.constant dense<0.000000e+00> : vector<128x32xf32>
    %212 = tpu.matmul %211, %208, %cst_153 {dimension_numbers = #tpu.dot_dimension_numbers<[1], [0], [0], [1], [0, 0, 1, 1], [], []>} : vector<128x8xf32>, vector<8x32xf32>, vector<128x32xf32> -> vector<128x32xf32>
    %213 = vector.extract_strided_slice %212 {offsets = [0, 0], sizes = [8, 32], strides = [1, 1]} : vector<128x32xf32> to vector<8x32xf32>
    %c0_154 = arith.constant 0 : index
    %c0_155 = arith.constant 0 : index
    %214 = vector.load %arg18[%c0_154, %c0_155] : memref<8x512xf32, #tpu.memory_space<vmem>>, vector<8x32xf32>
    tpu.vector_store %arg18[%c0_154, %c0_155], %213 {strides = array<i32>} : memref<8x512xf32, #tpu.memory_space<vmem>>, vector<8x32xf32>,
    %215 = vector.extract_strided_slice %212 {offsets = [8, 0], sizes = [8, 32], strides = [1, 1]} : vector<128x32xf32> to vector<8x32xf32>
    %c0_156 = arith.constant 0 : index
    %c32_157 = arith.constant 32 : index
    %216 = vector.load %arg18[%c0_156, %c32_157] : memref<8x512xf32, #tpu.memory_space<vmem>>, vector<8x32xf32>
    tpu.vector_store %arg18[%c0_156, %c32_157], %215 {strides = array<i32>} : memref<8x512xf32, #tpu.memory_space<vmem>>, vector<8x32xf32>,
    %217 = vector.extract_strided_slice %212 {offsets = [16, 0], sizes = [8, 32], strides = [1, 1]} : vector<128x32xf32> to vector<8x32xf32>
    %c0_158 = arith.constant 0 : index
    %c64_159 = arith.constant 64 : index
    %218 = vector.load %arg18[%c0_158, %c64_159] : memref<8x512xf32, #tpu.memory_space<vmem>>, vector<8x32xf32>
    tpu.vector_store %arg18[%c0_158, %c64_159], %217 {strides = array<i32>} : memref<8x512xf32, #tpu.memory_space<vmem>>, vector<8x32xf32>,
    %219 = vector.extract_strided_slice %212 {offsets = [24, 0], sizes = [8, 32], strides = [1, 1]} : vector<128x32xf32> to vector<8x32xf32>
    %c0_160 = arith.constant 0 : index
    %c96_161 = arith.constant 96 : index
    %220 = vector.load %arg18[%c0_160, %c96_161] : memref<8x512xf32, #tpu.memory_space<vmem>>, vector<8x32xf32>
    tpu.vector_store %arg18[%c0_160, %c96_161], %219 {strides = array<i32>} : memref<8x512xf32, #tpu.memory_space<vmem>>, vector<8x32xf32>,
    %221 = vector.extract_strided_slice %212 {offsets = [32, 0], sizes = [8, 32], strides = [1, 1]} : vector<128x32xf32> to vector<8x32xf32>
    %c0_162 = arith.constant 0 : index
    %c128_163 = arith.constant 128 : index
    %222 = vector.load %arg18[%c0_162, %c128_163] : memref<8x512xf32, #tpu.memory_space<vmem>>, vector<8x32xf32>
    tpu.vector_store %arg18[%c0_162, %c128_163], %221 {strides = array<i32>} : memref<8x512xf32, #tpu.memory_space<vmem>>, vector<8x32xf32>,
    %223 = vector.extract_strided_slice %212 {offsets = [40, 0], sizes = [8, 32], strides = [1, 1]} : vector<128x32xf32> to vector<8x32xf32>
    %c0_164 = arith.constant 0 : index
    %c160_165 = arith.constant 160 : index
    %224 = vector.load %arg18[%c0_164, %c160_165] : memref<8x512xf32, #tpu.memory_space<vmem>>, vector<8x32xf32>
    tpu.vector_store %arg18[%c0_164, %c160_165], %223 {strides = array<i32>} : memref<8x512xf32, #tpu.memory_space<vmem>>, vector<8x32xf32>,
    %225 = vector.extract_strided_slice %212 {offsets = [48, 0], sizes = [8, 32], strides = [1, 1]} : vector<128x32xf32> to vector<8x32xf32>
    %c0_166 = arith.constant 0 : index
    %c192_167 = arith.constant 192 : index
    %226 = vector.load %arg18[%c0_166, %c192_167] : memref<8x512xf32, #tpu.memory_space<vmem>>, vector<8x32xf32>
    tpu.vector_store %arg18[%c0_166, %c192_167], %225 {strides = array<i32>} : memref<8x512xf32, #tpu.memory_space<vmem>>, vector<8x32xf32>,
    %227 = vector.extract_strided_slice %212 {offsets = [56, 0], sizes = [8, 32], strides = [1, 1]} : vector<128x32xf32> to vector<8x32xf32>
    %c0_168 = arith.constant 0 : index
    %c224_169 = arith.constant 224 : index
    %228 = vector.load %arg18[%c0_168, %c224_169] : memref<8x512xf32, #tpu.memory_space<vmem>>, vector<8x32xf32>
    tpu.vector_store %arg18[%c0_168, %c224_169], %227 {strides = array<i32>} : memref<8x512xf32, #tpu.memory_space<vmem>>, vector<8x32xf32>,
    %229 = vector.extract_strided_slice %212 {offsets = [64, 0], sizes = [8, 32], strides = [1, 1]} : vector<128x32xf32> to vector<8x32xf32>
    %c0_170 = arith.constant 0 : index
    %c256_171 = arith.constant 256 : index
    %230 = vector.load %arg18[%c0_170, %c256_171] : memref<8x512xf32, #tpu.memory_space<vmem>>, vector<8x32xf32>
    tpu.vector_store %arg18[%c0_170, %c256_171], %229 {strides = array<i32>} : memref<8x512xf32, #tpu.memory_space<vmem>>, vector<8x32xf32>,
    %231 = vector.extract_strided_slice %212 {offsets = [72, 0], sizes = [8, 32], strides = [1, 1]} : vector<128x32xf32> to vector<8x32xf32>
    %c0_172 = arith.constant 0 : index
    %c288_173 = arith.constant 288 : index
    %232 = vector.load %arg18[%c0_172, %c288_173] : memref<8x512xf32, #tpu.memory_space<vmem>>, vector<8x32xf32>
    tpu.vector_store %arg18[%c0_172, %c288_173], %231 {strides = array<i32>} : memref<8x512xf32, #tpu.memory_space<vmem>>, vector<8x32xf32>,
    %233 = vector.extract_strided_slice %212 {offsets = [80, 0], sizes = [8, 32], strides = [1, 1]} : vector<128x32xf32> to vector<8x32xf32>
    %c0_174 = arith.constant 0 : index
    %c320_175 = arith.constant 320 : index
    %234 = vector.load %arg18[%c0_174, %c320_175] : memref<8x512xf32, #tpu.memory_space<vmem>>, vector<8x32xf32>
    tpu.vector_store %arg18[%c0_174, %c320_175], %233 {strides = array<i32>} : memref<8x512xf32, #tpu.memory_space<vmem>>, vector<8x32xf32>,
    %235 = vector.extract_strided_slice %212 {offsets = [88, 0], sizes = [8, 32], strides = [1, 1]} : vector<128x32xf32> to vector<8x32xf32>
    %c0_176 = arith.constant 0 : index
    %c352_177 = arith.constant 352 : index
    %236 = vector.load %arg18[%c0_176, %c352_177] : memref<8x512xf32, #tpu.memory_space<vmem>>, vector<8x32xf32>
    tpu.vector_store %arg18[%c0_176, %c352_177], %235 {strides = array<i32>} : memref<8x512xf32, #tpu.memory_space<vmem>>, vector<8x32xf32>,
    %237 = vector.extract_strided_slice %212 {offsets = [96, 0], sizes = [8, 32], strides = [1, 1]} : vector<128x32xf32> to vector<8x32xf32>
    %c0_178 = arith.constant 0 : index
    %c384_179 = arith.constant 384 : index
    %238 = vector.load %arg18[%c0_178, %c384_179] : memref<8x512xf32, #tpu.memory_space<vmem>>, vector<8x32xf32>
    tpu.vector_store %arg18[%c0_178, %c384_179], %237 {strides = array<i32>} : memref<8x512xf32, #tpu.memory_space<vmem>>, vector<8x32xf32>,
    %239 = vector.extract_strided_slice %212 {offsets = [104, 0], sizes = [8, 32], strides = [1, 1]} : vector<128x32xf32> to vector<8x32xf32>
    %c0_180 = arith.constant 0 : index
    %c416_181 = arith.constant 416 : index
    %240 = vector.load %arg18[%c0_180, %c416_181] : memref<8x512xf32, #tpu.memory_space<vmem>>, vector<8x32xf32>
    tpu.vector_store %arg18[%c0_180, %c416_181], %239 {strides = array<i32>} : memref<8x512xf32, #tpu.memory_space<vmem>>, vector<8x32xf32>,
    %241 = vector.extract_strided_slice %212 {offsets = [112, 0], sizes = [8, 32], strides = [1, 1]} : vector<128x32xf32> to vector<8x32xf32>
    %c0_182 = arith.constant 0 : index
    %c448_183 = arith.constant 448 : index
    %242 = vector.load %arg18[%c0_182, %c448_183] : memref<8x512xf32, #tpu.memory_space<vmem>>, vector<8x32xf32>
    tpu.vector_store %arg18[%c0_182, %c448_183], %241 {strides = array<i32>} : memref<8x512xf32, #tpu.memory_space<vmem>>, vector<8x32xf32>,
    %243 = vector.extract_strided_slice %212 {offsets = [120, 0], sizes = [8, 32], strides = [1, 1]} : vector<128x32xf32> to vector<8x32xf32>
    %c0_184 = arith.constant 0 : index
    %c480_185 = arith.constant 480 : index
    %244 = vector.load %arg18[%c0_184, %c480_185] : memref<8x512xf32, #tpu.memory_space<vmem>>, vector<8x32xf32>
    tpu.vector_store %arg18[%c0_184, %c480_185], %243 {strides = array<i32>} : memref<8x512xf32, #tpu.memory_space<vmem>>, vector<8x32xf32>,
    %c0_186 = arith.constant 0 : index
    %c0_187 = arith.constant 0 : index
    %245 = vector.load %arg18[%c0_186, %c0_187] : memref<8x512xf32, #tpu.memory_space<vmem>>, vector<8x512xf32>
    %c0_188 = arith.constant 0 : index
    %c0_189 = arith.constant 0 : index
    %246 = vector.load %arg11[%c0_188, %c0_189] : memref<512x64xf32, #tpu.memory_space<vmem>>, vector<512x64xf32>
    %cst_190 = arith.constant dense<0.000000e+00> : vector<8x64xf32>
    %247 = tpu.matmul %245, %246, %cst_190 {dimension_numbers = #tpu.dot_dimension_numbers<[1], [0], [0], [1], [0, 0, 1, 1], [], []>} : vector<8x512xf32>, vector<512x64xf32>, vector<8x64xf32> -> vector<8x64xf32>
    %248 = arith.addf %247, %15 : vector<8x64xf32>
    %cst_191 = arith.constant 0.000000e+00 : f32
    %249 = vector.broadcast %cst_191 : f32 to vector<8x64xf32>
    %250 = arith.maximumf %248, %249 : vector<8x64xf32>
    %251 = vector.extract_strided_slice %12 {offsets = [24, 0], sizes = [8, 128], strides = [1, 1]} : vector<64x128xf32> to vector<8x128xf32>
    %c0_192 = arith.constant 0 : index
    %c0_193 = arith.constant 0 : index
    %252 = vector.load %arg9[%c0_192, %c0_193] : memref<64x128xf32, #tpu.memory_space<vmem>>, vector<64x128xf32>
    %cst_194 = arith.constant dense<0.000000e+00> : vector<8x128xf32>
    %253 = tpu.matmul %250, %252, %cst_194 {dimension_numbers = #tpu.dot_dimension_numbers<[1], [0], [0], [1], [0, 0, 1, 1], [], []>} : vector<8x64xf32>, vector<64x128xf32>, vector<8x128xf32> -> vector<8x128xf32>
    %254 = arith.addf %251, %253 : vector<8x128xf32>
    %c0_195 = arith.constant 0 : index
    %c0_196 = arith.constant 0 : index
    %255 = vector.load %arg10[%c0_195, %c0_196] : memref<32x128xf32, #tpu.memory_space<vmem>>, vector<32x128xf32>
    %cst_197 = arith.constant dense<0.000000e+00> : vector<8x128xf32>
    %256 = tpu.matmul %208, %255, %cst_197 {dimension_numbers = #tpu.dot_dimension_numbers<[1], [0], [0], [1], [0, 0, 1, 1], [], []>} : vector<8x32xf32>, vector<32x128xf32>, vector<8x128xf32> -> vector<8x128xf32>
    %257 = arith.addf %254, %256 : vector<8x128xf32>
    %258 = arith.negf %257 : vector<8x128xf32>
    %259 = math.exp %258 : vector<8x128xf32>
    %cst_198 = arith.constant 1.000000e+00 : f32
    %260 = vector.broadcast %cst_198 : f32 to vector<8x128xf32>
    %261 = arith.addf %260, %259 : vector<8x128xf32>
    %262 = arith.divf %260, %261 : vector<8x128xf32>
    %263 = vector.extract_strided_slice %262 {offsets = [0, 0], sizes = [8, 32], strides = [1, 1]} : vector<8x128xf32> to vector<8x32xf32>
    %264 = vector.extract_strided_slice %262 {offsets = [0, 32], sizes = [8, 32], strides = [1, 1]} : vector<8x128xf32> to vector<8x32xf32>
    %265 = vector.extract_strided_slice %262 {offsets = [0, 96], sizes = [8, 32], strides = [1, 1]} : vector<8x128xf32> to vector<8x32xf32>
    %266 = vector.extract_strided_slice %257 {offsets = [0, 64], sizes = [8, 32], strides = [1, 1]} : vector<8x128xf32> to vector<8x32xf32>
    %267 = math.tanh %266 : vector<8x32xf32>
    %268 = arith.mulf %264, %206 : vector<8x32xf32>
    %269 = arith.mulf %263, %267 : vector<8x32xf32>
    %270 = arith.addf %268, %269 : vector<8x32xf32>
    %271 = math.tanh %270 : vector<8x32xf32>
    %272 = arith.mulf %265, %271 : vector<8x32xf32>
    %c24 = arith.constant 24 : index
    %c0_199 = arith.constant 0 : index
    %273 = vector.load %arg19[%c24, %c0_199] : memref<64x32xf32, #tpu.memory_space<vmem>>, vector<8x32xf32>
    tpu.vector_store %arg19[%c24, %c0_199], %272 {strides = array<i32>} : memref<64x32xf32, #tpu.memory_space<vmem>>, vector<8x32xf32>,
    %c4 = arith.constant 4 : index
    %c0_200 = arith.constant 0 : index
    %c0_201 = arith.constant 0 : index
    %274 = vector.load %arg2[%c4, %c0_200, %c0_201] : memref<8x128x8xf32, #tpu.memory_space<vmem>>, vector<1x128x8xf32>
    %275 = vector.shape_cast %274 : vector<1x128x8xf32> to vector<128x8xf32>
    %cst_202 = arith.constant dense<0.000000e+00> : vector<128x32xf32>
    %276 = tpu.matmul %275, %272, %cst_202 {dimension_numbers = #tpu.dot_dimension_numbers<[1], [0], [0], [1], [0, 0, 1, 1], [], []>} : vector<128x8xf32>, vector<8x32xf32>, vector<128x32xf32> -> vector<128x32xf32>
    %277 = vector.extract_strided_slice %276 {offsets = [0, 0], sizes = [8, 32], strides = [1, 1]} : vector<128x32xf32> to vector<8x32xf32>
    %c0_203 = arith.constant 0 : index
    %c0_204 = arith.constant 0 : index
    %278 = vector.load %arg18[%c0_203, %c0_204] : memref<8x512xf32, #tpu.memory_space<vmem>>, vector<8x32xf32>
    tpu.vector_store %arg18[%c0_203, %c0_204], %277 {strides = array<i32>} : memref<8x512xf32, #tpu.memory_space<vmem>>, vector<8x32xf32>,
    %279 = vector.extract_strided_slice %276 {offsets = [8, 0], sizes = [8, 32], strides = [1, 1]} : vector<128x32xf32> to vector<8x32xf32>
    %c0_205 = arith.constant 0 : index
    %c32_206 = arith.constant 32 : index
    %280 = vector.load %arg18[%c0_205, %c32_206] : memref<8x512xf32, #tpu.memory_space<vmem>>, vector<8x32xf32>
    tpu.vector_store %arg18[%c0_205, %c32_206], %279 {strides = array<i32>} : memref<8x512xf32, #tpu.memory_space<vmem>>, vector<8x32xf32>,
    %281 = vector.extract_strided_slice %276 {offsets = [16, 0], sizes = [8, 32], strides = [1, 1]} : vector<128x32xf32> to vector<8x32xf32>
    %c0_207 = arith.constant 0 : index
    %c64_208 = arith.constant 64 : index
    %282 = vector.load %arg18[%c0_207, %c64_208] : memref<8x512xf32, #tpu.memory_space<vmem>>, vector<8x32xf32>
    tpu.vector_store %arg18[%c0_207, %c64_208], %281 {strides = array<i32>} : memref<8x512xf32, #tpu.memory_space<vmem>>, vector<8x32xf32>,
    %283 = vector.extract_strided_slice %276 {offsets = [24, 0], sizes = [8, 32], strides = [1, 1]} : vector<128x32xf32> to vector<8x32xf32>
    %c0_209 = arith.constant 0 : index
    %c96_210 = arith.constant 96 : index
    %284 = vector.load %arg18[%c0_209, %c96_210] : memref<8x512xf32, #tpu.memory_space<vmem>>, vector<8x32xf32>
    tpu.vector_store %arg18[%c0_209, %c96_210], %283 {strides = array<i32>} : memref<8x512xf32, #tpu.memory_space<vmem>>, vector<8x32xf32>,
    %285 = vector.extract_strided_slice %276 {offsets = [32, 0], sizes = [8, 32], strides = [1, 1]} : vector<128x32xf32> to vector<8x32xf32>
    %c0_211 = arith.constant 0 : index
    %c128_212 = arith.constant 128 : index
    %286 = vector.load %arg18[%c0_211, %c128_212] : memref<8x512xf32, #tpu.memory_space<vmem>>, vector<8x32xf32>
    tpu.vector_store %arg18[%c0_211, %c128_212], %285 {strides = array<i32>} : memref<8x512xf32, #tpu.memory_space<vmem>>, vector<8x32xf32>,
    %287 = vector.extract_strided_slice %276 {offsets = [40, 0], sizes = [8, 32], strides = [1, 1]} : vector<128x32xf32> to vector<8x32xf32>
    %c0_213 = arith.constant 0 : index
    %c160_214 = arith.constant 160 : index
    %288 = vector.load %arg18[%c0_213, %c160_214] : memref<8x512xf32, #tpu.memory_space<vmem>>, vector<8x32xf32>
    tpu.vector_store %arg18[%c0_213, %c160_214], %287 {strides = array<i32>} : memref<8x512xf32, #tpu.memory_space<vmem>>, vector<8x32xf32>,
    %289 = vector.extract_strided_slice %276 {offsets = [48, 0], sizes = [8, 32], strides = [1, 1]} : vector<128x32xf32> to vector<8x32xf32>
    %c0_215 = arith.constant 0 : index
    %c192_216 = arith.constant 192 : index
    %290 = vector.load %arg18[%c0_215, %c192_216] : memref<8x512xf32, #tpu.memory_space<vmem>>, vector<8x32xf32>
    tpu.vector_store %arg18[%c0_215, %c192_216], %289 {strides = array<i32>} : memref<8x512xf32, #tpu.memory_space<vmem>>, vector<8x32xf32>,
    %291 = vector.extract_strided_slice %276 {offsets = [56, 0], sizes = [8, 32], strides = [1, 1]} : vector<128x32xf32> to vector<8x32xf32>
    %c0_217 = arith.constant 0 : index
    %c224_218 = arith.constant 224 : index
    %292 = vector.load %arg18[%c0_217, %c224_218] : memref<8x512xf32, #tpu.memory_space<vmem>>, vector<8x32xf32>
    tpu.vector_store %arg18[%c0_217, %c224_218], %291 {strides = array<i32>} : memref<8x512xf32, #tpu.memory_space<vmem>>, vector<8x32xf32>,
    %293 = vector.extract_strided_slice %276 {offsets = [64, 0], sizes = [8, 32], strides = [1, 1]} : vector<128x32xf32> to vector<8x32xf32>
    %c0_219 = arith.constant 0 : index
    %c256_220 = arith.constant 256 : index
    %294 = vector.load %arg18[%c0_219, %c256_220] : memref<8x512xf32, #tpu.memory_space<vmem>>, vector<8x32xf32>
    tpu.vector_store %arg18[%c0_219, %c256_220], %293 {strides = array<i32>} : memref<8x512xf32, #tpu.memory_space<vmem>>, vector<8x32xf32>,
    %295 = vector.extract_strided_slice %276 {offsets = [72, 0], sizes = [8, 32], strides = [1, 1]} : vector<128x32xf32> to vector<8x32xf32>
    %c0_221 = arith.constant 0 : index
    %c288_222 = arith.constant 288 : index
    %296 = vector.load %arg18[%c0_221, %c288_222] : memref<8x512xf32, #tpu.memory_space<vmem>>, vector<8x32xf32>
    tpu.vector_store %arg18[%c0_221, %c288_222], %295 {strides = array<i32>} : memref<8x512xf32, #tpu.memory_space<vmem>>, vector<8x32xf32>,
    %297 = vector.extract_strided_slice %276 {offsets = [80, 0], sizes = [8, 32], strides = [1, 1]} : vector<128x32xf32> to vector<8x32xf32>
    %c0_223 = arith.constant 0 : index
    %c320_224 = arith.constant 320 : index
    %298 = vector.load %arg18[%c0_223, %c320_224] : memref<8x512xf32, #tpu.memory_space<vmem>>, vector<8x32xf32>
    tpu.vector_store %arg18[%c0_223, %c320_224], %297 {strides = array<i32>} : memref<8x512xf32, #tpu.memory_space<vmem>>, vector<8x32xf32>,
    %299 = vector.extract_strided_slice %276 {offsets = [88, 0], sizes = [8, 32], strides = [1, 1]} : vector<128x32xf32> to vector<8x32xf32>
    %c0_225 = arith.constant 0 : index
    %c352_226 = arith.constant 352 : index
    %300 = vector.load %arg18[%c0_225, %c352_226] : memref<8x512xf32, #tpu.memory_space<vmem>>, vector<8x32xf32>
    tpu.vector_store %arg18[%c0_225, %c352_226], %299 {strides = array<i32>} : memref<8x512xf32, #tpu.memory_space<vmem>>, vector<8x32xf32>,
    %301 = vector.extract_strided_slice %276 {offsets = [96, 0], sizes = [8, 32], strides = [1, 1]} : vector<128x32xf32> to vector<8x32xf32>
    %c0_227 = arith.constant 0 : index
    %c384_228 = arith.constant 384 : index
    %302 = vector.load %arg18[%c0_227, %c384_228] : memref<8x512xf32, #tpu.memory_space<vmem>>, vector<8x32xf32>
    tpu.vector_store %arg18[%c0_227, %c384_228], %301 {strides = array<i32>} : memref<8x512xf32, #tpu.memory_space<vmem>>, vector<8x32xf32>,
    %303 = vector.extract_strided_slice %276 {offsets = [104, 0], sizes = [8, 32], strides = [1, 1]} : vector<128x32xf32> to vector<8x32xf32>
    %c0_229 = arith.constant 0 : index
    %c416_230 = arith.constant 416 : index
    %304 = vector.load %arg18[%c0_229, %c416_230] : memref<8x512xf32, #tpu.memory_space<vmem>>, vector<8x32xf32>
    tpu.vector_store %arg18[%c0_229, %c416_230], %303 {strides = array<i32>} : memref<8x512xf32, #tpu.memory_space<vmem>>, vector<8x32xf32>,
    %305 = vector.extract_strided_slice %276 {offsets = [112, 0], sizes = [8, 32], strides = [1, 1]} : vector<128x32xf32> to vector<8x32xf32>
    %c0_231 = arith.constant 0 : index
    %c448_232 = arith.constant 448 : index
    %306 = vector.load %arg18[%c0_231, %c448_232] : memref<8x512xf32, #tpu.memory_space<vmem>>, vector<8x32xf32>
    tpu.vector_store %arg18[%c0_231, %c448_232], %305 {strides = array<i32>} : memref<8x512xf32, #tpu.memory_space<vmem>>, vector<8x32xf32>,
    %307 = vector.extract_strided_slice %276 {offsets = [120, 0], sizes = [8, 32], strides = [1, 1]} : vector<128x32xf32> to vector<8x32xf32>
    %c0_233 = arith.constant 0 : index
    %c480_234 = arith.constant 480 : index
    %308 = vector.load %arg18[%c0_233, %c480_234] : memref<8x512xf32, #tpu.memory_space<vmem>>, vector<8x32xf32>
    tpu.vector_store %arg18[%c0_233, %c480_234], %307 {strides = array<i32>} : memref<8x512xf32, #tpu.memory_space<vmem>>, vector<8x32xf32>,
    %c0_235 = arith.constant 0 : index
    %c0_236 = arith.constant 0 : index
    %309 = vector.load %arg18[%c0_235, %c0_236] : memref<8x512xf32, #tpu.memory_space<vmem>>, vector<8x512xf32>
    %c0_237 = arith.constant 0 : index
    %c0_238 = arith.constant 0 : index
    %310 = vector.load %arg11[%c0_237, %c0_238] : memref<512x64xf32, #tpu.memory_space<vmem>>, vector<512x64xf32>
    %cst_239 = arith.constant dense<0.000000e+00> : vector<8x64xf32>
    %311 = tpu.matmul %309, %310, %cst_239 {dimension_numbers = #tpu.dot_dimension_numbers<[1], [0], [0], [1], [0, 0, 1, 1], [], []>} : vector<8x512xf32>, vector<512x64xf32>, vector<8x64xf32> -> vector<8x64xf32>
    %312 = arith.addf %311, %15 : vector<8x64xf32>
    %cst_240 = arith.constant 0.000000e+00 : f32
    %313 = vector.broadcast %cst_240 : f32 to vector<8x64xf32>
    %314 = arith.maximumf %312, %313 : vector<8x64xf32>
    %315 = vector.extract_strided_slice %12 {offsets = [32, 0], sizes = [8, 128], strides = [1, 1]} : vector<64x128xf32> to vector<8x128xf32>
    %c0_241 = arith.constant 0 : index
    %c0_242 = arith.constant 0 : index
    %316 = vector.load %arg9[%c0_241, %c0_242] : memref<64x128xf32, #tpu.memory_space<vmem>>, vector<64x128xf32>
    %cst_243 = arith.constant dense<0.000000e+00> : vector<8x128xf32>
    %317 = tpu.matmul %314, %316, %cst_243 {dimension_numbers = #tpu.dot_dimension_numbers<[1], [0], [0], [1], [0, 0, 1, 1], [], []>} : vector<8x64xf32>, vector<64x128xf32>, vector<8x128xf32> -> vector<8x128xf32>
    %318 = arith.addf %315, %317 : vector<8x128xf32>
    %c0_244 = arith.constant 0 : index
    %c0_245 = arith.constant 0 : index
    %319 = vector.load %arg10[%c0_244, %c0_245] : memref<32x128xf32, #tpu.memory_space<vmem>>, vector<32x128xf32>
    %cst_246 = arith.constant dense<0.000000e+00> : vector<8x128xf32>
    %320 = tpu.matmul %272, %319, %cst_246 {dimension_numbers = #tpu.dot_dimension_numbers<[1], [0], [0], [1], [0, 0, 1, 1], [], []>} : vector<8x32xf32>, vector<32x128xf32>, vector<8x128xf32> -> vector<8x128xf32>
    %321 = arith.addf %318, %320 : vector<8x128xf32>
    %322 = arith.negf %321 : vector<8x128xf32>
    %323 = math.exp %322 : vector<8x128xf32>
    %cst_247 = arith.constant 1.000000e+00 : f32
    %324 = vector.broadcast %cst_247 : f32 to vector<8x128xf32>
    %325 = arith.addf %324, %323 : vector<8x128xf32>
    %326 = arith.divf %324, %325 : vector<8x128xf32>
    %327 = vector.extract_strided_slice %326 {offsets = [0, 0], sizes = [8, 32], strides = [1, 1]} : vector<8x128xf32> to vector<8x32xf32>
    %328 = vector.extract_strided_slice %326 {offsets = [0, 32], sizes = [8, 32], strides = [1, 1]} : vector<8x128xf32> to vector<8x32xf32>
    %329 = vector.extract_strided_slice %326 {offsets = [0, 96], sizes = [8, 32], strides = [1, 1]} : vector<8x128xf32> to vector<8x32xf32>
    %330 = vector.extract_strided_slice %321 {offsets = [0, 64], sizes = [8, 32], strides = [1, 1]} : vector<8x128xf32> to vector<8x32xf32>
    %331 = math.tanh %330 : vector<8x32xf32>
    %332 = arith.mulf %328, %270 : vector<8x32xf32>
    %333 = arith.mulf %327, %331 : vector<8x32xf32>
    %334 = arith.addf %332, %333 : vector<8x32xf32>
    %335 = math.tanh %334 : vector<8x32xf32>
    %336 = arith.mulf %329, %335 : vector<8x32xf32>
    %c32_248 = arith.constant 32 : index
    %c0_249 = arith.constant 0 : index
    %337 = vector.load %arg19[%c32_248, %c0_249] : memref<64x32xf32, #tpu.memory_space<vmem>>, vector<8x32xf32>
    tpu.vector_store %arg19[%c32_248, %c0_249], %336 {strides = array<i32>} : memref<64x32xf32, #tpu.memory_space<vmem>>, vector<8x32xf32>,
    %c5 = arith.constant 5 : index
    %c0_250 = arith.constant 0 : index
    %c0_251 = arith.constant 0 : index
    %338 = vector.load %arg2[%c5, %c0_250, %c0_251] : memref<8x128x8xf32, #tpu.memory_space<vmem>>, vector<1x128x8xf32>
    %339 = vector.shape_cast %338 : vector<1x128x8xf32> to vector<128x8xf32>
    %cst_252 = arith.constant dense<0.000000e+00> : vector<128x32xf32>
    %340 = tpu.matmul %339, %336, %cst_252 {dimension_numbers = #tpu.dot_dimension_numbers<[1], [0], [0], [1], [0, 0, 1, 1], [], []>} : vector<128x8xf32>, vector<8x32xf32>, vector<128x32xf32> -> vector<128x32xf32>
    %341 = vector.extract_strided_slice %340 {offsets = [0, 0], sizes = [8, 32], strides = [1, 1]} : vector<128x32xf32> to vector<8x32xf32>
    %c0_253 = arith.constant 0 : index
    %c0_254 = arith.constant 0 : index
    %342 = vector.load %arg18[%c0_253, %c0_254] : memref<8x512xf32, #tpu.memory_space<vmem>>, vector<8x32xf32>
    tpu.vector_store %arg18[%c0_253, %c0_254], %341 {strides = array<i32>} : memref<8x512xf32, #tpu.memory_space<vmem>>, vector<8x32xf32>,
    %343 = vector.extract_strided_slice %340 {offsets = [8, 0], sizes = [8, 32], strides = [1, 1]} : vector<128x32xf32> to vector<8x32xf32>
    %c0_255 = arith.constant 0 : index
    %c32_256 = arith.constant 32 : index
    %344 = vector.load %arg18[%c0_255, %c32_256] : memref<8x512xf32, #tpu.memory_space<vmem>>, vector<8x32xf32>
    tpu.vector_store %arg18[%c0_255, %c32_256], %343 {strides = array<i32>} : memref<8x512xf32, #tpu.memory_space<vmem>>, vector<8x32xf32>,
    %345 = vector.extract_strided_slice %340 {offsets = [16, 0], sizes = [8, 32], strides = [1, 1]} : vector<128x32xf32> to vector<8x32xf32>
    %c0_257 = arith.constant 0 : index
    %c64_258 = arith.constant 64 : index
    %346 = vector.load %arg18[%c0_257, %c64_258] : memref<8x512xf32, #tpu.memory_space<vmem>>, vector<8x32xf32>
    tpu.vector_store %arg18[%c0_257, %c64_258], %345 {strides = array<i32>} : memref<8x512xf32, #tpu.memory_space<vmem>>, vector<8x32xf32>,
    %347 = vector.extract_strided_slice %340 {offsets = [24, 0], sizes = [8, 32], strides = [1, 1]} : vector<128x32xf32> to vector<8x32xf32>
    %c0_259 = arith.constant 0 : index
    %c96_260 = arith.constant 96 : index
    %348 = vector.load %arg18[%c0_259, %c96_260] : memref<8x512xf32, #tpu.memory_space<vmem>>, vector<8x32xf32>
    tpu.vector_store %arg18[%c0_259, %c96_260], %347 {strides = array<i32>} : memref<8x512xf32, #tpu.memory_space<vmem>>, vector<8x32xf32>,
    %349 = vector.extract_strided_slice %340 {offsets = [32, 0], sizes = [8, 32], strides = [1, 1]} : vector<128x32xf32> to vector<8x32xf32>
    %c0_261 = arith.constant 0 : index
    %c128_262 = arith.constant 128 : index
    %350 = vector.load %arg18[%c0_261, %c128_262] : memref<8x512xf32, #tpu.memory_space<vmem>>, vector<8x32xf32>
    tpu.vector_store %arg18[%c0_261, %c128_262], %349 {strides = array<i32>} : memref<8x512xf32, #tpu.memory_space<vmem>>, vector<8x32xf32>,
    %351 = vector.extract_strided_slice %340 {offsets = [40, 0], sizes = [8, 32], strides = [1, 1]} : vector<128x32xf32> to vector<8x32xf32>
    %c0_263 = arith.constant 0 : index
    %c160_264 = arith.constant 160 : index
    %352 = vector.load %arg18[%c0_263, %c160_264] : memref<8x512xf32, #tpu.memory_space<vmem>>, vector<8x32xf32>
    tpu.vector_store %arg18[%c0_263, %c160_264], %351 {strides = array<i32>} : memref<8x512xf32, #tpu.memory_space<vmem>>, vector<8x32xf32>,
    %353 = vector.extract_strided_slice %340 {offsets = [48, 0], sizes = [8, 32], strides = [1, 1]} : vector<128x32xf32> to vector<8x32xf32>
    %c0_265 = arith.constant 0 : index
    %c192_266 = arith.constant 192 : index
    %354 = vector.load %arg18[%c0_265, %c192_266] : memref<8x512xf32, #tpu.memory_space<vmem>>, vector<8x32xf32>
    tpu.vector_store %arg18[%c0_265, %c192_266], %353 {strides = array<i32>} : memref<8x512xf32, #tpu.memory_space<vmem>>, vector<8x32xf32>,
    %355 = vector.extract_strided_slice %340 {offsets = [56, 0], sizes = [8, 32], strides = [1, 1]} : vector<128x32xf32> to vector<8x32xf32>
    %c0_267 = arith.constant 0 : index
    %c224_268 = arith.constant 224 : index
    %356 = vector.load %arg18[%c0_267, %c224_268] : memref<8x512xf32, #tpu.memory_space<vmem>>, vector<8x32xf32>
    tpu.vector_store %arg18[%c0_267, %c224_268], %355 {strides = array<i32>} : memref<8x512xf32, #tpu.memory_space<vmem>>, vector<8x32xf32>,
    %357 = vector.extract_strided_slice %340 {offsets = [64, 0], sizes = [8, 32], strides = [1, 1]} : vector<128x32xf32> to vector<8x32xf32>
    %c0_269 = arith.constant 0 : index
    %c256_270 = arith.constant 256 : index
    %358 = vector.load %arg18[%c0_269, %c256_270] : memref<8x512xf32, #tpu.memory_space<vmem>>, vector<8x32xf32>
    tpu.vector_store %arg18[%c0_269, %c256_270], %357 {strides = array<i32>} : memref<8x512xf32, #tpu.memory_space<vmem>>, vector<8x32xf32>,
    %359 = vector.extract_strided_slice %340 {offsets = [72, 0], sizes = [8, 32], strides = [1, 1]} : vector<128x32xf32> to vector<8x32xf32>
    %c0_271 = arith.constant 0 : index
    %c288_272 = arith.constant 288 : index
    %360 = vector.load %arg18[%c0_271, %c288_272] : memref<8x512xf32, #tpu.memory_space<vmem>>, vector<8x32xf32>
    tpu.vector_store %arg18[%c0_271, %c288_272], %359 {strides = array<i32>} : memref<8x512xf32, #tpu.memory_space<vmem>>, vector<8x32xf32>,
    %361 = vector.extract_strided_slice %340 {offsets = [80, 0], sizes = [8, 32], strides = [1, 1]} : vector<128x32xf32> to vector<8x32xf32>
    %c0_273 = arith.constant 0 : index
    %c320_274 = arith.constant 320 : index
    %362 = vector.load %arg18[%c0_273, %c320_274] : memref<8x512xf32, #tpu.memory_space<vmem>>, vector<8x32xf32>
    tpu.vector_store %arg18[%c0_273, %c320_274], %361 {strides = array<i32>} : memref<8x512xf32, #tpu.memory_space<vmem>>, vector<8x32xf32>,
    %363 = vector.extract_strided_slice %340 {offsets = [88, 0], sizes = [8, 32], strides = [1, 1]} : vector<128x32xf32> to vector<8x32xf32>
    %c0_275 = arith.constant 0 : index
    %c352_276 = arith.constant 352 : index
    %364 = vector.load %arg18[%c0_275, %c352_276] : memref<8x512xf32, #tpu.memory_space<vmem>>, vector<8x32xf32>
    tpu.vector_store %arg18[%c0_275, %c352_276], %363 {strides = array<i32>} : memref<8x512xf32, #tpu.memory_space<vmem>>, vector<8x32xf32>,
    %365 = vector.extract_strided_slice %340 {offsets = [96, 0], sizes = [8, 32], strides = [1, 1]} : vector<128x32xf32> to vector<8x32xf32>
    %c0_277 = arith.constant 0 : index
    %c384_278 = arith.constant 384 : index
    %366 = vector.load %arg18[%c0_277, %c384_278] : memref<8x512xf32, #tpu.memory_space<vmem>>, vector<8x32xf32>
    tpu.vector_store %arg18[%c0_277, %c384_278], %365 {strides = array<i32>} : memref<8x512xf32, #tpu.memory_space<vmem>>, vector<8x32xf32>,
    %367 = vector.extract_strided_slice %340 {offsets = [104, 0], sizes = [8, 32], strides = [1, 1]} : vector<128x32xf32> to vector<8x32xf32>
    %c0_279 = arith.constant 0 : index
    %c416_280 = arith.constant 416 : index
    %368 = vector.load %arg18[%c0_279, %c416_280] : memref<8x512xf32, #tpu.memory_space<vmem>>, vector<8x32xf32>
    tpu.vector_store %arg18[%c0_279, %c416_280], %367 {strides = array<i32>} : memref<8x512xf32, #tpu.memory_space<vmem>>, vector<8x32xf32>,
    %369 = vector.extract_strided_slice %340 {offsets = [112, 0], sizes = [8, 32], strides = [1, 1]} : vector<128x32xf32> to vector<8x32xf32>
    %c0_281 = arith.constant 0 : index
    %c448_282 = arith.constant 448 : index
    %370 = vector.load %arg18[%c0_281, %c448_282] : memref<8x512xf32, #tpu.memory_space<vmem>>, vector<8x32xf32>
    tpu.vector_store %arg18[%c0_281, %c448_282], %369 {strides = array<i32>} : memref<8x512xf32, #tpu.memory_space<vmem>>, vector<8x32xf32>,
    %371 = vector.extract_strided_slice %340 {offsets = [120, 0], sizes = [8, 32], strides = [1, 1]} : vector<128x32xf32> to vector<8x32xf32>
    %c0_283 = arith.constant 0 : index
    %c480_284 = arith.constant 480 : index
    %372 = vector.load %arg18[%c0_283, %c480_284] : memref<8x512xf32, #tpu.memory_space<vmem>>, vector<8x32xf32>
    tpu.vector_store %arg18[%c0_283, %c480_284], %371 {strides = array<i32>} : memref<8x512xf32, #tpu.memory_space<vmem>>, vector<8x32xf32>,
    %c0_285 = arith.constant 0 : index
    %c0_286 = arith.constant 0 : index
    %373 = vector.load %arg18[%c0_285, %c0_286] : memref<8x512xf32, #tpu.memory_space<vmem>>, vector<8x512xf32>
    %c0_287 = arith.constant 0 : index
    %c0_288 = arith.constant 0 : index
    %374 = vector.load %arg11[%c0_287, %c0_288] : memref<512x64xf32, #tpu.memory_space<vmem>>, vector<512x64xf32>
    %cst_289 = arith.constant dense<0.000000e+00> : vector<8x64xf32>
    %375 = tpu.matmul %373, %374, %cst_289 {dimension_numbers = #tpu.dot_dimension_numbers<[1], [0], [0], [1], [0, 0, 1, 1], [], []>} : vector<8x512xf32>, vector<512x64xf32>, vector<8x64xf32> -> vector<8x64xf32>
    %376 = arith.addf %375, %15 : vector<8x64xf32>
    %cst_290 = arith.constant 0.000000e+00 : f32
    %377 = vector.broadcast %cst_290 : f32 to vector<8x64xf32>
    %378 = arith.maximumf %376, %377 : vector<8x64xf32>
    %379 = vector.extract_strided_slice %12 {offsets = [40, 0], sizes = [8, 128], strides = [1, 1]} : vector<64x128xf32> to vector<8x128xf32>
    %c0_291 = arith.constant 0 : index
    %c0_292 = arith.constant 0 : index
    %380 = vector.load %arg9[%c0_291, %c0_292] : memref<64x128xf32, #tpu.memory_space<vmem>>, vector<64x128xf32>
    %cst_293 = arith.constant dense<0.000000e+00> : vector<8x128xf32>
    %381 = tpu.matmul %378, %380, %cst_293 {dimension_numbers = #tpu.dot_dimension_numbers<[1], [0], [0], [1], [0, 0, 1, 1], [], []>} : vector<8x64xf32>, vector<64x128xf32>, vector<8x128xf32> -> vector<8x128xf32>
    %382 = arith.addf %379, %381 : vector<8x128xf32>
    %c0_294 = arith.constant 0 : index
    %c0_295 = arith.constant 0 : index
    %383 = vector.load %arg10[%c0_294, %c0_295] : memref<32x128xf32, #tpu.memory_space<vmem>>, vector<32x128xf32>
    %cst_296 = arith.constant dense<0.000000e+00> : vector<8x128xf32>
    %384 = tpu.matmul %336, %383, %cst_296 {dimension_numbers = #tpu.dot_dimension_numbers<[1], [0], [0], [1], [0, 0, 1, 1], [], []>} : vector<8x32xf32>, vector<32x128xf32>, vector<8x128xf32> -> vector<8x128xf32>
    %385 = arith.addf %382, %384 : vector<8x128xf32>
    %386 = arith.negf %385 : vector<8x128xf32>
    %387 = math.exp %386 : vector<8x128xf32>
    %cst_297 = arith.constant 1.000000e+00 : f32
    %388 = vector.broadcast %cst_297 : f32 to vector<8x128xf32>
    %389 = arith.addf %388, %387 : vector<8x128xf32>
    %390 = arith.divf %388, %389 : vector<8x128xf32>
    %391 = vector.extract_strided_slice %390 {offsets = [0, 0], sizes = [8, 32], strides = [1, 1]} : vector<8x128xf32> to vector<8x32xf32>
    %392 = vector.extract_strided_slice %390 {offsets = [0, 32], sizes = [8, 32], strides = [1, 1]} : vector<8x128xf32> to vector<8x32xf32>
    %393 = vector.extract_strided_slice %390 {offsets = [0, 96], sizes = [8, 32], strides = [1, 1]} : vector<8x128xf32> to vector<8x32xf32>
    %394 = vector.extract_strided_slice %385 {offsets = [0, 64], sizes = [8, 32], strides = [1, 1]} : vector<8x128xf32> to vector<8x32xf32>
    %395 = math.tanh %394 : vector<8x32xf32>
    %396 = arith.mulf %392, %334 : vector<8x32xf32>
    %397 = arith.mulf %391, %395 : vector<8x32xf32>
    %398 = arith.addf %396, %397 : vector<8x32xf32>
    %399 = math.tanh %398 : vector<8x32xf32>
    %400 = arith.mulf %393, %399 : vector<8x32xf32>
    %c40 = arith.constant 40 : index
    %c0_298 = arith.constant 0 : index
    %401 = vector.load %arg19[%c40, %c0_298] : memref<64x32xf32, #tpu.memory_space<vmem>>, vector<8x32xf32>
    tpu.vector_store %arg19[%c40, %c0_298], %400 {strides = array<i32>} : memref<64x32xf32, #tpu.memory_space<vmem>>, vector<8x32xf32>,
    %c6 = arith.constant 6 : index
    %c0_299 = arith.constant 0 : index
    %c0_300 = arith.constant 0 : index
    %402 = vector.load %arg2[%c6, %c0_299, %c0_300] : memref<8x128x8xf32, #tpu.memory_space<vmem>>, vector<1x128x8xf32>
    %403 = vector.shape_cast %402 : vector<1x128x8xf32> to vector<128x8xf32>
    %cst_301 = arith.constant dense<0.000000e+00> : vector<128x32xf32>
    %404 = tpu.matmul %403, %400, %cst_301 {dimension_numbers = #tpu.dot_dimension_numbers<[1], [0], [0], [1], [0, 0, 1, 1], [], []>} : vector<128x8xf32>, vector<8x32xf32>, vector<128x32xf32> -> vector<128x32xf32>
    %405 = vector.extract_strided_slice %404 {offsets = [0, 0], sizes = [8, 32], strides = [1, 1]} : vector<128x32xf32> to vector<8x32xf32>
    %c0_302 = arith.constant 0 : index
    %c0_303 = arith.constant 0 : index
    %406 = vector.load %arg18[%c0_302, %c0_303] : memref<8x512xf32, #tpu.memory_space<vmem>>, vector<8x32xf32>
    tpu.vector_store %arg18[%c0_302, %c0_303], %405 {strides = array<i32>} : memref<8x512xf32, #tpu.memory_space<vmem>>, vector<8x32xf32>,
    %407 = vector.extract_strided_slice %404 {offsets = [8, 0], sizes = [8, 32], strides = [1, 1]} : vector<128x32xf32> to vector<8x32xf32>
    %c0_304 = arith.constant 0 : index
    %c32_305 = arith.constant 32 : index
    %408 = vector.load %arg18[%c0_304, %c32_305] : memref<8x512xf32, #tpu.memory_space<vmem>>, vector<8x32xf32>
    tpu.vector_store %arg18[%c0_304, %c32_305], %407 {strides = array<i32>} : memref<8x512xf32, #tpu.memory_space<vmem>>, vector<8x32xf32>,
    %409 = vector.extract_strided_slice %404 {offsets = [16, 0], sizes = [8, 32], strides = [1, 1]} : vector<128x32xf32> to vector<8x32xf32>
    %c0_306 = arith.constant 0 : index
    %c64_307 = arith.constant 64 : index
    %410 = vector.load %arg18[%c0_306, %c64_307] : memref<8x512xf32, #tpu.memory_space<vmem>>, vector<8x32xf32>
    tpu.vector_store %arg18[%c0_306, %c64_307], %409 {strides = array<i32>} : memref<8x512xf32, #tpu.memory_space<vmem>>, vector<8x32xf32>,
    %411 = vector.extract_strided_slice %404 {offsets = [24, 0], sizes = [8, 32], strides = [1, 1]} : vector<128x32xf32> to vector<8x32xf32>
    %c0_308 = arith.constant 0 : index
    %c96_309 = arith.constant 96 : index
    %412 = vector.load %arg18[%c0_308, %c96_309] : memref<8x512xf32, #tpu.memory_space<vmem>>, vector<8x32xf32>
    tpu.vector_store %arg18[%c0_308, %c96_309], %411 {strides = array<i32>} : memref<8x512xf32, #tpu.memory_space<vmem>>, vector<8x32xf32>,
    %413 = vector.extract_strided_slice %404 {offsets = [32, 0], sizes = [8, 32], strides = [1, 1]} : vector<128x32xf32> to vector<8x32xf32>
    %c0_310 = arith.constant 0 : index
    %c128_311 = arith.constant 128 : index
    %414 = vector.load %arg18[%c0_310, %c128_311] : memref<8x512xf32, #tpu.memory_space<vmem>>, vector<8x32xf32>
    tpu.vector_store %arg18[%c0_310, %c128_311], %413 {strides = array<i32>} : memref<8x512xf32, #tpu.memory_space<vmem>>, vector<8x32xf32>,
    %415 = vector.extract_strided_slice %404 {offsets = [40, 0], sizes = [8, 32], strides = [1, 1]} : vector<128x32xf32> to vector<8x32xf32>
    %c0_312 = arith.constant 0 : index
    %c160_313 = arith.constant 160 : index
    %416 = vector.load %arg18[%c0_312, %c160_313] : memref<8x512xf32, #tpu.memory_space<vmem>>, vector<8x32xf32>
    tpu.vector_store %arg18[%c0_312, %c160_313], %415 {strides = array<i32>} : memref<8x512xf32, #tpu.memory_space<vmem>>, vector<8x32xf32>,
    %417 = vector.extract_strided_slice %404 {offsets = [48, 0], sizes = [8, 32], strides = [1, 1]} : vector<128x32xf32> to vector<8x32xf32>
    %c0_314 = arith.constant 0 : index
    %c192_315 = arith.constant 192 : index
    %418 = vector.load %arg18[%c0_314, %c192_315] : memref<8x512xf32, #tpu.memory_space<vmem>>, vector<8x32xf32>
    tpu.vector_store %arg18[%c0_314, %c192_315], %417 {strides = array<i32>} : memref<8x512xf32, #tpu.memory_space<vmem>>, vector<8x32xf32>,
    %419 = vector.extract_strided_slice %404 {offsets = [56, 0], sizes = [8, 32], strides = [1, 1]} : vector<128x32xf32> to vector<8x32xf32>
    %c0_316 = arith.constant 0 : index
    %c224_317 = arith.constant 224 : index
    %420 = vector.load %arg18[%c0_316, %c224_317] : memref<8x512xf32, #tpu.memory_space<vmem>>, vector<8x32xf32>
    tpu.vector_store %arg18[%c0_316, %c224_317], %419 {strides = array<i32>} : memref<8x512xf32, #tpu.memory_space<vmem>>, vector<8x32xf32>,
    %421 = vector.extract_strided_slice %404 {offsets = [64, 0], sizes = [8, 32], strides = [1, 1]} : vector<128x32xf32> to vector<8x32xf32>
    %c0_318 = arith.constant 0 : index
    %c256_319 = arith.constant 256 : index
    %422 = vector.load %arg18[%c0_318, %c256_319] : memref<8x512xf32, #tpu.memory_space<vmem>>, vector<8x32xf32>
    tpu.vector_store %arg18[%c0_318, %c256_319], %421 {strides = array<i32>} : memref<8x512xf32, #tpu.memory_space<vmem>>, vector<8x32xf32>,
    %423 = vector.extract_strided_slice %404 {offsets = [72, 0], sizes = [8, 32], strides = [1, 1]} : vector<128x32xf32> to vector<8x32xf32>
    %c0_320 = arith.constant 0 : index
    %c288_321 = arith.constant 288 : index
    %424 = vector.load %arg18[%c0_320, %c288_321] : memref<8x512xf32, #tpu.memory_space<vmem>>, vector<8x32xf32>
    tpu.vector_store %arg18[%c0_320, %c288_321], %423 {strides = array<i32>} : memref<8x512xf32, #tpu.memory_space<vmem>>, vector<8x32xf32>,
    %425 = vector.extract_strided_slice %404 {offsets = [80, 0], sizes = [8, 32], strides = [1, 1]} : vector<128x32xf32> to vector<8x32xf32>
    %c0_322 = arith.constant 0 : index
    %c320_323 = arith.constant 320 : index
    %426 = vector.load %arg18[%c0_322, %c320_323] : memref<8x512xf32, #tpu.memory_space<vmem>>, vector<8x32xf32>
    tpu.vector_store %arg18[%c0_322, %c320_323], %425 {strides = array<i32>} : memref<8x512xf32, #tpu.memory_space<vmem>>, vector<8x32xf32>,
    %427 = vector.extract_strided_slice %404 {offsets = [88, 0], sizes = [8, 32], strides = [1, 1]} : vector<128x32xf32> to vector<8x32xf32>
    %c0_324 = arith.constant 0 : index
    %c352_325 = arith.constant 352 : index
    %428 = vector.load %arg18[%c0_324, %c352_325] : memref<8x512xf32, #tpu.memory_space<vmem>>, vector<8x32xf32>
    tpu.vector_store %arg18[%c0_324, %c352_325], %427 {strides = array<i32>} : memref<8x512xf32, #tpu.memory_space<vmem>>, vector<8x32xf32>,
    %429 = vector.extract_strided_slice %404 {offsets = [96, 0], sizes = [8, 32], strides = [1, 1]} : vector<128x32xf32> to vector<8x32xf32>
    %c0_326 = arith.constant 0 : index
    %c384_327 = arith.constant 384 : index
    %430 = vector.load %arg18[%c0_326, %c384_327] : memref<8x512xf32, #tpu.memory_space<vmem>>, vector<8x32xf32>
    tpu.vector_store %arg18[%c0_326, %c384_327], %429 {strides = array<i32>} : memref<8x512xf32, #tpu.memory_space<vmem>>, vector<8x32xf32>,
    %431 = vector.extract_strided_slice %404 {offsets = [104, 0], sizes = [8, 32], strides = [1, 1]} : vector<128x32xf32> to vector<8x32xf32>
    %c0_328 = arith.constant 0 : index
    %c416_329 = arith.constant 416 : index
    %432 = vector.load %arg18[%c0_328, %c416_329] : memref<8x512xf32, #tpu.memory_space<vmem>>, vector<8x32xf32>
    tpu.vector_store %arg18[%c0_328, %c416_329], %431 {strides = array<i32>} : memref<8x512xf32, #tpu.memory_space<vmem>>, vector<8x32xf32>,
    %433 = vector.extract_strided_slice %404 {offsets = [112, 0], sizes = [8, 32], strides = [1, 1]} : vector<128x32xf32> to vector<8x32xf32>
    %c0_330 = arith.constant 0 : index
    %c448_331 = arith.constant 448 : index
    %434 = vector.load %arg18[%c0_330, %c448_331] : memref<8x512xf32, #tpu.memory_space<vmem>>, vector<8x32xf32>
    tpu.vector_store %arg18[%c0_330, %c448_331], %433 {strides = array<i32>} : memref<8x512xf32, #tpu.memory_space<vmem>>, vector<8x32xf32>,
    %435 = vector.extract_strided_slice %404 {offsets = [120, 0], sizes = [8, 32], strides = [1, 1]} : vector<128x32xf32> to vector<8x32xf32>
    %c0_332 = arith.constant 0 : index
    %c480_333 = arith.constant 480 : index
    %436 = vector.load %arg18[%c0_332, %c480_333] : memref<8x512xf32, #tpu.memory_space<vmem>>, vector<8x32xf32>
    tpu.vector_store %arg18[%c0_332, %c480_333], %435 {strides = array<i32>} : memref<8x512xf32, #tpu.memory_space<vmem>>, vector<8x32xf32>,
    %c0_334 = arith.constant 0 : index
    %c0_335 = arith.constant 0 : index
    %437 = vector.load %arg18[%c0_334, %c0_335] : memref<8x512xf32, #tpu.memory_space<vmem>>, vector<8x512xf32>
    %c0_336 = arith.constant 0 : index
    %c0_337 = arith.constant 0 : index
    %438 = vector.load %arg11[%c0_336, %c0_337] : memref<512x64xf32, #tpu.memory_space<vmem>>, vector<512x64xf32>
    %cst_338 = arith.constant dense<0.000000e+00> : vector<8x64xf32>
    %439 = tpu.matmul %437, %438, %cst_338 {dimension_numbers = #tpu.dot_dimension_numbers<[1], [0], [0], [1], [0, 0, 1, 1], [], []>} : vector<8x512xf32>, vector<512x64xf32>, vector<8x64xf32> -> vector<8x64xf32>
    %440 = arith.addf %439, %15 : vector<8x64xf32>
    %cst_339 = arith.constant 0.000000e+00 : f32
    %441 = vector.broadcast %cst_339 : f32 to vector<8x64xf32>
    %442 = arith.maximumf %440, %441 : vector<8x64xf32>
    %443 = vector.extract_strided_slice %12 {offsets = [48, 0], sizes = [8, 128], strides = [1, 1]} : vector<64x128xf32> to vector<8x128xf32>
    %c0_340 = arith.constant 0 : index
    %c0_341 = arith.constant 0 : index
    %444 = vector.load %arg9[%c0_340, %c0_341] : memref<64x128xf32, #tpu.memory_space<vmem>>, vector<64x128xf32>
    %cst_342 = arith.constant dense<0.000000e+00> : vector<8x128xf32>
    %445 = tpu.matmul %442, %444, %cst_342 {dimension_numbers = #tpu.dot_dimension_numbers<[1], [0], [0], [1], [0, 0, 1, 1], [], []>} : vector<8x64xf32>, vector<64x128xf32>, vector<8x128xf32> -> vector<8x128xf32>
    %446 = arith.addf %443, %445 : vector<8x128xf32>
    %c0_343 = arith.constant 0 : index
    %c0_344 = arith.constant 0 : index
    %447 = vector.load %arg10[%c0_343, %c0_344] : memref<32x128xf32, #tpu.memory_space<vmem>>, vector<32x128xf32>
    %cst_345 = arith.constant dense<0.000000e+00> : vector<8x128xf32>
    %448 = tpu.matmul %400, %447, %cst_345 {dimension_numbers = #tpu.dot_dimension_numbers<[1], [0], [0], [1], [0, 0, 1, 1], [], []>} : vector<8x32xf32>, vector<32x128xf32>, vector<8x128xf32> -> vector<8x128xf32>
    %449 = arith.addf %446, %448 : vector<8x128xf32>
    %450 = arith.negf %449 : vector<8x128xf32>
    %451 = math.exp %450 : vector<8x128xf32>
    %cst_346 = arith.constant 1.000000e+00 : f32
    %452 = vector.broadcast %cst_346 : f32 to vector<8x128xf32>
    %453 = arith.addf %452, %451 : vector<8x128xf32>
    %454 = arith.divf %452, %453 : vector<8x128xf32>
    %455 = vector.extract_strided_slice %454 {offsets = [0, 0], sizes = [8, 32], strides = [1, 1]} : vector<8x128xf32> to vector<8x32xf32>
    %456 = vector.extract_strided_slice %454 {offsets = [0, 32], sizes = [8, 32], strides = [1, 1]} : vector<8x128xf32> to vector<8x32xf32>
    %457 = vector.extract_strided_slice %454 {offsets = [0, 96], sizes = [8, 32], strides = [1, 1]} : vector<8x128xf32> to vector<8x32xf32>
    %458 = vector.extract_strided_slice %449 {offsets = [0, 64], sizes = [8, 32], strides = [1, 1]} : vector<8x128xf32> to vector<8x32xf32>
    %459 = math.tanh %458 : vector<8x32xf32>
    %460 = arith.mulf %456, %398 : vector<8x32xf32>
    %461 = arith.mulf %455, %459 : vector<8x32xf32>
    %462 = arith.addf %460, %461 : vector<8x32xf32>
    %463 = math.tanh %462 : vector<8x32xf32>
    %464 = arith.mulf %457, %463 : vector<8x32xf32>
    %c48 = arith.constant 48 : index
    %c0_347 = arith.constant 0 : index
    %465 = vector.load %arg19[%c48, %c0_347] : memref<64x32xf32, #tpu.memory_space<vmem>>, vector<8x32xf32>
    tpu.vector_store %arg19[%c48, %c0_347], %464 {strides = array<i32>} : memref<64x32xf32, #tpu.memory_space<vmem>>, vector<8x32xf32>,
    %c7 = arith.constant 7 : index
    %c0_348 = arith.constant 0 : index
    %c0_349 = arith.constant 0 : index
    %466 = vector.load %arg2[%c7, %c0_348, %c0_349] : memref<8x128x8xf32, #tpu.memory_space<vmem>>, vector<1x128x8xf32>
    %467 = vector.shape_cast %466 : vector<1x128x8xf32> to vector<128x8xf32>
    %cst_350 = arith.constant dense<0.000000e+00> : vector<128x32xf32>
    %468 = tpu.matmul %467, %464, %cst_350 {dimension_numbers = #tpu.dot_dimension_numbers<[1], [0], [0], [1], [0, 0, 1, 1], [], []>} : vector<128x8xf32>, vector<8x32xf32>, vector<128x32xf32> -> vector<128x32xf32>
    %469 = vector.extract_strided_slice %468 {offsets = [0, 0], sizes = [8, 32], strides = [1, 1]} : vector<128x32xf32> to vector<8x32xf32>
    %c0_351 = arith.constant 0 : index
    %c0_352 = arith.constant 0 : index
    %470 = vector.load %arg18[%c0_351, %c0_352] : memref<8x512xf32, #tpu.memory_space<vmem>>, vector<8x32xf32>
    tpu.vector_store %arg18[%c0_351, %c0_352], %469 {strides = array<i32>} : memref<8x512xf32, #tpu.memory_space<vmem>>, vector<8x32xf32>,
    %471 = vector.extract_strided_slice %468 {offsets = [8, 0], sizes = [8, 32], strides = [1, 1]} : vector<128x32xf32> to vector<8x32xf32>
    %c0_353 = arith.constant 0 : index
    %c32_354 = arith.constant 32 : index
    %472 = vector.load %arg18[%c0_353, %c32_354] : memref<8x512xf32, #tpu.memory_space<vmem>>, vector<8x32xf32>
    tpu.vector_store %arg18[%c0_353, %c32_354], %471 {strides = array<i32>} : memref<8x512xf32, #tpu.memory_space<vmem>>, vector<8x32xf32>,
    %473 = vector.extract_strided_slice %468 {offsets = [16, 0], sizes = [8, 32], strides = [1, 1]} : vector<128x32xf32> to vector<8x32xf32>
    %c0_355 = arith.constant 0 : index
    %c64_356 = arith.constant 64 : index
    %474 = vector.load %arg18[%c0_355, %c64_356] : memref<8x512xf32, #tpu.memory_space<vmem>>, vector<8x32xf32>
    tpu.vector_store %arg18[%c0_355, %c64_356], %473 {strides = array<i32>} : memref<8x512xf32, #tpu.memory_space<vmem>>, vector<8x32xf32>,
    %475 = vector.extract_strided_slice %468 {offsets = [24, 0], sizes = [8, 32], strides = [1, 1]} : vector<128x32xf32> to vector<8x32xf32>
    %c0_357 = arith.constant 0 : index
    %c96_358 = arith.constant 96 : index
    %476 = vector.load %arg18[%c0_357, %c96_358] : memref<8x512xf32, #tpu.memory_space<vmem>>, vector<8x32xf32>
    tpu.vector_store %arg18[%c0_357, %c96_358], %475 {strides = array<i32>} : memref<8x512xf32, #tpu.memory_space<vmem>>, vector<8x32xf32>,
    %477 = vector.extract_strided_slice %468 {offsets = [32, 0], sizes = [8, 32], strides = [1, 1]} : vector<128x32xf32> to vector<8x32xf32>
    %c0_359 = arith.constant 0 : index
    %c128_360 = arith.constant 128 : index
    %478 = vector.load %arg18[%c0_359, %c128_360] : memref<8x512xf32, #tpu.memory_space<vmem>>, vector<8x32xf32>
    tpu.vector_store %arg18[%c0_359, %c128_360], %477 {strides = array<i32>} : memref<8x512xf32, #tpu.memory_space<vmem>>, vector<8x32xf32>,
    %479 = vector.extract_strided_slice %468 {offsets = [40, 0], sizes = [8, 32], strides = [1, 1]} : vector<128x32xf32> to vector<8x32xf32>
    %c0_361 = arith.constant 0 : index
    %c160_362 = arith.constant 160 : index
    %480 = vector.load %arg18[%c0_361, %c160_362] : memref<8x512xf32, #tpu.memory_space<vmem>>, vector<8x32xf32>
    tpu.vector_store %arg18[%c0_361, %c160_362], %479 {strides = array<i32>} : memref<8x512xf32, #tpu.memory_space<vmem>>, vector<8x32xf32>,
    %481 = vector.extract_strided_slice %468 {offsets = [48, 0], sizes = [8, 32], strides = [1, 1]} : vector<128x32xf32> to vector<8x32xf32>
    %c0_363 = arith.constant 0 : index
    %c192_364 = arith.constant 192 : index
    %482 = vector.load %arg18[%c0_363, %c192_364] : memref<8x512xf32, #tpu.memory_space<vmem>>, vector<8x32xf32>
    tpu.vector_store %arg18[%c0_363, %c192_364], %481 {strides = array<i32>} : memref<8x512xf32, #tpu.memory_space<vmem>>, vector<8x32xf32>,
    %483 = vector.extract_strided_slice %468 {offsets = [56, 0], sizes = [8, 32], strides = [1, 1]} : vector<128x32xf32> to vector<8x32xf32>
    %c0_365 = arith.constant 0 : index
    %c224_366 = arith.constant 224 : index
    %484 = vector.load %arg18[%c0_365, %c224_366] : memref<8x512xf32, #tpu.memory_space<vmem>>, vector<8x32xf32>
    tpu.vector_store %arg18[%c0_365, %c224_366], %483 {strides = array<i32>} : memref<8x512xf32, #tpu.memory_space<vmem>>, vector<8x32xf32>,
    %485 = vector.extract_strided_slice %468 {offsets = [64, 0], sizes = [8, 32], strides = [1, 1]} : vector<128x32xf32> to vector<8x32xf32>
    %c0_367 = arith.constant 0 : index
    %c256_368 = arith.constant 256 : index
    %486 = vector.load %arg18[%c0_367, %c256_368] : memref<8x512xf32, #tpu.memory_space<vmem>>, vector<8x32xf32>
    tpu.vector_store %arg18[%c0_367, %c256_368], %485 {strides = array<i32>} : memref<8x512xf32, #tpu.memory_space<vmem>>, vector<8x32xf32>,
    %487 = vector.extract_strided_slice %468 {offsets = [72, 0], sizes = [8, 32], strides = [1, 1]} : vector<128x32xf32> to vector<8x32xf32>
    %c0_369 = arith.constant 0 : index
    %c288_370 = arith.constant 288 : index
    %488 = vector.load %arg18[%c0_369, %c288_370] : memref<8x512xf32, #tpu.memory_space<vmem>>, vector<8x32xf32>
    tpu.vector_store %arg18[%c0_369, %c288_370], %487 {strides = array<i32>} : memref<8x512xf32, #tpu.memory_space<vmem>>, vector<8x32xf32>,
    %489 = vector.extract_strided_slice %468 {offsets = [80, 0], sizes = [8, 32], strides = [1, 1]} : vector<128x32xf32> to vector<8x32xf32>
    %c0_371 = arith.constant 0 : index
    %c320_372 = arith.constant 320 : index
    %490 = vector.load %arg18[%c0_371, %c320_372] : memref<8x512xf32, #tpu.memory_space<vmem>>, vector<8x32xf32>
    tpu.vector_store %arg18[%c0_371, %c320_372], %489 {strides = array<i32>} : memref<8x512xf32, #tpu.memory_space<vmem>>, vector<8x32xf32>,
    %491 = vector.extract_strided_slice %468 {offsets = [88, 0], sizes = [8, 32], strides = [1, 1]} : vector<128x32xf32> to vector<8x32xf32>
    %c0_373 = arith.constant 0 : index
    %c352_374 = arith.constant 352 : index
    %492 = vector.load %arg18[%c0_373, %c352_374] : memref<8x512xf32, #tpu.memory_space<vmem>>, vector<8x32xf32>
    tpu.vector_store %arg18[%c0_373, %c352_374], %491 {strides = array<i32>} : memref<8x512xf32, #tpu.memory_space<vmem>>, vector<8x32xf32>,
    %493 = vector.extract_strided_slice %468 {offsets = [96, 0], sizes = [8, 32], strides = [1, 1]} : vector<128x32xf32> to vector<8x32xf32>
    %c0_375 = arith.constant 0 : index
    %c384_376 = arith.constant 384 : index
    %494 = vector.load %arg18[%c0_375, %c384_376] : memref<8x512xf32, #tpu.memory_space<vmem>>, vector<8x32xf32>
    tpu.vector_store %arg18[%c0_375, %c384_376], %493 {strides = array<i32>} : memref<8x512xf32, #tpu.memory_space<vmem>>, vector<8x32xf32>,
    %495 = vector.extract_strided_slice %468 {offsets = [104, 0], sizes = [8, 32], strides = [1, 1]} : vector<128x32xf32> to vector<8x32xf32>
    %c0_377 = arith.constant 0 : index
    %c416_378 = arith.constant 416 : index
    %496 = vector.load %arg18[%c0_377, %c416_378] : memref<8x512xf32, #tpu.memory_space<vmem>>, vector<8x32xf32>
    tpu.vector_store %arg18[%c0_377, %c416_378], %495 {strides = array<i32>} : memref<8x512xf32, #tpu.memory_space<vmem>>, vector<8x32xf32>,
    %497 = vector.extract_strided_slice %468 {offsets = [112, 0], sizes = [8, 32], strides = [1, 1]} : vector<128x32xf32> to vector<8x32xf32>
    %c0_379 = arith.constant 0 : index
    %c448_380 = arith.constant 448 : index
    %498 = vector.load %arg18[%c0_379, %c448_380] : memref<8x512xf32, #tpu.memory_space<vmem>>, vector<8x32xf32>
    tpu.vector_store %arg18[%c0_379, %c448_380], %497 {strides = array<i32>} : memref<8x512xf32, #tpu.memory_space<vmem>>, vector<8x32xf32>,
    %499 = vector.extract_strided_slice %468 {offsets = [120, 0], sizes = [8, 32], strides = [1, 1]} : vector<128x32xf32> to vector<8x32xf32>
    %c0_381 = arith.constant 0 : index
    %c480_382 = arith.constant 480 : index
    %500 = vector.load %arg18[%c0_381, %c480_382] : memref<8x512xf32, #tpu.memory_space<vmem>>, vector<8x32xf32>
    tpu.vector_store %arg18[%c0_381, %c480_382], %499 {strides = array<i32>} : memref<8x512xf32, #tpu.memory_space<vmem>>, vector<8x32xf32>,
    %c0_383 = arith.constant 0 : index
    %c0_384 = arith.constant 0 : index
    %501 = vector.load %arg18[%c0_383, %c0_384] : memref<8x512xf32, #tpu.memory_space<vmem>>, vector<8x512xf32>
    %c0_385 = arith.constant 0 : index
    %c0_386 = arith.constant 0 : index
    %502 = vector.load %arg11[%c0_385, %c0_386] : memref<512x64xf32, #tpu.memory_space<vmem>>, vector<512x64xf32>
    %cst_387 = arith.constant dense<0.000000e+00> : vector<8x64xf32>
    %503 = tpu.matmul %501, %502, %cst_387 {dimension_numbers = #tpu.dot_dimension_numbers<[1], [0], [0], [1], [0, 0, 1, 1], [], []>} : vector<8x512xf32>, vector<512x64xf32>, vector<8x64xf32> -> vector<8x64xf32>
    %504 = arith.addf %503, %15 : vector<8x64xf32>
    %cst_388 = arith.constant 0.000000e+00 : f32
    %505 = vector.broadcast %cst_388 : f32 to vector<8x64xf32>
    %506 = arith.maximumf %504, %505 : vector<8x64xf32>
    %507 = vector.extract_strided_slice %12 {offsets = [56, 0], sizes = [8, 128], strides = [1, 1]} : vector<64x128xf32> to vector<8x128xf32>
    %c0_389 = arith.constant 0 : index
    %c0_390 = arith.constant 0 : index
    %508 = vector.load %arg9[%c0_389, %c0_390] : memref<64x128xf32, #tpu.memory_space<vmem>>, vector<64x128xf32>
    %cst_391 = arith.constant dense<0.000000e+00> : vector<8x128xf32>
    %509 = tpu.matmul %506, %508, %cst_391 {dimension_numbers = #tpu.dot_dimension_numbers<[1], [0], [0], [1], [0, 0, 1, 1], [], []>} : vector<8x64xf32>, vector<64x128xf32>, vector<8x128xf32> -> vector<8x128xf32>
    %510 = arith.addf %507, %509 : vector<8x128xf32>
    %c0_392 = arith.constant 0 : index
    %c0_393 = arith.constant 0 : index
    %511 = vector.load %arg10[%c0_392, %c0_393] : memref<32x128xf32, #tpu.memory_space<vmem>>, vector<32x128xf32>
    %cst_394 = arith.constant dense<0.000000e+00> : vector<8x128xf32>
    %512 = tpu.matmul %464, %511, %cst_394 {dimension_numbers = #tpu.dot_dimension_numbers<[1], [0], [0], [1], [0, 0, 1, 1], [], []>} : vector<8x32xf32>, vector<32x128xf32>, vector<8x128xf32> -> vector<8x128xf32>
    %513 = arith.addf %510, %512 : vector<8x128xf32>
    %514 = arith.negf %513 : vector<8x128xf32>
    %515 = math.exp %514 : vector<8x128xf32>
    %cst_395 = arith.constant 1.000000e+00 : f32
    %516 = vector.broadcast %cst_395 : f32 to vector<8x128xf32>
    %517 = arith.addf %516, %515 : vector<8x128xf32>
    %518 = arith.divf %516, %517 : vector<8x128xf32>
    %519 = vector.extract_strided_slice %518 {offsets = [0, 0], sizes = [8, 32], strides = [1, 1]} : vector<8x128xf32> to vector<8x32xf32>
    %520 = vector.extract_strided_slice %518 {offsets = [0, 32], sizes = [8, 32], strides = [1, 1]} : vector<8x128xf32> to vector<8x32xf32>
    %521 = vector.extract_strided_slice %518 {offsets = [0, 96], sizes = [8, 32], strides = [1, 1]} : vector<8x128xf32> to vector<8x32xf32>
    %522 = vector.extract_strided_slice %513 {offsets = [0, 64], sizes = [8, 32], strides = [1, 1]} : vector<8x128xf32> to vector<8x32xf32>
    %523 = math.tanh %522 : vector<8x32xf32>
    %524 = arith.mulf %520, %462 : vector<8x32xf32>
    %525 = arith.mulf %519, %523 : vector<8x32xf32>
    %526 = arith.addf %524, %525 : vector<8x32xf32>
    %527 = math.tanh %526 : vector<8x32xf32>
    %528 = arith.mulf %521, %527 : vector<8x32xf32>
    %c56 = arith.constant 56 : index
    %c0_396 = arith.constant 0 : index
    %529 = vector.load %arg19[%c56, %c0_396] : memref<64x32xf32, #tpu.memory_space<vmem>>, vector<8x32xf32>
    tpu.vector_store %arg19[%c56, %c0_396], %528 {strides = array<i32>} : memref<64x32xf32, #tpu.memory_space<vmem>>, vector<8x32xf32>,
    %c0_397 = arith.constant 0 : index
    %c0_398 = arith.constant 0 : index
    %530 = vector.load %arg19[%c0_397, %c0_398] : memref<64x32xf32, #tpu.memory_space<vmem>>, vector<64x32xf32>
    %c0_399 = arith.constant 0 : index
    %c0_400 = arith.constant 0 : index
    %531 = vector.load %arg13[%c0_399, %c0_400] : memref<32x5xf32, #tpu.memory_space<vmem>>, vector<32x5xf32>
    %cst_401 = arith.constant dense<0.000000e+00> : vector<64x5xf32>
    %532 = tpu.matmul %530, %531, %cst_401 {dimension_numbers = #tpu.dot_dimension_numbers<[1], [0], [0], [1], [0, 0, 1, 1], [], []>} : vector<64x32xf32>, vector<32x5xf32>, vector<64x5xf32> -> vector<64x5xf32>
    %c0_402 = arith.constant 0 : index
    %c0_403 = arith.constant 0 : index
    %533 = vector.load %arg14[%c0_402, %c0_403] : memref<1x5xf32, #tpu.memory_space<vmem>>, vector<1x5xf32>
    %534 = vector.broadcast %533 : vector<1x5xf32> to vector<64x5xf32>
    %535 = arith.addf %532, %534 : vector<64x5xf32>
    %c0_404 = arith.constant 0 : index
    %c0_405 = arith.constant 0 : index
    %536 = vector.load %arg15[%c0_404, %c0_405] : memref<64x5xf32, #tpu.memory_space<vmem>>, vector<64x5xf32>
    tpu.vector_store %arg15[%c0_404, %c0_405], %535 {strides = array<i32>} : memref<64x5xf32, #tpu.memory_space<vmem>>, vector<64x5xf32>,
    %c0_406 = arith.constant 0 : index
    %c0_407 = arith.constant 0 : index
    %537 = vector.load %arg16[%c0_406, %c0_407] : memref<8x32xf32, #tpu.memory_space<vmem>>, vector<8x32xf32>
    tpu.vector_store %arg16[%c0_406, %c0_407], %528 {strides = array<i32>} : memref<8x32xf32, #tpu.memory_space<vmem>>, vector<8x32xf32>,
    %c0_408 = arith.constant 0 : index
    %c0_409 = arith.constant 0 : index
    %538 = vector.load %arg17[%c0_408, %c0_409] : memref<8x32xf32, #tpu.memory_space<vmem>>, vector<8x32xf32>
    tpu.vector_store %arg17[%c0_408, %c0_409], %526 {strides = array<i32>} : memref<8x32xf32, #tpu.memory_space<vmem>>, vector<8x32xf32>,
    return
  }
  func.func @transform_0(%arg0: i32) -> (i32, i32) {
    %c0_i32 = arith.constant 0 : i32
    %c0_i32_0 = arith.constant 0 : i32
    %c0_i32_1 = arith.constant 0 : i32
    return %c0_i32, %c0_i32_0 : i32, i32
  }
  func.func @transform_1(%arg0: i32) -> (i32, i32, i32) {
    %c0_i32 = arith.constant 0 : i32
    %c0_i32_0 = arith.constant 0 : i32
    %c0_i32_1 = arith.constant 0 : i32
    %c0_i32_2 = arith.constant 0 : i32
    return %c0_i32, %c0_i32_0, %c0_i32_1 : i32, i32, i32
  }
  func.func @transform_2(%arg0: i32) -> (i32, i32) {
    %c0_i32 = arith.constant 0 : i32
    %c0_i32_0 = arith.constant 0 : i32
    %c0_i32_1 = arith.constant 0 : i32
    return %c0_i32, %c0_i32_0 : i32, i32
  }
  func.func @transform_3(%arg0: i32) -> (i32, i32) {
    %c0_i32 = arith.constant 0 : i32
    %c0_i32_0 = arith.constant 0 : i32
    %c0_i32_1 = arith.constant 0 : i32
    return %c0_i32, %c0_i32_0 : i32, i32
  }
  func.func @transform_4(%arg0: i32) -> (i32, i32) {
    %c0_i32 = arith.constant 0 : i32
    %c0_i32_0 = arith.constant 0 : i32
    %c0_i32_1 = arith.constant 0 : i32
    return %c0_i32, %c0_i32_0 : i32, i32
  }
  func.func @transform_5(%arg0: i32) -> (i32, i32) {
    %c0_i32 = arith.constant 0 : i32
    %c0_i32_0 = arith.constant 0 : i32
    %c0_i32_1 = arith.constant 0 : i32
    return %c0_i32, %c0_i32_0 : i32, i32
  }
  func.func @transform_6(%arg0: i32) -> (i32, i32) {
    %c0_i32 = arith.constant 0 : i32
    %c0_i32_0 = arith.constant 0 : i32
    %c0_i32_1 = arith.constant 0 : i32
    return %c0_i32, %c0_i32_0 : i32, i32
  }
  func.func @transform_7(%arg0: i32) -> (i32, i32) {
    %c0_i32 = arith.constant 0 : i32
    %c0_i32_0 = arith.constant 0 : i32
    %c0_i32_1 = arith.constant 0 : i32
    return %c0_i32, %c0_i32_0 : i32, i32
  }
  func.func @transform_8(%arg0: i32) -> (i32, i32) {
    %c0_i32 = arith.constant 0 : i32
    %c0_i32_0 = arith.constant 0 : i32
    %c0_i32_1 = arith.constant 0 : i32
    return %c0_i32, %c0_i32_0 : i32, i32
  }
  func.func @transform_9(%arg0: i32) -> (i32, i32) {
    %c0_i32 = arith.constant 0 : i32
    %c0_i32_0 = arith.constant 0 : i32
    %c0_i32_1 = arith.constant 0 : i32
    return %c0_i32, %c0_i32_0 : i32, i32
  }
  func.func @transform_10(%arg0: i32) -> (i32, i32) {
    %c0_i32 = arith.constant 0 : i32
    %c0_i32_0 = arith.constant 0 : i32
    %c0_i32_1 = arith.constant 0 : i32
    return %c0_i32, %c0_i32_0 : i32, i32
  }
  func.func @transform_11(%arg0: i32) -> (i32, i32) {
    %c0_i32 = arith.constant 0 : i32
    %c0_i32_0 = arith.constant 0 : i32
    %c0_i32_1 = arith.constant 0 : i32
    return %c0_i32, %c0_i32_0 : i32, i32
  }
  func.func @transform_12(%arg0: i32) -> (i32, i32) {
    %c0_i32 = arith.constant 0 : i32
    %c0_i32_0 = arith.constant 0 : i32
    %c0_i32_1 = arith.constant 0 : i32
    return %c0_i32, %c0_i32_0 : i32, i32
  }
  func.func @transform_13(%arg0: i32) -> (i32, i32) {
    %c0_i32 = arith.constant 0 : i32
    %c0_i32_0 = arith.constant 0 : i32
    %c0_i32_1 = arith.constant 0 : i32
    return %c0_i32, %c0_i32_0 : i32, i32
  }
  func.func @transform_14(%arg0: i32) -> (i32, i32) {
    %c0_i32 = arith.constant 0 : i32
    %c0_i32_0 = arith.constant 0 : i32
    %c0_i32_1 = arith.constant 0 : i32
    return %c0_i32, %c0_i32_0 : i32, i32
  }
  func.func @transform_15(%arg0: i32) -> (i32, i32) {
    %c0_i32 = arith.constant 0 : i32
    %c0_i32_0 = arith.constant 0 : i32
    %c0_i32_1 = arith.constant 0 : i32
    return %c0_i32, %c0_i32_0 : i32, i32
  }
  func.func @transform_16(%arg0: i32) -> (i32, i32) {
    %c0_i32 = arith.constant 0 : i32
    %c0_i32_0 = arith.constant 0 : i32
    %c0_i32_1 = arith.constant 0 : i32
    return %c0_i32, %c0_i32_0 : i32, i32
  }
}

</mosaic_0001>

<bundles_post_ra>
// kernel: tpu_custom_call.1
= control target key start
LH: loop header
LB: loop body
LE: loop exit
PB: predicated region body
PF: predicated region fallthrough
CT: control target
= control target key end

     0   :  { %s11175_s0 = inlined_call_operand.vmem [shape: f32[64,2], index: 0, kind: input, shape index: {}]   ;;  %s11176_s1 = inlined_call_operand.vmem [shape: f32[8,128,8], index: 1, kind: input, shape index: {}]   ;;  %s11177_s2 = inlined_call_operand.vmem [shape: f32[8,32], index: 2, kind: input, shape index: {}]   ;;  %s11178_s3 = inlined_call_operand.vmem [shape: f32[8,32], index: 3, kind: input, shape index: {}]   ;;  %s11179_s4 = inlined_call_operand.vmem [shape: f32[2,64], index: 4, kind: input, shape index: {}]   ;;  %s11180_s5 = inlined_call_operand.vmem [shape: f32[1,64], index: 5, kind: input, shape index: {}]   ;;  %s11181_s6 = inlined_call_operand.vmem [shape: f32[64,128], index: 6, kind: input, shape index: {}]   ;;  %s11182_s7 = inlined_call_operand.vmem [shape: f32[1,128], index: 7, kind: input, shape index: {}]   ;;  %s11183_s8 = inlined_call_operand.vmem [shape: f32[64,128], index: 8, kind: input, shape index: {}]   ;;  %s11184_s9 = inlined_call_operand.vmem [shape: f32[32,128], index: 9, kind: input, shape index: {}]   ;;  %s11185_s10 = inlined_call_operand.vmem [shape: f32[512,64], index: 10, kind: input, shape index: {}]   ;;  %s11186_s11 = inlined_call_operand.vmem [shape: f32[1,64], index: 11, kind: input, shape index: {}]   ;;  %s11187_s12 = inlined_call_operand.vmem [shape: f32[32,5], index: 12, kind: input, shape index: {}]   ;;  %s11188_s13 = inlined_call_operand.vmem [shape: f32[1,5], index: 13, kind: input, shape index: {}]   ;;  %s11189_s14 = inlined_call_operand.vmem [shape: f32[64,5], index: 14, kind: output, shape index: {0}]   ;;  %s11190_s15 = inlined_call_operand.hbm [shape: f32[8,32], index: 15, kind: output, shape index: {1}]   ;;  %s11191_s16 = inlined_call_operand.hbm [shape: f32[8,32], index: 16, kind: output, shape index: {2}]  }
   0x1   :  { %11193 = sst [smem:[#allocation10_spill]] %s11175_s0 }
   0x2   :  { %22 = vsyncpa [#allocation5], 0  ;;  %v60_v0 = vld [vmem:[%s11179_s4] sm:$0x3]  ;;  %vm93_vm0 = vcmask 1041408   ;;  %s11194_s25 = sld [smem:[#allocation10_spill]] }
   0x3   :  { %vm68_vm1 = vcmask 15360   ;;  %7074 = vmatprep.subr.msk.mxu0 %vm93_vm0, %v60_v0  ;;  %v8492_v3 = vld [vmem:[%s11177_s2] sm:$0xff]  ;;  %v211_v10 = vld [vmem:[%s11181_s6 + $0x8] sm:$0xff]  ;;  %v212_v11 = vld [vmem:[%s11181_s6 + $0x10] sm:$0xff] }
   0x4   :  { %7075 = vmatpush3.msk.msra.mxu0 %vm93_vm0, %v60_v0  ;;  %v210_v9 = vld [vmem:[%s11181_s6] sm:$0xff]  ;;  %v213_v12 = vld [vmem:[%s11181_s6 + $0x18] sm:$0xff] }
   0x5   :  { %7116 = vmatprep.subr.mxu0 %v8492_v3  ;;  %v7584_v13 = vpack.c.bf16 %v211_v10, %v210_v9  ;;  %v7588_v14 = vpack.c.bf16 %v213_v12, %v212_v11 }
   0x8   :  { %v52_v1 = vld [vmem:[%s11194_s25] sm:$0xff]  ;;  %v53_v2 = vld [vmem:[%s11194_s25 + $0x8] sm:$0xff]  ;;  %v54_v4 = vld [vmem:[%s11194_s25 + $0x10] sm:$0xff] }
   0x9   :  { %7076 = vmatprep.mubr.msk.f32.mxu0 %vm68_vm1, %v52_v1  ;;  %v55_v5 = vld [vmem:[%s11194_s25 + $0x18] sm:$0xff]  ;;  %v56_v6 = vld [vmem:[%s11194_s25 + $0x20] sm:$0xff]  ;;  %v57_v7 = vld [vmem:[%s11194_s25 + $0x28] sm:$0xff] }
   0xa   :  { %7077 = vmatmul.mubr.msk.f32.vlgmr.msra.gmra.mrb[0].mxu0 %vm68_vm1, %v53_v2  ;;  %v58_v8 = vld [vmem:[%s11194_s25 + $0x30] sm:$0xff] }
   0xb   :  { %7079 = vmatprep.mubr.msk.f32.mxu0 %vm68_vm1, %v54_v4  ;;  %7117 = vmatpush3.msra.mxu0 %v8492_v3 }
   0xe   :  { %7080 = vmatmul.mubr.msk.f32.gmra.mrb[2].mxu0 %vm68_vm1, %v55_v5 }
   0xf   :  { %7082 = vmatprep.mubr.msk.f32.mxu0 %vm68_vm1, %v56_v6 }
  0x10   :  { %23 = vsyncpa [#allocation7], 0  ;;  %v214_v15 = vld [vmem:[%s11181_s6 + $0x20] sm:$0xff]  ;;  %v215_v16 = vld [vmem:[%s11181_s6 + $0x28] sm:$0xff]  ;;  %7585 = vmatprep.subr.bf16.mxu1 %v7584_v13  ;;  %vm380_vm2 = vcmask 64512   ;;  %vm225_vm3 = vcmask 523264  }
  0x11   :  { %v59_v17 = vld [vmem:[%s11194_s25 + $0x38] sm:$0xff]  ;;  %v364_v18 = vld [vmem:[%s11176_s1] sm:$0xff]  ;;  %7587 = vmatpush3.bf16.msra.mxu1 %v7584_v13  ;;  %v7592_v19 = vpack.c.bf16 %v215_v16, %v214_v15  ;;  %v365_v20 = vld [vmem:[%s11176_s1 + $0x8] sm:$0xff]  ;;  %vm574_vm4 = vcmask 261120   ;;  %s8387_s18 = smov 96   ;;  %s8388_s24 = smov 64  }
  0x12   :  { %7083 = vmatmul.mubr.msk.f32.gmra.mrb[4].mxu0 %vm68_vm1, %v57_v7  ;;  %7589 = vmatprep.subr.bf16.mxu1 %v7588_v14  ;;  %v366_v21 = vld [vmem:[%s11176_s1 + $0x10] sm:$0xff]  ;;  %v367_v22 = vld [vmem:[%s11176_s1 + $0x18] sm:$0xff]  ;;  %v368_v23 = vld [vmem:[%s11176_s1 + $0x20] sm:$0xff]  ;;  %vm580_vm5 = vcmask 523520   ;;  %vm586_vm6 = vcmask 785920   ;;  %vm592_vm7 = vcmask 1048320  }
  0x13   :  { %7085 = vmatprep.mubr.msk.f32.mxu0 %vm68_vm1, %v58_v8  ;;  %v369_v24 = vld [vmem:[%s11176_s1 + $0x28] sm:$0xff]  ;;  %v370_v25 = vld [vmem:[%s11176_s1 + $0x30] sm:$0xff]  ;;  %v371_v26 = vld [vmem:[%s11176_s1 + $0x38] sm:$0xff]  ;;  %vm8390_vm8 = vmmov 0   ;;  %vm5889_vm9 = vcmask 39936   ;;  %s8392_s0 = smov [#allocation4]  }
  0x14   :  { %v372_v27 = vld [vmem:[%s11176_s1 + $0x40] sm:$0xff]  ;;  %v373_v28 = vld [vmem:[%s11176_s1 + $0x48] sm:$0xff]  ;;  %v374_v29 = vld [vmem:[%s11176_s1 + $0x50] sm:$0xff]  ;;  %s5912_s17 = sshll.u32 %s8392_s0, 4  ;;  %s5913_s17 = int_to_ptr.vmem [resolvable:$true] %s5912_s17 }
  0x15   :  { %7591 = vmatpush3.bf16.msra.mxu1 %v7588_v14  ;;  %v375_v30 = vld [vmem:[%s11176_s1 + $0x58] sm:$0xff]  ;;  %v376_v31 = vld [vmem:[%s11176_s1 + $0x60] sm:$0xff]  ;;  %v377_v32 = vld [vmem:[%s11176_s1 + $0x68] sm:$0xff]  ;;  %p8343_p1 = scmp.lt.s32.totalorder %s5913_s17, %s5913_s17 }
  0x16   :  { %7086 = vmatmul.mubr.msk.f32.gmra.mrb[6].mxu0 %vm68_vm1, %v59_v17  ;;  %7593 = vmatprep.subr.bf16.mxu1 %v7592_v19  ;;  %v378_v33 = vld [vmem:[%s11176_s1 + $0x70] sm:$0xff]  ;;  %v379_v34 = vld [vmem:[%s11176_s1 + $0x78] sm:$0xff]  ;;  %v662_v38 = vld [vmem:[%s11185_s10 + $0x80] sm:$0xff] }
  0x17   :  { %7118 = vmatprep.mubr.msk.f32.mxu0 %vm380_vm2, %v364_v18  ;;  %v216_v35 = vld [vmem:[%s11181_s6 + $0x30] sm:$0xff]  ;;  %v217_v36 = vld [vmem:[%s11181_s6 + $0x38] sm:$0xff]  ;;  %v663_v39 = vld [vmem:[%s11185_s10 + $0x88] sm:$0xff] }
  0x18   :  { %v7596_v37 = vpack.c.bf16 %v217_v36, %v216_v35  ;;  %v8615_v40 = vpack.c.bf16 %v663_v39, %v662_v38  ;;  %v5936_v41 = vld [vmem:[%s11180_s5] ss:$0 sm:$0xff]  ;;  %v647_v46 = vld [vmem:[%s11185_s10 + $0x8] sm:$0xff]  ;;  %v664_v48 = vld [vmem:[%s11185_s10 + $0x90] sm:$0xff]  ;;  %s8386_s5 = smov 32  }
  0x19   :  { %7595 = vmatpush3.bf16.msra.mxu1 %v7592_v19  ;;  %v646_v45 = vld [vmem:[%s11185_s10] sm:$0xff]  ;;  %v665_v49 = vld [vmem:[%s11185_s10 + $0x98] sm:$0xff]  ;;  %v648_v57 = vld [vmem:[%s11185_s10 + $0x10] sm:$0xff] }
  0x1a   :  { %7119 = vmatmul.mubr.msk.f32.vlgmr.msra.gmra.mrb[8].mxu0 %vm380_vm2, %v365_v20  ;;  %7597 = vmatprep.subr.bf16.mxu1 %v7596_v37  ;;  %v8633_v52 = vpack.c.bf16 %v647_v46, %v646_v45  ;;  %v8635_v56 = vpack.c.bf16 %v665_v49, %v664_v48  ;;  %v649_v58 = vld [vmem:[%s11185_s10 + $0x18] sm:$0xff]  ;;  %v666_v60 = vld [vmem:[%s11185_s10 + $0xa0] sm:$0xff]  ;;  %v667_v61 = vld [vmem:[%s11185_s10 + $0xa8] sm:$0xff] }
  0x1b   :  { %7121 = vmatprep.mubr.msk.f32.mxu0 %vm380_vm2, %v366_v21  ;;  %v8652_v0 = vpack.c.bf16 %v649_v58, %v648_v57  ;;  %v8655_v5 = vpack.c.bf16 %v667_v61, %v666_v60  ;;  %v650_v6 = vld [vmem:[%s11185_s10 + $0x20] sm:$0xff]  ;;  %v651_v7 = vld [vmem:[%s11185_s10 + $0x28] sm:$0xff]  ;;  %v668_v9 = vld [vmem:[%s11185_s10 + $0xb0] sm:$0xff] }
  0x1c   :  { %v669_v10 = vld [vmem:[%s11185_s10 + $0xb8] sm:$0xff]  ;;  %v694_v11 = vld [vmem:[%s11185_s10 + $0x180] sm:$0xff]  ;;  %v695_v12 = vld [vmem:[%s11185_s10 + $0x188] sm:$0xff]  ;;  %v8678_v15 = vpack.c.bf16 %v651_v7, %v650_v6 }
  0x1d   :  { %7599 = vmatpush3.bf16.msra.mxu1 %v7596_v37  ;;  %v8680_v16 = vpack.c.bf16 %v695_v12, %v694_v11  ;;  %v678_v17 = vld [vmem:[%s11185_s10 + $0x100] sm:$0xff]  ;;  %v679_v18 = vld [vmem:[%s11185_s10 + $0x108] sm:$0xff]  ;;  %v680_v35 = vld [vmem:[%s11185_s10 + $0x110] sm:$0xff] }
  0x1e   :  { %7122 = vmatmul.mubr.msk.f32.gmra.mrb[10].mxu0 %vm380_vm2, %v367_v22  ;;  %7601 = vmatprep.subr.bf16.mxu1 %v8615_v40  ;;  %v8689_v22 = vpack.c.bf16 %v669_v10, %v668_v9  ;;  %v654_v39 = vld [vmem:[%s11185_s10 + $0x40] sm:$0xff]  ;;  %v657_v57 = vld [vmem:[%s11185_s10 + $0x58] sm:$0xff]  ;;  %v683_v58 = vld [vmem:[%s11185_s10 + $0x128] sm:$0xff] }
  0x1f   :  { %7124 = vmatprep.mubr.msk.f32.mxu0 %vm380_vm2, %v368_v23  ;;  %v652_v23 = vld [vmem:[%s11185_s10 + $0x30] sm:$0xff]  ;;  %7633 = vmatprep.subr.bf16.mxu0 %v8680_v16  ;;  %v698_v46 = vld [vmem:[%s11185_s10 + $0x1a0] sm:$0xff]  ;;  %v675_v60 = vld [vmem:[%s11185_s10 + $0xe8] sm:$0xff] }
  0x20   :  { %v684_v6 = vld [vmem:[%s11185_s10 + $0x130] sm:$0xff]  ;;  %v685_v7 = vld [vmem:[%s11185_s10 + $0x138] sm:$0xff]  ;;  %v658_v10 = vld [vmem:[%s11185_s10 + $0x60] sm:$0xff] }
  0x21   :  { %v659_v11 = vld [vmem:[%s11185_s10 + $0x68] sm:$0xff]  ;;  %v8814_v12 = vpack.c.bf16 %v685_v7, %v684_v6 }
  0x22   :  { %7125 = vmatmul.mubr.msk.f32.gmra.mrb[12].mxu0 %vm380_vm2, %v369_v24  ;;  %v653_v24 = vld [vmem:[%s11185_s10 + $0x38] sm:$0xff] }
  0x23   :  { %7127 = vmatprep.mubr.msk.f32.mxu0 %vm380_vm2, %v370_v25  ;;  %v8697_v25 = vpack.c.bf16 %v679_v18, %v678_v17  ;;  %v702_v17 = vld [vmem:[%s11185_s10 + $0x1c0] sm:$0xff]  ;;  %v703_v18 = vld [vmem:[%s11185_s10 + $0x1c8] sm:$0xff] }
  0x25   :  { %7635 = vmatpush3.bf16.msra.mxu0 %v8697_v25 }
  0x26   :  { %7128 = vmatmul.mubr.msk.f32.gmra.mrb[14].mxu0 %vm380_vm2, %v371_v26 }
  0x27   :  { %7130 = vmatprep.mubr.msk.f32.mxu0 %vm380_vm2, %v372_v27  ;;  %v670_v27 = vld [vmem:[%s11185_s10 + $0xc0] sm:$0xff] }
  0x2a   :  { %7131 = vmatmul.mubr.msk.f32.gmra.mrb[16].mxu0 %vm380_vm2, %v373_v28  ;;  %v671_v28 = vld [vmem:[%s11185_s10 + $0xc8] sm:$0xff] }
  0x2b   :  { %7133 = vmatprep.mubr.msk.f32.mxu0 %vm380_vm2, %v374_v29  ;;  %v696_v29 = vld [vmem:[%s11185_s10 + $0x190] sm:$0xff]  ;;  %v8725_v38 = vpack.c.bf16 %v671_v28, %v670_v27 }
  0x2c   :  { %v660_v28 = vld [vmem:[%s11185_s10 + $0x70] sm:$0xff] }
  0x2e   :  { %7134 = vmatmul.mubr.msk.f32.gmra.mrb[18].mxu0 %vm380_vm2, %v375_v30  ;;  %v697_v30 = vld [vmem:[%s11185_s10 + $0x198] sm:$0xff] }
  0x2f   :  { %7136 = vmatprep.mubr.msk.f32.mxu0 %vm380_vm2, %v376_v31 }
  0x32   :  { %7137 = vmatmul.mubr.msk.f32.gmra.mrb[20].mxu0 %vm380_vm2, %v377_v32 }
  0x33   :  { %7139 = vmatprep.mubr.msk.f32.mxu0 %vm380_vm2, %v378_v33  ;;  %v8716_v33 = vpack.c.bf16 %v653_v24, %v652_v23  ;;  %v686_v23 = vld [vmem:[%s11185_s10 + $0x140] sm:$0xff]  ;;  %v687_v24 = vld [vmem:[%s11185_s10 + $0x148] sm:$0xff] }
  0x36   :  { %7140 = vmatmul.mubr.msk.f32.gmra.mrb[22].mxu0 %vm380_vm2, %v379_v34  ;;  %v8718_v34 = vpack.c.bf16 %v697_v30, %v696_v29  ;;  %v661_v29 = vld [vmem:[%s11185_s10 + $0x78] sm:$0xff]  ;;  %v8852_v30 = vpack.c.bf16 %v687_v24, %v686_v23 }
  0x38   :  { %7637 = vmatprep.subr.bf16.mxu0 %v8718_v34 }
  0xdd   :  { %v7078_v42 = vpop.f32.mrb[0].mxu0 }
  0xde   :  { %v169_v43 = vadd.f32 %v7078_v42, %v5936_v41  ;;  %v163_v44 = vpop.f32.mrb[1].mxu0  ;;  %v681_v42 = vld [vmem:[%s11185_s10 + $0x118] sm:$0xff] }
  0xdf   :  { %v164_v47 = vadd.f32 %v5936_v41, %v163_v44  ;;  %v673_v44 = vld [vmem:[%s11185_s10 + $0xd8] sm:$0xff]  ;;  %v8745_v45 = vpack.c.bf16 %v681_v42, %v680_v35 }
  0xe0   :  { %v203_v53 = vmax.f32 %v169_v43, 0.0  ;;  %v672_v43 = vld [vmem:[%s11185_s10 + $0xd0] sm:$0xff] }
  0xe1   :  { %v202_v50 = vmax.f32 %v164_v47, 0.0  ;;  %v7081_v51 = vpop.f32.mrb[2].mxu0  ;;  %v699_v47 = vld [vmem:[%s11185_s10 + $0x1a8] sm:$0xff]  ;;  %7639 = vmatpush3.bf16.msra.mxu0 %v8745_v45 }
  0xe2   :  { %v179_v54 = vadd.f32 %v7081_v51, %v5936_v41  ;;  %v173_v55 = vpop.f32.mrb[3].mxu0  ;;  %v682_v51 = vld [vmem:[%s11185_s10 + $0x120] sm:$0xff] }
  0xe3   :  { %v174_v59 = vadd.f32 %v5936_v41, %v173_v55  ;;  %7104 = vmatprep.mubr.msk.f32.mxu1 %vm225_vm3, %v202_v50  ;;  %v8758_v50 = vpack.c.bf16 %v699_v47, %v698_v46  ;;  %v656_v55 = vld [vmem:[%s11185_s10 + $0x50] sm:$0xff]  ;;  %v8784_v61 = vpack.c.bf16 %v683_v58, %v682_v51  ;;  %v707_v46 = vld [vmem:[%s11185_s10 + $0x1e8] sm:$0xff]  ;;  %v690_v51 = vld [vmem:[%s11185_s10 + $0x160] sm:$0xff] }
  0xe4   :  { %7105 = vmatmul.mubr.msk.f32.vlgmr.msra.gmra.mrb[0].mxu1 %vm225_vm3, %v203_v53  ;;  %v205_v1 = vmax.f32 %v179_v54, 0.0  ;;  %v8765_v54 = vpack.c.bf16 %v673_v44, %v672_v43  ;;  %v706_v44 = vld [vmem:[%s11185_s10 + $0x1e0] sm:$0xff]  ;;  %v708_v58 = vld [vmem:[%s11185_s10 + $0x1f0] sm:$0xff] }
  0xe5   :  { %v204_v62 = vmax.f32 %v174_v59, 0.0  ;;  %v7084_v63 = vpop.f32.mrb[4].mxu0  ;;  %7603 = vmatpush3.bf16.msra.mxu1 %v8633_v52  ;;  %v674_v59 = vld [vmem:[%s11185_s10 + $0xe0] sm:$0xff]  ;;  %7641 = vmatprep.subr.bf16.mxu0 %v8758_v50 }
  0xe6   :  { %v189_v2 = vadd.f32 %v7084_v63, %v5936_v41  ;;  %v183_v4 = vpop.f32.mrb[5].mxu0  ;;  %7605 = vmatprep.subr.bf16.mxu1 %v8635_v56  ;;  %v701_v63 = vld [vmem:[%s11185_s10 + $0x1b8] sm:$0xff]  ;;  %7643 = vmatpush3.bf16.msra.mxu0 %v8784_v61  ;;  %v8806_v9 = vpack.c.bf16 %v675_v60, %v674_v59  ;;  %v692_v60 = vld [vmem:[%s11185_s10 + $0x170] sm:$0xff] }
  0xe7   :  { %v184_v8 = vadd.f32 %v5936_v41, %v183_v4  ;;  %7107 = vmatprep.mubr.msk.f32.mxu1 %vm225_vm3, %v204_v62  ;;  %v700_v62 = vld [vmem:[%s11185_s10 + $0x1b0] sm:$0xff]  ;;  %v709_v59 = vld [vmem:[%s11185_s10 + $0x1f8] sm:$0xff] }
  0xe8   :  { %7108 = vmatmul.mubr.msk.f32.gmra.mrb[2].mxu1 %vm225_vm3, %v205_v1  ;;  %v207_v19 = vmax.f32 %v189_v2, 0.0  ;;  %v8793_v2 = vpack.c.bf16 %v657_v57, %v656_v55  ;;  %v8796_v4 = vpack.c.bf16 %v701_v63, %v700_v62  ;;  %v8909_v62 = vpack.c.bf16 %v709_v59, %v708_v58  ;;  %v693_v63 = vld [vmem:[%s11185_s10 + $0x178] sm:$0xff] }
  0xe9   :  { %v206_v13 = vmax.f32 %v184_v8, 0.0  ;;  %v7087_v14 = vpop.f32.mrb[6].mxu0  ;;  %7607 = vmatpush3.bf16.msra.mxu1 %v8652_v0  ;;  %v8915_v6 = vpack.c.bf16 %v693_v63, %v692_v60 }
  0xea   :  { %v199_v20 = vadd.f32 %v7087_v14, %v5936_v41  ;;  %v193_v21 = vpop.f32.mrb[7].mxu0  ;;  %7609 = vmatprep.subr.bf16.mxu1 %v8655_v5  ;;  %v677_v14 = vld [vmem:[%s11185_s10 + $0xf8] sm:$0xff]  ;;  %7645 = vmatprep.subr.bf16.mxu0 %v8796_v4 }
  0xeb   :  { %v194_v26 = vadd.f32 %v5936_v41, %v193_v21  ;;  %7110 = vmatprep.mubr.msk.f32.mxu1 %vm225_vm3, %v206_v13  ;;  %v655_v41 = vld [vmem:[%s11185_s10 + $0x48] sm:$0xff]  ;;  %v676_v13 = vld [vmem:[%s11185_s10 + $0xf0] sm:$0xff]  ;;  %7647 = vmatpush3.bf16.msra.mxu0 %v8814_v12  ;;  %v8834_v21 = vpack.c.bf16 %v703_v18, %v702_v17 }
  0xec   :  { %7111 = vmatmul.mubr.msk.f32.gmra.mrb[4].mxu1 %vm225_vm3, %v207_v19  ;;  %v209_v36 = vmax.f32 %v199_v20, 0.0  ;;  %v8755_v49 = vpack.c.bf16 %v655_v41, %v654_v39  ;;  %v8831_v20 = vpack.c.bf16 %v659_v11, %v658_v10  ;;  %v8844_v27 = vpack.c.bf16 %v677_v14, %v676_v13  ;;  %v688_v39 = vld [vmem:[%s11185_s10 + $0x150] sm:$0xff]  ;;  %v689_v41 = vld [vmem:[%s11185_s10 + $0x158] sm:$0xff] }
  0xed   :  { %v208_v31 = vmax.f32 %v194_v26, 0.0  ;;  %v7120_v32 = vpop.f32.mrb[8].mxu0  ;;  %7611 = vmatpush3.bf16.msra.mxu1 %v8678_v15  ;;  %7649 = vmatprep.subr.bf16.mxu0 %v8834_v21  ;;  %v8875_v43 = vpack.c.bf16 %v689_v41, %v688_v39 }
  0xee   :  { %577 = vrot.lane.b32.xlu0 %v7120_v32, %s8386_s5  ;;  %v495_v37 = vpop.f32.mrb[9].mxu0  ;;  %7613 = vmatprep.subr.bf16.mxu1 %v8689_v22  ;;  %v705_v32 = vld [vmem:[%s11185_s10 + $0x1d8] sm:$0xff] }
  0xef   :  { %575 = vst.msk [vmem:[#allocation2] sm:$0xff] %vm574_vm4, %v495_v37  ;;  %7113 = vmatprep.mubr.msk.f32.mxu1 %vm225_vm3, %v208_v31  ;;  %v704_v31 = vld [vmem:[%s11185_s10 + $0x1d0] sm:$0xff]  ;;  %7651 = vmatpush3.bf16.msra.mxu0 %v8852_v30 }
  0xf0   :  { %7114 = vmatmul.mubr.msk.f32.gmra.mrb[6].mxu1 %vm225_vm3, %v209_v36  ;;  %v8863_v36 = vpack.c.bf16 %v661_v29, %v660_v28  ;;  %v8866_v37 = vpack.c.bf16 %v705_v32, %v704_v31 }
  0xf1   :  { %v7123_v48 = vpop.f32.mrb[10].mxu0  ;;  %7615 = vmatpush3.bf16.msra.mxu1 %v8716_v33 }
  0xf2   :  { %589 = vrot.lane.b32.xlu0 %v7123_v48, %s8387_s18  ;;  %v505_v53 = vpop.f32.mrb[11].mxu0  ;;  %7617 = vmatprep.subr.bf16.mxu1 %v8725_v38  ;;  %v8888_v48 = vpack.c.bf16 %v707_v46, %v706_v44 }
  0xf3   :  { %583 = vrot.lane.b32.xlu1 %v505_v53, %s8388_s24  ;;  %7653 = vmatprep.subr.bf16.mxu0 %v8866_v37  ;;  %v691_v53 = vld [vmem:[%s11185_s10 + $0x168] sm:$0xff] }
  0xf4   :  { %7655 = vmatpush3.bf16.msra.mxu0 %v8875_v43  ;;  %v8896_v57 = vpack.c.bf16 %v691_v53, %v690_v51 }
  0xf5   :  { %v7126_v1 = vpop.f32.mrb[12].mxu0  ;;  %7619 = vmatpush3.bf16.msra.mxu1 %v8755_v49  ;;  %7657 = vmatprep.subr.bf16.mxu0 %v8888_v48 }
  0xf6   :  { %596 = vrot.lane.b32.xlu0 %v7126_v1, %s8386_s5  ;;  %v515_v8 = vpop.f32.mrb[13].mxu0  ;;  %7621 = vmatprep.subr.bf16.mxu1 %v8765_v54 }
  0xf7   :  { %594 = vst.msk [vmem:[#allocation2 + $0x8] sm:$0xff] %vm574_vm4, %v515_v8 }
  0xf8   :  { %7659 = vmatpush3.bf16.msra.mxu0 %v8896_v57 }
  0xf9   :  { %v7129_v19 = vpop.f32.mrb[14].mxu0  ;;  %7623 = vmatpush3.bf16.msra.mxu1 %v8793_v2  ;;  %7661 = vmatprep.subr.bf16.mxu0 %v8909_v62 }
  0xfa   :  { %606 = vrot.lane.b32.xlu0 %v7129_v19, %s8387_s18  ;;  %v525_v26 = vpop.f32.mrb[15].mxu0  ;;  %7625 = vmatprep.subr.bf16.mxu1 %v8806_v9 }
  0xfb   :  { %601 = vrot.lane.b32.xlu1 %v525_v26, %s8388_s24 }
  0xfc   :  { %7663 = vmatpush3.bf16.msra.mxu0 %v8915_v6 }
  0xfd   :  { %v7132_v35 = vpop.f32.mrb[16].mxu0  ;;  %7627 = vmatpush3.bf16.msra.mxu1 %v8831_v20 }
  0xfe   :  { %v535_v42 = vpop.f32.mrb[17].mxu0  ;;  %7629 = vmatprep.subr.bf16.mxu1 %v8844_v27 }
  0xff   :  { %610 = vst.msk [vmem:[#allocation2 + $0x10] sm:$0xff] %vm574_vm4, %v535_v42  ;;  %612 = vrot.lane.b32.xlu1 %v7132_v35, %s8386_s5  ;;  %v8939_v42 = vld [vmem:[%s11182_s7] ss:$0 sm:$0xff] }
 0x101   :  { %v7135_v47 = vpop.f32.mrb[18].mxu0  ;;  %7631 = vmatpush3.bf16.msra.mxu1 %v8863_v36 }
 0x102   :  { %v545_v55 = vpop.f32.mrb[19].mxu0 }
 0x103   :  { %617 = vrot.lane.b32.xlu1 %v545_v55, %s8388_s24 }
 0x105   :  { %v7138_v1 = vpop.f32.mrb[20].mxu0 }
 0x106   :  { %v555_v7 = vpop.f32.mrb[21].mxu0 }
 0x107   :  { %626 = vst.msk [vmem:[#allocation2 + $0x18] sm:$0xff] %vm574_vm4, %v555_v7  ;;  %628 = vrot.lane.b32.xlu1 %v7138_v1, %s8386_s5 }
 0x109   :  { %v7141_v8 = vpop.f32.mrb[22].mxu0 }
 0x10a   :  { %v565_v10 = vpop.f32.mrb[23].mxu0 }
 0x10b   :  { %622 = vrot.lane.b32.xlu1 %v7135_v47, %s8387_s18  ;;  %633 = vrot.lane.b32.xlu0 %v565_v10, %s8388_s24 }
 0x10f   :  { %638 = vrot.lane.b32.xlu0 %v7141_v8, %s8387_s18 }
 0x160   :  { %v578_v11 = vpop.permute.xlu0 %577 }
 0x161   :  { %581 = vst.msk [vmem:[#allocation2] sm:$0xff] %vm580_vm5, %v578_v11 }
 0x164   :  { %v590_v13 = vpop.permute.xlu0 %589 }
 0x165   :  { %v584_v14 = vpop.permute.xlu1 %583 }
 0x166   :  { %587 = vst.msk [vmem:[#allocation2] sm:$0xff] %vm586_vm6, %v584_v14  ;;  %v852_v14 = vld [vmem:[%s11183_s8 + $0x8] sm:$0xff] }
 0x167   :  { %593 = vst.msk [vmem:[#allocation2] sm:$0xff] %vm592_vm7, %v590_v13  ;;  %v851_v13 = vld [vmem:[%s11183_s8] sm:$0xff] }
 0x168   :  { %v597_v17 = vpop.permute.xlu0 %596 }
 0x169   :  { %599 = vst.msk [vmem:[#allocation2 + $0x8] sm:$0xff] %vm580_vm5, %v597_v17  ;;  %v853_v17 = vld [vmem:[%s11183_s8 + $0x10] sm:$0xff] }
 0x16c   :  { %v607_v19 = vpop.permute.xlu0 %606 }
 0x16d   :  { %v602_v18 = vpop.permute.xlu1 %601 }
 0x16e   :  { %604 = vst.msk [vmem:[#allocation2 + $0x8] sm:$0xff] %vm586_vm6, %v602_v18  ;;  %v642_v28 = vld [vmem:[#allocation2] sm:$0xff]  ;;  %v8389_v18 = vmov 0.0|0.0  }
 0x16f   :  { %609 = vst.msk [vmem:[#allocation2 + $0x8] sm:$0xff] %vm592_vm7, %v607_v19  ;;  %7664 = vmatprep.subr.bf16.mxu1 %v8389_v18  ;;  %v8974_v19 = vpack.c.bf16 %v852_v14, %v851_v13  ;;  %7676 = vmatprep.subr.bf16.mxu0 %v8389_v18  ;;  %v9038_v14 = vld [vmem:[%s11186_s11] ss:$0 sm:$0xff] }
 0x171   :  { %v613_v23 = vpop.permute.xlu1 %612 }
 0x172   :  { %615 = vst.msk [vmem:[#allocation2 + $0x10] sm:$0xff] %vm580_vm5, %v613_v23  ;;  %v854_v23 = vld [vmem:[%s11183_s8 + $0x18] sm:$0xff] }
 0x175   :  { %v618_v24 = vpop.permute.xlu1 %617 }
 0x176   :  { %620 = vst.msk [vmem:[#allocation2 + $0x10] sm:$0xff] %vm586_vm6, %v618_v24  ;;  %v643_v26 = vld [vmem:[#allocation2 + $0x8] sm:$0xff]  ;;  %v8981_v24 = vpack.c.bf16 %v854_v23, %v853_v17 }
 0x177   :  { %774 = vmatprep.mubr.f32.mxu1 %v643_v26  ;;  %v855_v26 = vld [vmem:[%s11183_s8 + $0x20] sm:$0xff] }
 0x178   :  { %775 = vmatmul.mubr.f32.vlgmr.msra.gmra.mrb[8].mxu1 %v642_v28  ;;  %v856_v28 = vld [vmem:[%s11183_s8 + $0x28] sm:$0xff] }
 0x179   :  { %v629_v29 = vpop.permute.xlu1 %628  ;;  %7666 = vmatpush3.bf16.msra.mxu1 %v8974_v19 }
 0x17a   :  { %631 = vst.msk [vmem:[#allocation2 + $0x18] sm:$0xff] %vm580_vm5, %v629_v29  ;;  %7667 = vmatprep.subr.bf16.mxu1 %v8389_v18  ;;  %v8992_v29 = vpack.c.bf16 %v856_v28, %v855_v26 }
 0x17d   :  { %v623_v31 = vpop.permute.xlu1 %622  ;;  %v634_v32 = vpop.permute.xlu0 %633  ;;  %7669 = vmatpush3.bf16.msra.mxu1 %v8981_v24 }
 0x17e   :  { %625 = vst.msk [vmem:[#allocation2 + $0x10] sm:$0xff] %vm592_vm7, %v623_v31  ;;  %7670 = vmatprep.subr.bf16.mxu1 %v8389_v18  ;;  %v933_v31 = vld [vmem:[%s11184_s9] sm:$0xff] }
 0x17f   :  { %636 = vst.msk [vmem:[#allocation2 + $0x18] sm:$0xff] %vm586_vm6, %v634_v32  ;;  %v934_v32 = vld [vmem:[%s11184_s9 + $0x8] sm:$0xff] }
 0x181   :  { %v639_v35 = vpop.permute.xlu0 %638  ;;  %7672 = vmatpush3.bf16.msra.mxu1 %v8992_v29 }
 0x182   :  { %641 = vst.msk [vmem:[#allocation2 + $0x18] sm:$0xff] %vm592_vm7, %v639_v35  ;;  %v9000_v35 = vpack.c.bf16 %v934_v32, %v933_v31  ;;  %7673 = vmatprep.subr.bf16.mxu1 %v8389_v18 }
 0x185   :  { %v644_v41 = vld [vmem:[#allocation2 + $0x10] sm:$0xff] }
 0x189   :  { %v645_v39 = vld [vmem:[#allocation2 + $0x18] sm:$0xff] }
 0x18a   :  { %844 = vmatprep.mubr.f32.mxu0 %v645_v39  ;;  %v857_v39 = vld [vmem:[%s11183_s8 + $0x30] sm:$0xff] }
 0x18b   :  { %845 = vmatmul.mubr.f32.vlgmr.msra.gmra.mrb[24].mxu0 %v644_v41  ;;  %v858_v41 = vld [vmem:[%s11183_s8 + $0x38] sm:$0xff] }
 0x18c   :  { %7678 = vmatpush3.bf16.msra.mxu0 %v9000_v35 }
 0x18d   :  { %7679 = vmatprep.subr.bf16.mxu0 %v8389_v18 }
 0x1b7   :  { %v7106_v44 = vpop.f32.mrb[0].mxu1 }
 0x1b8   :  { %v8942_v46 = vadd.f32 %v7106_v44, %v8939_v42  ;;  %v8944_v47 = vpop.f32.mrb[1].mxu1  ;;  %v9011_v44 = vpack.c.bf16 %v858_v41, %v857_v39  ;;  %v5975_v41 = vld [vmem:[%s11176_s1 + $0x80] sm:$0xff] }
 0x1ba   :  { %7675 = vmatpush3.bf16.msra.mxu1 %v9011_v44 }
 0x1bb   :  { %v7109_v51 = vpop.f32.mrb[2].mxu1  ;;  %7715 = vmatprep.subr.bf16.mxu1 %v8680_v16 }
 0x1bc   :  { %v8947_v53 = vadd.f32 %v7109_v51, %v8939_v42  ;;  %v326_v55 = vpop.f32.mrb[3].mxu1  ;;  %v935_v51 = vld [vmem:[%s11184_s9 + $0x10] sm:$0xff] }
 0x1bd   :  { %v8950_v58 = vadd.f32 %v8939_v42, %v326_v55  ;;  %v936_v55 = vld [vmem:[%s11184_s9 + $0x18] sm:$0xff] }
 0x1bf   :  { %v7112_v59 = vpop.f32.mrb[4].mxu1 }
 0x1c0   :  { %v8953_v60 = vadd.f32 %v7112_v59, %v8939_v42  ;;  %v336_v63 = vpop.f32.mrb[5].mxu1  ;;  %v9020_v59 = vpack.c.bf16 %v936_v55, %v935_v51 }
 0x1c1   :  { %v8956_v1 = vadd.f32 %v8939_v42, %v336_v63  ;;  %v8391_v63 = vmov 0.0  }
 0x1c2   :  { %7681 = vmatpush3.bf16.msra.mxu0 %v9020_v59  ;;  %7158 = vmatprep.mubr.msk.f32.mxu1 %vm8390_vm8, %v8391_v63 }
 0x1c3   :  { %v7115_v7 = vpop.f32.mrb[6].mxu1  ;;  %7169 = vmatprep.mubr.msk.f32.mxu0 %vm8390_vm8, %v8391_v63 }
 0x1c4   :  { %v8959_v8 = vadd.f32 %v7115_v7, %v8939_v42  ;;  %v346_v10 = vpop.f32.mrb[7].mxu1  ;;  %v363_v7 = vld [vmem:[%s11178_s3] sm:$0xff] }
 0x1c5   :  { %v8962_v11 = vadd.f32 %v8939_v42, %v346_v10  ;;  %7170 = vmatmul.mubr.msk.f32.vlgmr.msra.gmra.mrb[26].mxu0 %vm574_vm4, %v8492_v3  ;;  %1019 = vrot.lane.b32.xlu1 %v363_v7, %s8386_s5 }
 0x1c6   :  { %7174 = vmatprep.mubr.msk.f32.mxu0 %vm380_vm2, %v5975_v41 }
 0x24b   :  { %v6303_v10 = vpop.f32.mrb[8].mxu1 }
 0x24c   :  { %v6304_v13 = vpop.f32.mrb[9].mxu1 }
 0x24d   :  { %v6305_v16 = vadd.f32 %v6304_v13, %v6303_v10  ;;  %v5976_v10 = vld [vmem:[%s11176_s1 + $0x88] sm:$0xff]  ;;  %v5977_v13 = vld [vmem:[%s11176_s1 + $0x90] sm:$0xff] }
 0x24f   :  { %v777_v26 = vadd.f32 %v6305_v16, %v9038_v14  ;;  %v5978_v16 = vld [vmem:[%s11176_s1 + $0x98] sm:$0xff] }
 0x25e   :  { %v6338_v17 = vpop.f32.mrb[24].mxu0 }
 0x25f   :  { %v6339_v23 = vpop.f32.mrb[25].mxu0 }
 0x260   :  { %v6340_v28 = vadd.f32 %v6339_v23, %v6338_v17  ;;  %v5979_v17 = vld [vmem:[%s11176_s1 + $0xa0] sm:$0xff] }
 0x262   :  { %v847_v31 = vadd.f32 %v6340_v28, %v777_v26 }
 0x264   :  { %v850_v32 = vmax.f32 %v847_v31, 0.0 }
 0x266   :  { %7159 = vmatmul.mubr.msk.f32.vlgmr.msra.gmra.mrb[10].mxu1 %vm225_vm3, %v850_v32 }
 0x267   :  { %7717 = vmatpush3.bf16.msra.mxu1 %v8697_v25 }
 0x268   :  { %7719 = vmatprep.subr.bf16.mxu1 %v8718_v34  ;;  %v317_v34 = vadd.f32 %v8939_v42, %v8944_v47 }
 0x26b   :  { %7721 = vmatpush3.bf16.msra.mxu1 %v8745_v45 }
 0x26c   :  { %7723 = vmatprep.subr.bf16.mxu1 %v8758_v50 }
 0x26f   :  { %7725 = vmatpush3.bf16.msra.mxu1 %v8784_v61 }
 0x270   :  { %7727 = vmatprep.subr.bf16.mxu1 %v8796_v4 }
 0x273   :  { %7729 = vmatpush3.bf16.msra.mxu1 %v8814_v12 }
 0x274   :  { %7731 = vmatprep.subr.bf16.mxu1 %v8834_v21 }
 0x277   :  { %7733 = vmatpush3.bf16.msra.mxu1 %v8852_v30 }
 0x278   :  { %7735 = vmatprep.subr.bf16.mxu1 %v8866_v37 }
 0x27b   :  { %7737 = vmatpush3.bf16.msra.mxu1 %v8875_v43 }
 0x27c   :  { %7739 = vmatprep.subr.bf16.mxu1 %v8888_v48 }
 0x27f   :  { %7741 = vmatpush3.bf16.msra.mxu1 %v8896_v57 }
 0x280   :  { %7743 = vmatprep.subr.bf16.mxu1 %v8909_v62  ;;  %v1020_v62 = vpop.permute.xlu1 %1019 }
 0x283   :  { %7745 = vmatpush3.bf16.msra.mxu1 %v8915_v6 }
 0x298   :  { %v1006_v3 = vpop.f32.mrb[26].mxu0 }
 0x299   :  { %v7171_v25 = vpop.f32.mrb[27].mxu0 }
 0x339   :  { %v928_v45 = vpop.f32.mrb[10].mxu1 }
 0x33a   :  { %v932_v50 = vadd.f32 %v928_v45, %v317_v34  ;;  %v7160_v61 = vpop.f32.mrb[11].mxu1 }
 0x33c   :  { %v1010_v4 = vadd.f32 %v1006_v3, %v932_v50 }
 0x33e   :  { %8272 = vtanh.f32 %v1010_v4  ;;  %v5974_v21 = vmul.f32 -1.442695, %v1010_v4 }
 0x340   :  { %8274 = vpow2.f32 %v5974_v21 }
 0x348   :  { %v8273_v12 = vpop.eup %8272 }
 0x349   :  { %1024 = vrot.lane.b32.xlu0 %v8273_v12, %s8388_s24 }
 0x34a   :  { %v8275_v30 = vpop.eup %8274 }
 0x34b   :  { %v1014_v37 = vadd.f32 1.0, %v8275_v30 }
 0x34d   :  { %8276 = vrcp.f32 %v1014_v37 }
 0x357   :  { %v8277_v43 = vpop.eup %8276 }
 0x358   :  { %v1022_v6 = vmul.f32 %v8277_v43, %v1020_v62 }
 0x3bb   :  { %v1025_v48 = vpop.permute.xlu0 %1024 }
 0x3bc   :  { %v1027_v57 = vmul.f32 %v8277_v43, %v1025_v48 }
 0x3be   :  { %1029 = vrot.lane.b32.xlu0 %v1027_v57, %s8386_s5 }
 0x430   :  { %v1030_v42 = vpop.permute.xlu0 %1029 }
 0x431   :  { %v9061_v47 = vadd.f32 %v1030_v42, %v1022_v6 }
 0x433   :  { %8278 = vtanh.f32 %v9061_v47 }
 0x43d   :  { %v8279_v39 = vpop.eup %8278 }
 0x43e   :  { %1035 = vrot.lane.b32.xlu1 %v8279_v39, %s8388_s24 }
 0x4b0   :  { %v1036_v51 = vpop.permute.xlu1 %1035 }
 0x4b1   :  { %v1038_v55 = vmul.f32 %v8277_v43, %v1036_v51 }
 0x4b3   :  { %1040 = vrot.lane.b32.xlu0 %v1038_v55, %s8386_s5 }
 0x525   :  { %v9070_v7 = vpop.permute.xlu0 %1040 }
 0x526   :  { %1043 = vst.msk [vmem:[#allocation3] sm:$0xff] %vm574_vm4, %v9070_v7  ;;  %7172 = vmatprep.subr.mxu0 %v9070_v7 }
 0x527   :  { %7173 = vmatpush3.msra.mxu0 %v9070_v7 }
 0x528   :  { %7175 = vmatmul.mubr.msk.f32.vlgmr.msra.gmra.mrb[28].mxu0 %vm380_vm2, %v5976_v10  ;;  %7683 = vmatprep.subr.bf16.mxu0 %v8615_v40  ;;  %v5980_v40 = vld [vmem:[%s11176_s1 + $0xa8] sm:$0xff] }
 0x529   :  { %7177 = vmatprep.mubr.msk.f32.mxu0 %vm380_vm2, %v5977_v13  ;;  %7685 = vmatpush3.bf16.msra.mxu0 %v8633_v52  ;;  %v5981_v52 = vld [vmem:[%s11176_s1 + $0xb0] sm:$0xff] }
 0x52a   :  { %7687 = vmatprep.subr.bf16.mxu0 %v8635_v56  ;;  %v5982_v56 = vld [vmem:[%s11176_s1 + $0xb8] sm:$0xff] }
 0x52c   :  { %7178 = vmatmul.mubr.msk.f32.gmra.mrb[30].mxu0 %vm380_vm2, %v5978_v16 }
 0x52d   :  { %7180 = vmatprep.mubr.msk.f32.mxu0 %vm380_vm2, %v5979_v17  ;;  %7689 = vmatpush3.bf16.msra.mxu0 %v8652_v0  ;;  %v5983_v0 = vld [vmem:[%s11176_s1 + $0xc0] sm:$0xff] }
 0x52e   :  { %7691 = vmatprep.subr.bf16.mxu0 %v8655_v5  ;;  %v5984_v5 = vld [vmem:[%s11176_s1 + $0xc8] sm:$0xff] }
 0x530   :  { %7181 = vmatmul.mubr.msk.f32.gmra.mrb[32].mxu0 %vm380_vm2, %v5980_v40 }
 0x531   :  { %7183 = vmatprep.mubr.msk.f32.mxu0 %vm380_vm2, %v5981_v52  ;;  %7693 = vmatpush3.bf16.msra.mxu0 %v8678_v15  ;;  %v5985_v15 = vld [vmem:[%s11176_s1 + $0xd0] sm:$0xff] }
 0x532   :  { %7695 = vmatprep.subr.bf16.mxu0 %v8689_v22  ;;  %v5986_v22 = vld [vmem:[%s11176_s1 + $0xd8] sm:$0xff] }
 0x534   :  { %7184 = vmatmul.mubr.msk.f32.gmra.mrb[34].mxu0 %vm380_vm2, %v5982_v56 }
 0x535   :  { %7186 = vmatprep.mubr.msk.f32.mxu0 %vm380_vm2, %v5983_v0  ;;  %7697 = vmatpush3.bf16.msra.mxu0 %v8716_v33  ;;  %v5987_v33 = vld [vmem:[%s11176_s1 + $0xe0] sm:$0xff] }
 0x536   :  { %7699 = vmatprep.subr.bf16.mxu0 %v8725_v38  ;;  %v5988_v38 = vld [vmem:[%s11176_s1 + $0xe8] sm:$0xff] }
 0x538   :  { %7187 = vmatmul.mubr.msk.f32.gmra.mrb[36].mxu0 %vm380_vm2, %v5984_v5 }
 0x539   :  { %7189 = vmatprep.mubr.msk.f32.mxu0 %vm380_vm2, %v5985_v15  ;;  %7701 = vmatpush3.bf16.msra.mxu0 %v8755_v49  ;;  %v5989_v49 = vld [vmem:[%s11176_s1 + $0xf0] sm:$0xff] }
 0x53a   :  { %7703 = vmatprep.subr.bf16.mxu0 %v8765_v54  ;;  %v5990_v54 = vld [vmem:[%s11176_s1 + $0xf8] sm:$0xff] }
 0x53c   :  { %7190 = vmatmul.mubr.msk.f32.gmra.mrb[38].mxu0 %vm380_vm2, %v5986_v22 }
 0x53d   :  { %7192 = vmatprep.mubr.msk.f32.mxu0 %vm380_vm2, %v5987_v33  ;;  %7705 = vmatpush3.bf16.msra.mxu0 %v8793_v2 }
 0x53e   :  { %7707 = vmatprep.subr.bf16.mxu0 %v8806_v9 }
 0x540   :  { %7193 = vmatmul.mubr.msk.f32.gmra.mrb[40].mxu0 %vm380_vm2, %v5988_v38 }
 0x541   :  { %7195 = vmatprep.mubr.msk.f32.mxu0 %vm380_vm2, %v5989_v49  ;;  %7709 = vmatpush3.bf16.msra.mxu0 %v8831_v20 }
 0x542   :  { %7711 = vmatprep.subr.bf16.mxu0 %v8844_v27 }
 0x544   :  { %7196 = vmatmul.mubr.msk.f32.gmra.mrb[42].mxu0 %vm380_vm2, %v5990_v54 }
 0x545   :  { %7713 = vmatpush3.bf16.msra.mxu0 %v8863_v36 }
 0x546   :  { %7746 = vmatprep.subr.bf16.mxu0 %v8389_v18 }
 0x5fb   :  { %v7176_v2 = vpop.f32.mrb[28].mxu0 }
 0x5fc   :  { %1256 = vrot.lane.b32.xlu0 %v7176_v2, %s8386_s5  ;;  %v1175_v9 = vpop.f32.mrb[29].mxu0 }
 0x5fd   :  { %1254 = vst.msk [vmem:[#allocation2] sm:$0xff] %vm574_vm4, %v1175_v9 }
 0x5ff   :  { %v7179_v23 = vpop.f32.mrb[30].mxu0 }
 0x600   :  { %1266 = vrot.lane.b32.xlu1 %v7179_v23, %s8387_s18  ;;  %v1185_v26 = vpop.f32.mrb[31].mxu0 }
 0x601   :  { %1261 = vrot.lane.b32.xlu0 %v1185_v26, %s8388_s24 }
 0x603   :  { %v7182_v20 = vpop.f32.mrb[32].mxu0 }
 0x604   :  { %1272 = vrot.lane.b32.xlu1 %v7182_v20, %s8386_s5  ;;  %v1195_v27 = vpop.f32.mrb[33].mxu0  ;;  %v6010_v20 = vld [vmem:[%s11176_s1 + $0x100] sm:$0xff] }
 0x605   :  { %1270 = vst.msk [vmem:[#allocation2 + $0x8] sm:$0xff] %vm574_vm4, %v1195_v27 }
 0x607   :  { %v7185_v36 = vpop.f32.mrb[34].mxu0 }
 0x608   :  { %1282 = vrot.lane.b32.xlu1 %v7185_v36, %s8387_s18  ;;  %v1205_v28 = vpop.f32.mrb[35].mxu0 }
 0x60b   :  { %v7188_v31 = vpop.f32.mrb[36].mxu0 }
 0x60c   :  { %1277 = vrot.lane.b32.xlu1 %v1205_v28, %s8388_s24  ;;  %1288 = vrot.lane.b32.xlu0 %v7188_v31, %s8386_s5  ;;  %v1215_v32 = vpop.f32.mrb[37].mxu0  ;;  %v6012_v31 = vld [vmem:[%s11176_s1 + $0x110] sm:$0xff] }
 0x60d   :  { %1286 = vst.msk [vmem:[#allocation2 + $0x10] sm:$0xff] %vm574_vm4, %v1215_v32  ;;  %v6013_v32 = vld [vmem:[%s11176_s1 + $0x118] sm:$0xff] }
 0x60f   :  { %v7191_v3 = vpop.f32.mrb[38].mxu0 }
 0x610   :  { %v1225_v25 = vpop.f32.mrb[39].mxu0 }
 0x611   :  { %1293 = vrot.lane.b32.xlu0 %v1225_v25, %s8388_s24  ;;  %v6015_v25 = vld [vmem:[%s11176_s1 + $0x128] sm:$0xff] }
 0x613   :  { %v7194_v34 = vpop.f32.mrb[40].mxu0 }
 0x614   :  { %v1235_v45 = vpop.f32.mrb[41].mxu0 }
 0x615   :  { %1302 = vst.msk [vmem:[#allocation2 + $0x18] sm:$0xff] %vm574_vm4, %v1235_v45  ;;  %1304 = vrot.lane.b32.xlu0 %v7194_v34, %s8386_s5  ;;  %v6016_v34 = vld [vmem:[%s11176_s1 + $0x130] sm:$0xff]  ;;  %v6017_v45 = vld [vmem:[%s11176_s1 + $0x138] sm:$0xff] }
 0x617   :  { %v7197_v50 = vpop.f32.mrb[42].mxu0 }
 0x618   :  { %v1245_v61 = vpop.f32.mrb[43].mxu0 }
 0x619   :  { %1298 = vrot.lane.b32.xlu0 %v7191_v3, %s8387_s18  ;;  %1309 = vrot.lane.b32.xlu1 %v1245_v61, %s8388_s24  ;;  %v6014_v3 = vld [vmem:[%s11176_s1 + $0x120] sm:$0xff]  ;;  %v6019_v61 = vld [vmem:[%s11176_s1 + $0x148] sm:$0xff] }
 0x61d   :  { %1314 = vrot.lane.b32.xlu1 %v7197_v50, %s8387_s18  ;;  %v6018_v50 = vld [vmem:[%s11176_s1 + $0x140] sm:$0xff] }
 0x66e   :  { %v1257_v4 = vpop.permute.xlu0 %1256 }
 0x66f   :  { %1259 = vst.msk [vmem:[#allocation2] sm:$0xff] %vm580_vm5, %v1257_v4  ;;  %v6020_v4 = vld [vmem:[%s11176_s1 + $0x150] sm:$0xff] }
 0x672   :  { %v1267_v12 = vpop.permute.xlu1 %1266 }
 0x673   :  { %v1262_v21 = vpop.permute.xlu0 %1261 }
 0x674   :  { %1264 = vst.msk [vmem:[#allocation2] sm:$0xff] %vm586_vm6, %v1262_v21  ;;  %v6022_v21 = vld [vmem:[%s11176_s1 + $0x160] sm:$0xff] }
 0x675   :  { %1269 = vst.msk [vmem:[#allocation2] sm:$0xff] %vm592_vm7, %v1267_v12  ;;  %v6021_v12 = vld [vmem:[%s11176_s1 + $0x158] sm:$0xff] }
 0x676   :  { %v1273_v30 = vpop.permute.xlu1 %1272 }
 0x677   :  { %1275 = vst.msk [vmem:[#allocation2 + $0x8] sm:$0xff] %vm580_vm5, %v1273_v30  ;;  %v6023_v30 = vld [vmem:[%s11176_s1 + $0x168] sm:$0xff] }
 0x67a   :  { %v1283_v37 = vpop.permute.xlu1 %1282 }
 0x67c   :  { %v1318_v42 = vld [vmem:[#allocation2] sm:$0xff] }
 0x67e   :  { %v1278_v43 = vpop.permute.xlu1 %1277  ;;  %v1289_v48 = vpop.permute.xlu0 %1288 }
 0x67f   :  { %1280 = vst.msk [vmem:[#allocation2 + $0x8] sm:$0xff] %vm586_vm6, %v1278_v43  ;;  %v6025_v43 = vld [vmem:[%s11176_s1 + $0x178] sm:$0xff] }
 0x680   :  { %1291 = vst.msk [vmem:[#allocation2 + $0x10] sm:$0xff] %vm580_vm5, %v1289_v48  ;;  %v2009_v48 = vld [vmem:[%s11185_s10 + $0x80] sm:$0xff] }
 0x681   :  { %1285 = vst.msk [vmem:[#allocation2 + $0x8] sm:$0xff] %vm592_vm7, %v1283_v37  ;;  %v6024_v37 = vld [vmem:[%s11176_s1 + $0x170] sm:$0xff] }
 0x683   :  { %v1294_v57 = vpop.permute.xlu0 %1293 }
 0x684   :  { %1296 = vst.msk [vmem:[#allocation2 + $0x10] sm:$0xff] %vm586_vm6, %v1294_v57  ;;  %v2010_v57 = vld [vmem:[%s11185_s10 + $0x88] sm:$0xff] }
 0x687   :  { %v1305_v62 = vpop.permute.xlu0 %1304 }
 0x688   :  { %v1319_v6 = vld [vmem:[#allocation2 + $0x8] sm:$0xff]  ;;  %1307 = vst.msk [vmem:[#allocation2 + $0x18] sm:$0xff] %vm580_vm5, %v1305_v62  ;;  %v1993_v62 = vld [vmem:[%s11185_s10] sm:$0xff] }
 0x689   :  { %1450 = vmatprep.mubr.f32.mxu0 %v1319_v6  ;;  %v9288_v6 = vpack.c.bf16 %v2010_v57, %v2009_v48  ;;  %v2021_v48 = vld [vmem:[%s11185_s10 + $0xe0] sm:$0xff]  ;;  %v2022_v57 = vld [vmem:[%s11185_s10 + $0xe8] sm:$0xff] }
 0x68a   :  { %1451 = vmatmul.mubr.f32.vlgmr.msra.gmra.mrb[44].mxu0 %v1318_v42  ;;  %v1994_v42 = vld [vmem:[%s11185_s10 + $0x8] sm:$0xff] }
 0x68b   :  { %7748 = vmatpush3.bf16.msra.mxu0 %v8974_v19  ;;  %7214 = vmatprep.mubr.msk.f32.mxu0 %vm8390_vm8, %v8391_v63  ;;  %v1299_v39 = vpop.permute.xlu0 %1298  ;;  %v1310_v41 = vpop.permute.xlu1 %1309 }
 0x68c   :  { %7749 = vmatprep.subr.bf16.mxu0 %v8389_v18  ;;  %1301 = vst.msk [vmem:[#allocation2 + $0x10] sm:$0xff] %vm592_vm7, %v1299_v39  ;;  %v2011_v39 = vld [vmem:[%s11185_s10 + $0x90] sm:$0xff] }
 0x68d   :  { %1312 = vst.msk [vmem:[#allocation2 + $0x18] sm:$0xff] %vm586_vm6, %v1310_v41  ;;  %v2012_v41 = vld [vmem:[%s11185_s10 + $0x98] sm:$0xff] }
 0x68f   :  { %7751 = vmatpush3.bf16.msra.mxu0 %v8981_v24  ;;  %v1315_v51 = vpop.permute.xlu1 %1314 }
 0x690   :  { %7752 = vmatprep.subr.bf16.mxu0 %v8389_v18  ;;  %1317 = vst.msk [vmem:[#allocation2 + $0x18] sm:$0xff] %vm592_vm7, %v1315_v51  ;;  %v9299_v51 = vpack.c.bf16 %v1994_v42, %v1993_v62  ;;  %v2029_v62 = vld [vmem:[%s11185_s10 + $0x120] sm:$0xff] }
 0x693   :  { %7754 = vmatpush3.bf16.msra.mxu0 %v8992_v29  ;;  %v1320_v55 = vld [vmem:[#allocation2 + $0x10] sm:$0xff] }
 0x694   :  { %7755 = vmatprep.subr.bf16.mxu0 %v8389_v18 }
 0x697   :  { %7757 = vmatpush3.bf16.msra.mxu0 %v9011_v44  ;;  %v1321_v19 = vld [vmem:[#allocation2 + $0x18] sm:$0xff] }
 0x698   :  { %7758 = vmatprep.subr.bf16.mxu0 %v8389_v18  ;;  %1520 = vmatprep.mubr.f32.mxu1 %v1321_v19  ;;  %v9301_v19 = vpack.c.bf16 %v2012_v41, %v2011_v39  ;;  %v9442_v39 = vpack.c.bf16 %v2022_v57, %v2021_v48  ;;  %v2030_v41 = vld [vmem:[%s11185_s10 + $0x128] sm:$0xff]  ;;  %v2035_v48 = vld [vmem:[%s11185_s10 + $0x150] sm:$0xff]  ;;  %v2036_v57 = vld [vmem:[%s11185_s10 + $0x158] sm:$0xff] }
 0x699   :  { %1521 = vmatmul.mubr.f32.vlgmr.msra.gmra.mrb[12].mxu1 %v1320_v55  ;;  %v1995_v55 = vld [vmem:[%s11185_s10 + $0x10] sm:$0xff] }
 0x69a   :  { %7230 = vmatprep.mubr.msk.f32.mxu1 %vm380_vm2, %v6010_v20 }
 0x75d   :  { %v6404_v10 = vpop.f32.mrb[44].mxu0 }
 0x75e   :  { %v6405_v13 = vpop.f32.mrb[45].mxu0 }
 0x75f   :  { %v6406_v24 = vadd.f32 %v6405_v13, %v6404_v10  ;;  %v1996_v10 = vld [vmem:[%s11185_s10 + $0x18] sm:$0xff] }
 0x760   :  { %v9311_v13 = vpack.c.bf16 %v1996_v10, %v1995_v55  ;;  %v2005_v55 = vld [vmem:[%s11185_s10 + $0x60] sm:$0xff]  ;;  %v2006_v10 = vld [vmem:[%s11185_s10 + $0x68] sm:$0xff] }
 0x761   :  { %v1453_v40 = vadd.f32 %v6406_v24, %v9038_v14  ;;  %v2013_v24 = vld [vmem:[%s11185_s10 + $0xa0] sm:$0xff] }
 0x76c   :  { %v6439_v16 = vpop.f32.mrb[12].mxu1 }
 0x76d   :  { %v6440_v17 = vpop.f32.mrb[13].mxu1 }
 0x76e   :  { %v6441_v52 = vadd.f32 %v6440_v17, %v6439_v16  ;;  %v2014_v16 = vld [vmem:[%s11185_s10 + $0xa8] sm:$0xff] }
 0x76f   :  { %v9321_v17 = vpack.c.bf16 %v2014_v16, %v2013_v24  ;;  %v9455_v16 = vpack.c.bf16 %v2030_v41, %v2029_v62 }
 0x770   :  { %v1523_v56 = vadd.f32 %v6441_v52, %v1453_v40  ;;  %v1997_v40 = vld [vmem:[%s11185_s10 + $0x20] sm:$0xff]  ;;  %v1998_v52 = vld [vmem:[%s11185_s10 + $0x28] sm:$0xff] }
 0x772   :  { %v1526_v29 = vmax.f32 %v1523_v56, 0.0  ;;  %v9329_v56 = vpack.c.bf16 %v1998_v52, %v1997_v40  ;;  %v9457_v40 = vpack.c.bf16 %v2006_v10, %v2005_v55  ;;  %v2047_v52 = vld [vmem:[%s11185_s10 + $0x1b0] sm:$0xff]  ;;  %v2053_v55 = vld [vmem:[%s11185_s10 + $0x1e0] sm:$0xff]  ;;  %v2054_v10 = vld [vmem:[%s11185_s10 + $0x1e8] sm:$0xff] }
 0x774   :  { %7215 = vmatmul.mubr.msk.f32.vlgmr.msra.gmra.mrb[46].mxu0 %vm225_vm3, %v1526_v29  ;;  %v2015_v29 = vld [vmem:[%s11185_s10 + $0xb0] sm:$0xff] }
 0x775   :  { %7760 = vmatpush3.bf16.msra.mxu0 %v9000_v35  ;;  %7225 = vmatprep.mubr.msk.f32.mxu0 %vm8390_vm8, %v8391_v63 }
 0x776   :  { %7761 = vmatprep.subr.bf16.mxu0 %v8389_v18 }
 0x779   :  { %7763 = vmatpush3.bf16.msra.mxu0 %v9020_v59 }
 0x77c   :  { %7226 = vmatmul.mubr.msk.f32.vlgmr.msra.gmra.mrb[48].mxu0 %vm574_vm4, %v9070_v7 }
 0x847   :  { %v1604_v44 = vpop.f32.mrb[46].mxu0 }
 0x848   :  { %v1608_v0 = vadd.f32 %v1604_v44, %v8942_v46  ;;  %v7216_v5 = vpop.f32.mrb[47].mxu0  ;;  %v2016_v44 = vld [vmem:[%s11185_s10 + $0xb8] sm:$0xff] }
 0x849   :  { %v1999_v5 = vld [vmem:[%s11185_s10 + $0x30] sm:$0xff] }
 0x84f   :  { %v1681_v15 = vpop.f32.mrb[48].mxu0 }
 0x850   :  { %v1685_v22 = vadd.f32 %v1681_v15, %v1608_v0  ;;  %v7227_v33 = vpop.f32.mrb[49].mxu0  ;;  %v9339_v0 = vpack.c.bf16 %v2016_v44, %v2015_v29  ;;  %v2000_v15 = vld [vmem:[%s11185_s10 + $0x38] sm:$0xff] }
 0x851   :  { %v2041_v33 = vld [vmem:[%s11185_s10 + $0x180] sm:$0xff]  ;;  %v2048_v29 = vld [vmem:[%s11185_s10 + $0x1b8] sm:$0xff] }
 0x852   :  { %8280 = vtanh.f32 %v1685_v22  ;;  %v6009_v35 = vmul.f32 -1.442695, %v1685_v22  ;;  %v9347_v22 = vpack.c.bf16 %v2000_v15, %v1999_v5  ;;  %v9469_v44 = vpack.c.bf16 %v2048_v29, %v2047_v52  ;;  %v2023_v5 = vld [vmem:[%s11185_s10 + $0xf0] sm:$0xff]  ;;  %v2024_v15 = vld [vmem:[%s11185_s10 + $0xf8] sm:$0xff]  ;;  %v2037_v52 = vld [vmem:[%s11185_s10 + $0x160] sm:$0xff] }
 0x853   :  { %v2038_v29 = vld [vmem:[%s11185_s10 + $0x168] sm:$0xff] }
 0x854   :  { %8282 = vpow2.f32 %v6009_v35 }
 0x85c   :  { %v8281_v38 = vpop.eup %8280 }
 0x85d   :  { %1695 = vrot.lane.b32.xlu1 %v8281_v38, %s8388_s24  ;;  %v2042_v38 = vld [vmem:[%s11185_s10 + $0x188] sm:$0xff] }
 0x85e   :  { %v8283_v49 = vpop.eup %8282  ;;  %v9357_v35 = vpack.c.bf16 %v2042_v38, %v2041_v33  ;;  %v2031_v33 = vld [vmem:[%s11185_s10 + $0x130] sm:$0xff] }
 0x85f   :  { %v1689_v54 = vadd.f32 1.0, %v8283_v49  ;;  %v2017_v49 = vld [vmem:[%s11185_s10 + $0xc0] sm:$0xff] }
 0x860   :  { %7797 = vmatprep.subr.bf16.mxu0 %v9357_v35 }
 0x861   :  { %8284 = vrcp.f32 %v1689_v54  ;;  %v2018_v54 = vld [vmem:[%s11185_s10 + $0xc8] sm:$0xff] }
 0x86b   :  { %v8285_v59 = vpop.eup %8284 }
 0x86c   :  { %v1693_v46 = vmul.f32 %v8285_v59, %v9061_v47  ;;  %v6011_v47 = vld [vmem:[%s11176_s1 + $0x108] sm:$0xff] }
 0x8cf   :  { %v1696_v2 = vpop.permute.xlu1 %1695 }
 0x8d0   :  { %v1698_v9 = vmul.f32 %v8285_v59, %v1696_v2  ;;  %v9368_v2 = vpack.c.bf16 %v2018_v54, %v2017_v49  ;;  %v9480_v49 = vpack.c.bf16 %v2024_v15, %v2023_v5  ;;  %v2032_v54 = vld [vmem:[%s11185_s10 + $0x138] sm:$0xff]  ;;  %v9556_v15 = vpack.c.bf16 %v2038_v29, %v2037_v52 }
 0x8d2   :  { %1700 = vrot.lane.b32.xlu0 %v1698_v9, %s8386_s5  ;;  %v2026_v9 = vld [vmem:[%s11185_s10 + $0x108] sm:$0xff] }
 0x944   :  { %v1701_v7 = vpop.permute.xlu0 %1700 }
 0x945   :  { %v9204_v23 = vadd.f32 %v1701_v7, %v1693_v46  ;;  %v2001_v46 = vld [vmem:[%s11185_s10 + $0x40] sm:$0xff]  ;;  %v2002_v7 = vld [vmem:[%s11185_s10 + $0x48] sm:$0xff] }
 0x946   :  { %v9382_v20 = vpack.c.bf16 %v2002_v7, %v2001_v46  ;;  %v9493_v7 = vpack.c.bf16 %v2032_v54, %v2031_v33  ;;  %v2056_v54 = vld [vmem:[%s11185_s10 + $0x1f8] sm:$0xff] }
 0x947   :  { %8286 = vtanh.f32 %v9204_v23 }
 0x951   :  { %v8287_v26 = vpop.eup %8286 }
 0x952   :  { %1706 = vrot.lane.b32.xlu1 %v8287_v26, %s8388_s24 }
 0x9c4   :  { %v1707_v27 = vpop.permute.xlu1 %1706 }
 0x9c5   :  { %v1709_v36 = vmul.f32 %v8285_v59, %v1707_v27  ;;  %v2025_v59 = vld [vmem:[%s11185_s10 + $0x100] sm:$0xff]  ;;  %v2043_v27 = vld [vmem:[%s11185_s10 + $0x190] sm:$0xff] }
 0x9c6   :  { %v9380_v26 = vpack.c.bf16 %v2026_v9, %v2025_v59  ;;  %v2007_v59 = vld [vmem:[%s11185_s10 + $0x70] sm:$0xff]  ;;  %v2008_v9 = vld [vmem:[%s11185_s10 + $0x78] sm:$0xff] }
 0x9c7   :  { %1711 = vrot.lane.b32.xlu0 %v1709_v36, %s8386_s5  ;;  %v2044_v36 = vld [vmem:[%s11185_s10 + $0x198] sm:$0xff] }
 0x9c8   :  { %7799 = vmatpush3.bf16.msra.mxu0 %v9380_v26 }
 0xa39   :  { %v9213_v28 = vpop.permute.xlu0 %1711 }
 0xa3a   :  { %1714 = vst.msk [vmem:[#allocation3 + $0x8] sm:$0xff] %vm574_vm4, %v9213_v28  ;;  %7228 = vmatprep.subr.mxu1 %v9213_v28 }
 0xa3b   :  { %7229 = vmatpush3.msra.mxu1 %v9213_v28 }
 0xa3c   :  { %7231 = vmatmul.mubr.msk.f32.vlgmr.msra.gmra.mrb[14].mxu1 %vm380_vm2, %v6011_v47  ;;  %7765 = vmatprep.subr.bf16.mxu1 %v9288_v6  ;;  %v9393_v47 = vpack.c.bf16 %v2044_v36, %v2043_v27  ;;  %v9495_v27 = vpack.c.bf16 %v2008_v9, %v2007_v59  ;;  %v2049_v36 = vld [vmem:[%s11185_s10 + $0x1c0] sm:$0xff]  ;;  %v2039_v59 = vld [vmem:[%s11185_s10 + $0x170] sm:$0xff] }
 0xa3d   :  { %7233 = vmatprep.mubr.msk.f32.mxu1 %vm380_vm2, %v6012_v31  ;;  %7767 = vmatpush3.bf16.msra.mxu1 %v9299_v51  ;;  %v2019_v31 = vld [vmem:[%s11185_s10 + $0xd0] sm:$0xff] }
 0xa3e   :  { %7769 = vmatprep.subr.bf16.mxu1 %v9301_v19  ;;  %7801 = vmatprep.subr.bf16.mxu0 %v9393_v47 }
 0xa40   :  { %7234 = vmatmul.mubr.msk.f32.gmra.mrb[16].mxu1 %vm380_vm2, %v6013_v32  ;;  %v2020_v32 = vld [vmem:[%s11185_s10 + $0xd8] sm:$0xff] }
 0xa41   :  { %7236 = vmatprep.mubr.msk.f32.mxu1 %vm380_vm2, %v6014_v3  ;;  %7771 = vmatpush3.bf16.msra.mxu1 %v9311_v13  ;;  %v2027_v3 = vld [vmem:[%s11185_s10 + $0x110] sm:$0xff] }
 0xa42   :  { %7773 = vmatprep.subr.bf16.mxu1 %v9321_v17 }
 0xa44   :  { %7237 = vmatmul.mubr.msk.f32.gmra.mrb[18].mxu1 %vm380_vm2, %v6015_v25 }
 0xa45   :  { %7239 = vmatprep.mubr.msk.f32.mxu1 %vm380_vm2, %v6016_v34  ;;  %7775 = vmatpush3.bf16.msra.mxu1 %v9329_v56  ;;  %v9404_v34 = vpack.c.bf16 %v2020_v32, %v2019_v31  ;;  %v2050_v31 = vld [vmem:[%s11185_s10 + $0x1c8] sm:$0xff] }
 0xa46   :  { %7777 = vmatprep.subr.bf16.mxu1 %v9339_v0  ;;  %v9507_v32 = vpack.c.bf16 %v2050_v31, %v2049_v36 }
 0xa48   :  { %7240 = vmatmul.mubr.msk.f32.gmra.mrb[20].mxu1 %vm380_vm2, %v6017_v45  ;;  %v2028_v45 = vld [vmem:[%s11185_s10 + $0x118] sm:$0xff] }
 0xa49   :  { %7242 = vmatprep.mubr.msk.f32.mxu1 %vm380_vm2, %v6018_v50  ;;  %7779 = vmatpush3.bf16.msra.mxu1 %v9347_v22  ;;  %v2003_v50 = vld [vmem:[%s11185_s10 + $0x50] sm:$0xff] }
 0xa4a   :  { %7781 = vmatprep.subr.bf16.mxu1 %v9368_v2 }
 0xa4c   :  { %7243 = vmatmul.mubr.msk.f32.gmra.mrb[22].mxu1 %vm380_vm2, %v6019_v61  ;;  %v2004_v61 = vld [vmem:[%s11185_s10 + $0x58] sm:$0xff] }
 0xa4d   :  { %7245 = vmatprep.mubr.msk.f32.mxu1 %vm380_vm2, %v6020_v4  ;;  %7783 = vmatpush3.bf16.msra.mxu1 %v9382_v20 }
 0xa4e   :  { %7785 = vmatprep.subr.bf16.mxu1 %v9404_v34 }
 0xa50   :  { %7246 = vmatmul.mubr.msk.f32.gmra.mrb[24].mxu1 %vm380_vm2, %v6021_v12  ;;  %v9417_v12 = vpack.c.bf16 %v2028_v45, %v2027_v3  ;;  %v2033_v3 = vld [vmem:[%s11185_s10 + $0x140] sm:$0xff] }
 0xa51   :  { %7248 = vmatprep.mubr.msk.f32.mxu1 %vm380_vm2, %v6022_v21  ;;  %v9419_v21 = vpack.c.bf16 %v2004_v61, %v2003_v50 }
 0xa52   :  { %7803 = vmatpush3.bf16.msra.mxu0 %v9417_v12 }
 0xa53   :  { %7787 = vmatpush3.bf16.msra.mxu1 %v9419_v21 }
 0xa54   :  { %7249 = vmatmul.mubr.msk.f32.gmra.mrb[26].mxu1 %vm380_vm2, %v6023_v30  ;;  %v2045_v30 = vld [vmem:[%s11185_s10 + $0x1a0] sm:$0xff]  ;;  %7789 = vmatprep.subr.bf16.mxu1 %v9442_v39 }
 0xa55   :  { %7251 = vmatprep.mubr.msk.f32.mxu1 %vm380_vm2, %v6024_v37  ;;  %v2046_v37 = vld [vmem:[%s11185_s10 + $0x1a8] sm:$0xff] }
 0xa57   :  { %7791 = vmatpush3.bf16.msra.mxu1 %v9457_v40 }
 0xa58   :  { %7252 = vmatmul.mubr.msk.f32.gmra.mrb[28].mxu1 %vm380_vm2, %v6025_v43  ;;  %v9431_v43 = vpack.c.bf16 %v2046_v37, %v2045_v30  ;;  %7793 = vmatprep.subr.bf16.mxu1 %v9480_v49  ;;  %v2052_v30 = vld [vmem:[%s11185_s10 + $0x1d8] sm:$0xff] }
 0xa5a   :  { %7805 = vmatprep.subr.bf16.mxu0 %v9431_v43 }
 0xa5b   :  { %7807 = vmatpush3.bf16.msra.mxu0 %v9455_v16  ;;  %7795 = vmatpush3.bf16.msra.mxu1 %v9495_v27 }
 0xa5c   :  { %7809 = vmatprep.subr.bf16.mxu0 %v9469_v44  ;;  %7828 = vmatprep.subr.bf16.mxu1 %v8389_v18 }
 0xa5f   :  { %7811 = vmatpush3.bf16.msra.mxu0 %v9493_v7 }
 0xa60   :  { %7813 = vmatprep.subr.bf16.mxu0 %v9507_v32 }
 0xb0f   :  { %v7232_v25 = vpop.f32.mrb[14].mxu1 }
 0xb10   :  { %1927 = vrot.lane.b32.xlu0 %v7232_v25, %s8386_s5  ;;  %v1846_v4 = vpop.f32.mrb[15].mxu1  ;;  %v2034_v25 = vld [vmem:[%s11185_s10 + $0x148] sm:$0xff] }
 0xb11   :  { %1925 = vst.msk [vmem:[#allocation2] sm:$0xff] %vm574_vm4, %v1846_v4  ;;  %v9515_v50 = vpack.c.bf16 %v2034_v25, %v2033_v3  ;;  %v2051_v4 = vld [vmem:[%s11185_s10 + $0x1d0] sm:$0xff] }
 0xb12   :  { %v9527_v37 = vpack.c.bf16 %v2052_v30, %v2051_v4 }
 0xb13   :  { %v7235_v42 = vpop.f32.mrb[16].mxu1  ;;  %7815 = vmatpush3.bf16.msra.mxu0 %v9515_v50 }
 0xb14   :  { %1937 = vrot.lane.b32.xlu1 %v7235_v42, %s8387_s18  ;;  %v1856_v24 = vpop.f32.mrb[17].mxu1  ;;  %v9535_v42 = vpack.c.bf16 %v2036_v57, %v2035_v48  ;;  %7817 = vmatprep.subr.bf16.mxu0 %v9527_v37 }
 0xb15   :  { %1932 = vrot.lane.b32.xlu0 %v1856_v24, %s8388_s24  ;;  %v9548_v24 = vpack.c.bf16 %v2054_v10, %v2053_v55 }
 0xb17   :  { %v7238_v38 = vpop.f32.mrb[18].mxu1  ;;  %7819 = vmatpush3.bf16.msra.mxu0 %v9535_v42 }
 0xb18   :  { %1943 = vrot.lane.b32.xlu1 %v7238_v38, %s8386_s5  ;;  %v1866_v46 = vpop.f32.mrb[19].mxu1  ;;  %7821 = vmatprep.subr.bf16.mxu0 %v9548_v24  ;;  %v2055_v38 = vld [vmem:[%s11185_s10 + $0x1f0] sm:$0xff] }
 0xb19   :  { %1941 = vst.msk [vmem:[#allocation2 + $0x8] sm:$0xff] %vm574_vm4, %v1866_v46  ;;  %v9569_v9 = vpack.c.bf16 %v2056_v54, %v2055_v38  ;;  %v2040_v46 = vld [vmem:[%s11185_s10 + $0x178] sm:$0xff]  ;;  %v2280_v54 = vld [vmem:[%s11184_s9] sm:$0xff] }
 0xb1a   :  { %v9575_v36 = vpack.c.bf16 %v2040_v46, %v2039_v59  ;;  %v2281_v59 = vld [vmem:[%s11184_s9 + $0x8] sm:$0xff] }
 0xb1b   :  { %v7241_v45 = vpop.f32.mrb[20].mxu1  ;;  %7823 = vmatpush3.bf16.msra.mxu0 %v9556_v15  ;;  %v9605_v46 = vpack.c.bf16 %v2281_v59, %v2280_v54 }
 0xb1c   :  { %1953 = vrot.lane.b32.xlu1 %v7241_v45, %s8387_s18  ;;  %v1876_v61 = vpop.f32.mrb[21].mxu1  ;;  %7825 = vmatprep.subr.bf16.mxu0 %v9569_v9 }
 0xb1f   :  { %v7244_v62 = vpop.f32.mrb[22].mxu1  ;;  %7827 = vmatpush3.bf16.msra.mxu0 %v9575_v36 }
 0xb20   :  { %1948 = vrot.lane.b32.xlu1 %v1876_v61, %s8388_s24  ;;  %1959 = vrot.lane.b32.xlu0 %v7244_v62, %s8386_s5  ;;  %v1886_v41 = vpop.f32.mrb[23].mxu1 }
 0xb21   :  { %1957 = vst.msk [vmem:[#allocation2 + $0x10] sm:$0xff] %vm574_vm4, %v1886_v41  ;;  %7840 = vmatprep.subr.bf16.mxu0 %v8389_v18 }
 0xb23   :  { %v7247_v5 = vpop.f32.mrb[24].mxu1 }
 0xb24   :  { %v1896_v33 = vpop.f32.mrb[25].mxu1 }
 0xb25   :  { %1964 = vrot.lane.b32.xlu0 %v1896_v33, %s8388_s24 }
 0xb27   :  { %v7250_v31 = vpop.f32.mrb[26].mxu1 }
 0xb28   :  { %v1906_v3 = vpop.f32.mrb[27].mxu1 }
 0xb29   :  { %1973 = vst.msk [vmem:[#allocation2 + $0x18] sm:$0xff] %vm574_vm4, %v1906_v3  ;;  %1975 = vrot.lane.b32.xlu0 %v7250_v31, %s8386_s5  ;;  %v2282_v3 = vld [vmem:[%s11184_s9 + $0x10] sm:$0xff] }
 0xb2b   :  { %v7253_v25 = vpop.f32.mrb[28].mxu1 }
 0xb2c   :  { %v1916_v45 = vpop.f32.mrb[29].mxu1 }
 0xb2d   :  { %1969 = vrot.lane.b32.xlu0 %v7247_v5, %s8387_s18  ;;  %1980 = vrot.lane.b32.xlu1 %v1916_v45, %s8388_s24 }
 0xb31   :  { %1985 = vrot.lane.b32.xlu1 %v7253_v25, %s8387_s18  ;;  %v2283_v25 = vld [vmem:[%s11184_s9 + $0x18] sm:$0xff] }
 0xb82   :  { %v1928_v61 = vpop.permute.xlu0 %1927 }
 0xb83   :  { %1930 = vst.msk [vmem:[#allocation2] sm:$0xff] %vm580_vm5, %v1928_v61  ;;  %v9614_v61 = vpack.c.bf16 %v2283_v25, %v2282_v3 }
 0xb86   :  { %v1938_v4 = vpop.permute.xlu1 %1937 }
 0xb87   :  { %v1933_v30 = vpop.permute.xlu0 %1932 }
 0xb88   :  { %1935 = vst.msk [vmem:[#allocation2] sm:$0xff] %vm586_vm6, %v1933_v30  ;;  %v2199_v30 = vld [vmem:[%s11183_s8 + $0x8] sm:$0xff] }
 0xb89   :  { %1940 = vst.msk [vmem:[#allocation2] sm:$0xff] %vm592_vm7, %v1938_v4  ;;  %v2198_v4 = vld [vmem:[%s11183_s8] sm:$0xff] }
 0xb8a   :  { %v1944_v48 = vpop.permute.xlu1 %1943 }
 0xb8b   :  { %1946 = vst.msk [vmem:[#allocation2 + $0x8] sm:$0xff] %vm580_vm5, %v1944_v48  ;;  %v2200_v48 = vld [vmem:[%s11183_s8 + $0x10] sm:$0xff] }
 0xb8e   :  { %v1954_v57 = vpop.permute.xlu1 %1953 }
 0xb90   :  { %v1989_v29 = vld [vmem:[#allocation2] sm:$0xff] }
 0xb92   :  { %v1949_v62 = vpop.permute.xlu1 %1948  ;;  %v1960_v41 = vpop.permute.xlu0 %1959 }
 0xb93   :  { %1951 = vst.msk [vmem:[#allocation2 + $0x8] sm:$0xff] %vm586_vm6, %v1949_v62  ;;  %v2201_v62 = vld [vmem:[%s11183_s8 + $0x18] sm:$0xff] }
 0xb94   :  { %1962 = vst.msk [vmem:[#allocation2 + $0x10] sm:$0xff] %vm580_vm5, %v1960_v41  ;;  %v2202_v41 = vld [vmem:[%s11183_s8 + $0x20] sm:$0xff] }
 0xb95   :  { %1956 = vst.msk [vmem:[#allocation2 + $0x8] sm:$0xff] %vm592_vm7, %v1954_v57  ;;  %v9631_v57 = vpack.c.bf16 %v2199_v30, %v2198_v4 }
 0xb97   :  { %v1965_v55 = vpop.permute.xlu0 %1964 }
 0xb98   :  { %1967 = vst.msk [vmem:[#allocation2 + $0x10] sm:$0xff] %vm586_vm6, %v1965_v55  ;;  %v2203_v55 = vld [vmem:[%s11183_s8 + $0x28] sm:$0xff] }
 0xb9b   :  { %v1976_v10 = vpop.permute.xlu0 %1975 }
 0xb9c   :  { %v1990_v52 = vld [vmem:[#allocation2 + $0x8] sm:$0xff]  ;;  %1978 = vst.msk [vmem:[#allocation2 + $0x18] sm:$0xff] %vm580_vm5, %v1976_v10  ;;  %v9648_v10 = vpack.c.bf16 %v2203_v55, %v2202_v41  ;;  %v6047_v41 = vld [vmem:[%s11176_s1 + $0x190] sm:$0xff]  ;;  %v6048_v55 = vld [vmem:[%s11176_s1 + $0x198] sm:$0xff] }
 0xb9d   :  { %2121 = vmatprep.mubr.f32.mxu1 %v1990_v52  ;;  %v2204_v52 = vld [vmem:[%s11183_s8 + $0x30] sm:$0xff] }
 0xb9e   :  { %2122 = vmatmul.mubr.f32.vlgmr.msra.gmra.mrb[30].mxu1 %v1989_v29  ;;  %v2205_v29 = vld [vmem:[%s11183_s8 + $0x38] sm:$0xff] }
 0xb9f   :  { %7270 = vmatprep.mubr.msk.f32.mxu1 %vm8390_vm8, %v8391_v63  ;;  %v1970_v5 = vpop.permute.xlu0 %1969  ;;  %v1981_v33 = vpop.permute.xlu1 %1980  ;;  %7830 = vmatpush3.bf16.msra.mxu1 %v9631_v57 }
 0xba0   :  { %1972 = vst.msk [vmem:[#allocation2 + $0x10] sm:$0xff] %vm592_vm7, %v1970_v5  ;;  %7831 = vmatprep.subr.bf16.mxu1 %v8389_v18  ;;  %v9658_v5 = vpack.c.bf16 %v2205_v29, %v2204_v52  ;;  %v6049_v52 = vld [vmem:[%s11176_s1 + $0x1a0] sm:$0xff] }
 0xba1   :  { %1983 = vst.msk [vmem:[#allocation2 + $0x18] sm:$0xff] %vm586_vm6, %v1981_v33 }
 0xba3   :  { %v1986_v38 = vpop.permute.xlu1 %1985 }
 0xba4   :  { %1988 = vst.msk [vmem:[#allocation2 + $0x18] sm:$0xff] %vm592_vm7, %v1986_v38 }
 0xba7   :  { %v1991_v45 = vld [vmem:[#allocation2 + $0x10] sm:$0xff] }
 0xbab   :  { %v1992_v31 = vld [vmem:[#allocation2 + $0x18] sm:$0xff] }
 0xbac   :  { %2191 = vmatprep.mubr.f32.mxu0 %v1992_v31 }
 0xbad   :  { %2192 = vmatmul.mubr.f32.vlgmr.msra.gmra.mrb[50].mxu0 %v1991_v45 }
 0xbae   :  { %7842 = vmatpush3.bf16.msra.mxu0 %v9605_v46  ;;  %7281 = vmatprep.mubr.msk.f32.mxu0 %vm8390_vm8, %v8391_v63 }
 0xbaf   :  { %7843 = vmatprep.subr.bf16.mxu0 %v8389_v18 }
 0xbb2   :  { %7845 = vmatpush3.bf16.msra.mxu0 %v9614_v61 }
 0xbb5   :  { %7282 = vmatmul.mubr.msk.f32.vlgmr.msra.gmra.mrb[52].mxu0 %vm574_vm4, %v9213_v28  ;;  %v9637_v28 = vpack.c.bf16 %v2201_v62, %v2200_v48 }
 0xbb7   :  { %7833 = vmatpush3.bf16.msra.mxu1 %v9637_v28 }
 0xbb8   :  { %7834 = vmatprep.subr.bf16.mxu1 %v8389_v18 }
 0xbbb   :  { %7836 = vmatpush3.bf16.msra.mxu1 %v9648_v10 }
 0xbbc   :  { %7837 = vmatprep.subr.bf16.mxu1 %v8389_v18 }
 0xbbf   :  { %7839 = vmatpush3.bf16.msra.mxu1 %v9658_v5 }
 0xbc0   :  { %7879 = vmatprep.subr.bf16.mxu1 %v9357_v35 }
 0xc71   :  { %v6505_v33 = vpop.f32.mrb[30].mxu1 }
 0xc72   :  { %v6506_v38 = vpop.f32.mrb[31].mxu1 }
 0xc73   :  { %v6507_v54 = vadd.f32 %v6506_v38, %v6505_v33 }
 0xc75   :  { %v2124_v3 = vadd.f32 %v6507_v54, %v9038_v14 }
 0xc80   :  { %v6540_v59 = vpop.f32.mrb[50].mxu0 }
 0xc81   :  { %v6541_v31 = vpop.f32.mrb[51].mxu0 }
 0xc82   :  { %v6542_v25 = vadd.f32 %v6541_v31, %v6540_v59 }
 0xc84   :  { %v2194_v45 = vadd.f32 %v6542_v25, %v2124_v3 }
 0xc86   :  { %v2197_v4 = vmax.f32 %v2194_v45, 0.0 }
 0xc88   :  { %v2352_v30 = vpop.f32.mrb[52].mxu0  ;;  %7271 = vmatmul.mubr.msk.f32.vlgmr.msra.gmra.mrb[32].mxu1 %vm225_vm3, %v2197_v4 }
 0xc89   :  { %v7283_v48 = vpop.f32.mrb[53].mxu0  ;;  %7881 = vmatpush3.bf16.msra.mxu1 %v9380_v26 }
 0xc8a   :  { %7883 = vmatprep.subr.bf16.mxu1 %v9393_v47 }
 0xc8d   :  { %7885 = vmatpush3.bf16.msra.mxu1 %v9417_v12 }
 0xc8e   :  { %7887 = vmatprep.subr.bf16.mxu1 %v9431_v43 }
 0xc91   :  { %7889 = vmatpush3.bf16.msra.mxu1 %v9455_v16 }
 0xc92   :  { %7891 = vmatprep.subr.bf16.mxu1 %v9469_v44 }
 0xc95   :  { %7893 = vmatpush3.bf16.msra.mxu1 %v9493_v7 }
 0xc96   :  { %7895 = vmatprep.subr.bf16.mxu1 %v9507_v32 }
 0xc99   :  { %7897 = vmatpush3.bf16.msra.mxu1 %v9515_v50 }
 0xc9a   :  { %7899 = vmatprep.subr.bf16.mxu1 %v9527_v37 }
 0xc9d   :  { %7901 = vmatpush3.bf16.msra.mxu1 %v9535_v42 }
 0xc9e   :  { %7903 = vmatprep.subr.bf16.mxu1 %v9548_v24 }
 0xca1   :  { %7905 = vmatpush3.bf16.msra.mxu1 %v9556_v15  ;;  %v6045_v15 = vld [vmem:[%s11176_s1 + $0x180] sm:$0xff] }
 0xca2   :  { %7907 = vmatprep.subr.bf16.mxu1 %v9569_v9  ;;  %7286 = vmatprep.mubr.msk.f32.mxu0 %vm380_vm2, %v6045_v15 }
 0xca5   :  { %7909 = vmatpush3.bf16.msra.mxu1 %v9575_v36 }
 0xca6   :  { %7922 = vmatprep.subr.bf16.mxu1 %v8389_v18 }
 0xd5b   :  { %v2275_v14 = vpop.f32.mrb[32].mxu1 }
 0xd5c   :  { %v2279_v35 = vadd.f32 %v2275_v14, %v8950_v58  ;;  %v7272_v26 = vpop.f32.mrb[33].mxu1 }
 0xd5e   :  { %v2356_v47 = vadd.f32 %v2352_v30, %v2279_v35 }
 0xd60   :  { %8288 = vtanh.f32 %v2356_v47  ;;  %v6044_v43 = vmul.f32 -1.442695, %v2356_v47 }
 0xd62   :  { %8290 = vpow2.f32 %v6044_v43 }
 0xd6a   :  { %v8289_v12 = vpop.eup %8288 }
 0xd6b   :  { %2366 = vrot.lane.b32.xlu1 %v8289_v12, %s8388_s24 }
 0xd6c   :  { %v8291_v16 = vpop.eup %8290 }
 0xd6d   :  { %v2360_v44 = vadd.f32 1.0, %v8291_v16 }
 0xd6f   :  { %8292 = vrcp.f32 %v2360_v44 }
 0xd79   :  { %v8293_v7 = vpop.eup %8292 }
 0xd7a   :  { %v2364_v37 = vmul.f32 %v8293_v7, %v9204_v23  ;;  %v6046_v23 = vld [vmem:[%s11176_s1 + $0x188] sm:$0xff] }
 0xddd   :  { %v2367_v32 = vpop.permute.xlu1 %2366 }
 0xdde   :  { %v2369_v50 = vmul.f32 %v8293_v7, %v2367_v32 }
 0xde0   :  { %2371 = vrot.lane.b32.xlu0 %v2369_v50, %s8386_s5 }
 0xe52   :  { %v2372_v42 = vpop.permute.xlu0 %2371 }
 0xe53   :  { %v9684_v58 = vadd.f32 %v2372_v42, %v2364_v37 }
 0xe55   :  { %8294 = vtanh.f32 %v9684_v58 }
 0xe5f   :  { %v8295_v24 = vpop.eup %8294 }
 0xe60   :  { %2377 = vrot.lane.b32.xlu1 %v8295_v24, %s8388_s24 }
 0xed2   :  { %v2378_v9 = vpop.permute.xlu1 %2377 }
 0xed3   :  { %v2380_v36 = vmul.f32 %v8293_v7, %v2378_v9 }
 0xed5   :  { %2382 = vrot.lane.b32.xlu0 %v2380_v36, %s8386_s5  ;;  %v9823_v36 = vld [vmem:[%s11186_s11] ss:$0 sm:$0xff] }
 0xf47   :  { %v9693_v62 = vpop.permute.xlu0 %2382 }
 0xf48   :  { %2385 = vst.msk [vmem:[#allocation3 + $0x10] sm:$0xff] %vm574_vm4, %v9693_v62  ;;  %7284 = vmatprep.subr.mxu0 %v9693_v62 }
 0xf49   :  { %7285 = vmatpush3.msra.mxu0 %v9693_v62 }
 0xf4a   :  { %7287 = vmatmul.mubr.msk.f32.vlgmr.msra.gmra.mrb[54].mxu0 %vm380_vm2, %v6046_v23  ;;  %7847 = vmatprep.subr.bf16.mxu0 %v9288_v6  ;;  %v6050_v6 = vld [vmem:[%s11176_s1 + $0x1a8] sm:$0xff] }
 0xf4b   :  { %7289 = vmatprep.mubr.msk.f32.mxu0 %vm380_vm2, %v6047_v41  ;;  %7849 = vmatpush3.bf16.msra.mxu0 %v9299_v51  ;;  %v6051_v51 = vld [vmem:[%s11176_s1 + $0x1b0] sm:$0xff] }
 0xf4c   :  { %7851 = vmatprep.subr.bf16.mxu0 %v9301_v19  ;;  %v6052_v19 = vld [vmem:[%s11176_s1 + $0x1b8] sm:$0xff] }
 0xf4e   :  { %7290 = vmatmul.mubr.msk.f32.gmra.mrb[56].mxu0 %vm380_vm2, %v6048_v55 }
 0xf4f   :  { %7292 = vmatprep.mubr.msk.f32.mxu0 %vm380_vm2, %v6049_v52  ;;  %7853 = vmatpush3.bf16.msra.mxu0 %v9311_v13  ;;  %v6053_v13 = vld [vmem:[%s11176_s1 + $0x1c0] sm:$0xff] }
 0xf50   :  { %7855 = vmatprep.subr.bf16.mxu0 %v9321_v17  ;;  %v6054_v17 = vld [vmem:[%s11176_s1 + $0x1c8] sm:$0xff] }
 0xf52   :  { %7293 = vmatmul.mubr.msk.f32.gmra.mrb[58].mxu0 %vm380_vm2, %v6050_v6 }
 0xf53   :  { %7295 = vmatprep.mubr.msk.f32.mxu0 %vm380_vm2, %v6051_v51  ;;  %7857 = vmatpush3.bf16.msra.mxu0 %v9329_v56  ;;  %v6055_v56 = vld [vmem:[%s11176_s1 + $0x1d0] sm:$0xff] }
 0xf54   :  { %7859 = vmatprep.subr.bf16.mxu0 %v9339_v0  ;;  %v6056_v0 = vld [vmem:[%s11176_s1 + $0x1d8] sm:$0xff] }
 0xf56   :  { %7296 = vmatmul.mubr.msk.f32.gmra.mrb[60].mxu0 %vm380_vm2, %v6052_v19 }
 0xf57   :  { %7298 = vmatprep.mubr.msk.f32.mxu0 %vm380_vm2, %v6053_v13  ;;  %7861 = vmatpush3.bf16.msra.mxu0 %v9347_v22  ;;  %v6057_v22 = vld [vmem:[%s11176_s1 + $0x1e0] sm:$0xff] }
 0xf58   :  { %7863 = vmatprep.subr.bf16.mxu0 %v9368_v2  ;;  %v6058_v2 = vld [vmem:[%s11176_s1 + $0x1e8] sm:$0xff] }
 0xf5a   :  { %7299 = vmatmul.mubr.msk.f32.gmra.mrb[62].mxu0 %vm380_vm2, %v6054_v17 }
 0xf5b   :  { %7301 = vmatprep.mubr.msk.f32.mxu0 %vm380_vm2, %v6055_v56  ;;  %7865 = vmatpush3.bf16.msra.mxu0 %v9382_v20  ;;  %v6059_v20 = vld [vmem:[%s11176_s1 + $0x1f0] sm:$0xff] }
 0xf5c   :  { %7867 = vmatprep.subr.bf16.mxu0 %v9404_v34  ;;  %v6060_v34 = vld [vmem:[%s11176_s1 + $0x1f8] sm:$0xff] }
 0xf5e   :  { %7302 = vmatmul.mubr.msk.f32.gmra.mrb[64].mxu0 %vm380_vm2, %v6056_v0 }
 0xf5f   :  { %7304 = vmatprep.mubr.msk.f32.mxu0 %vm380_vm2, %v6057_v22  ;;  %7869 = vmatpush3.bf16.msra.mxu0 %v9419_v21 }
 0xf60   :  { %7871 = vmatprep.subr.bf16.mxu0 %v9442_v39 }
 0xf62   :  { %7305 = vmatmul.mubr.msk.f32.gmra.mrb[66].mxu0 %vm380_vm2, %v6058_v2 }
 0xf63   :  { %7307 = vmatprep.mubr.msk.f32.mxu0 %vm380_vm2, %v6059_v20  ;;  %7873 = vmatpush3.bf16.msra.mxu0 %v9457_v40 }
 0xf64   :  { %7875 = vmatprep.subr.bf16.mxu0 %v9480_v49 }
 0xf66   :  { %7308 = vmatmul.mubr.msk.f32.gmra.mrb[68].mxu0 %vm380_vm2, %v6060_v34 }
 0xf67   :  { %7877 = vmatpush3.bf16.msra.mxu0 %v9495_v27 }
 0xf68   :  { %7910 = vmatprep.subr.bf16.mxu0 %v8389_v18 }
0x101d   :  { %v7288_v21 = vpop.f32.mrb[54].mxu0 }
0x101e   :  { %2598 = vrot.lane.b32.xlu0 %v7288_v21, %s8386_s5  ;;  %v2517_v39 = vpop.f32.mrb[55].mxu0 }
0x101f   :  { %2596 = vst.msk [vmem:[#allocation2] sm:$0xff] %vm574_vm4, %v2517_v39 }
0x1021   :  { %v7291_v29 = vpop.f32.mrb[56].mxu0 }
0x1022   :  { %2608 = vrot.lane.b32.xlu1 %v7291_v29, %s8387_s18  ;;  %v2527_v33 = vpop.f32.mrb[57].mxu0  ;;  %v6080_v29 = vld [vmem:[%s11176_s1 + $0x200] sm:$0xff] }
0x1023   :  { %2603 = vrot.lane.b32.xlu0 %v2527_v33, %s8388_s24 }
0x1025   :  { %v7294_v40 = vpop.f32.mrb[58].mxu0 }
0x1026   :  { %2614 = vrot.lane.b32.xlu1 %v7294_v40, %s8386_s5  ;;  %v2537_v49 = vpop.f32.mrb[59].mxu0 }
0x1027   :  { %2612 = vst.msk [vmem:[#allocation2 + $0x8] sm:$0xff] %vm574_vm4, %v2537_v49 }
0x1029   :  { %v7297_v27 = vpop.f32.mrb[60].mxu0 }
0x102a   :  { %2624 = vrot.lane.b32.xlu1 %v7297_v27, %s8387_s18  ;;  %v2547_v38 = vpop.f32.mrb[61].mxu0  ;;  %v6082_v27 = vld [vmem:[%s11176_s1 + $0x210] sm:$0xff] }
0x102d   :  { %v7300_v54 = vpop.f32.mrb[62].mxu0 }
0x102e   :  { %2619 = vrot.lane.b32.xlu1 %v2547_v38, %s8388_s24  ;;  %2630 = vrot.lane.b32.xlu0 %v7300_v54, %s8386_s5  ;;  %v2557_v59 = vpop.f32.mrb[63].mxu0  ;;  %v6083_v38 = vld [vmem:[%s11176_s1 + $0x218] sm:$0xff]  ;;  %v6084_v54 = vld [vmem:[%s11176_s1 + $0x220] sm:$0xff] }
0x102f   :  { %2628 = vst.msk [vmem:[#allocation2 + $0x10] sm:$0xff] %vm574_vm4, %v2557_v59  ;;  %v6085_v59 = vld [vmem:[%s11176_s1 + $0x228] sm:$0xff] }
0x1031   :  { %v7303_v31 = vpop.f32.mrb[64].mxu0 }
0x1032   :  { %v2567_v3 = vpop.f32.mrb[65].mxu0 }
0x1033   :  { %2635 = vrot.lane.b32.xlu0 %v2567_v3, %s8388_s24  ;;  %v6087_v3 = vld [vmem:[%s11176_s1 + $0x238] sm:$0xff] }
0x1035   :  { %v7306_v25 = vpop.f32.mrb[66].mxu0 }
0x1036   :  { %v2577_v45 = vpop.f32.mrb[67].mxu0 }
0x1037   :  { %2644 = vst.msk [vmem:[#allocation2 + $0x18] sm:$0xff] %vm574_vm4, %v2577_v45  ;;  %2646 = vrot.lane.b32.xlu0 %v7306_v25, %s8386_s5  ;;  %v6088_v25 = vld [vmem:[%s11176_s1 + $0x240] sm:$0xff]  ;;  %v6089_v45 = vld [vmem:[%s11176_s1 + $0x248] sm:$0xff] }
0x1039   :  { %v7309_v4 = vpop.f32.mrb[68].mxu0 }
0x103a   :  { %v2587_v30 = vpop.f32.mrb[69].mxu0 }
0x103b   :  { %2640 = vrot.lane.b32.xlu0 %v7303_v31, %s8387_s18  ;;  %2651 = vrot.lane.b32.xlu1 %v2587_v30, %s8388_s24  ;;  %v6086_v31 = vld [vmem:[%s11176_s1 + $0x230] sm:$0xff]  ;;  %v6091_v30 = vld [vmem:[%s11176_s1 + $0x258] sm:$0xff] }
0x103f   :  { %2656 = vrot.lane.b32.xlu1 %v7309_v4, %s8387_s18  ;;  %v6090_v4 = vld [vmem:[%s11176_s1 + $0x250] sm:$0xff] }
0x1090   :  { %v2599_v48 = vpop.permute.xlu0 %2598 }
0x1091   :  { %2601 = vst.msk [vmem:[#allocation2] sm:$0xff] %vm580_vm5, %v2599_v48  ;;  %v6092_v48 = vld [vmem:[%s11176_s1 + $0x260] sm:$0xff] }
0x1094   :  { %v2609_v14 = vpop.permute.xlu1 %2608 }
0x1095   :  { %v2604_v35 = vpop.permute.xlu0 %2603 }
0x1096   :  { %2606 = vst.msk [vmem:[#allocation2] sm:$0xff] %vm586_vm6, %v2604_v35  ;;  %v6094_v35 = vld [vmem:[%s11176_s1 + $0x270] sm:$0xff] }
0x1097   :  { %2611 = vst.msk [vmem:[#allocation2] sm:$0xff] %vm592_vm7, %v2609_v14  ;;  %v6093_v14 = vld [vmem:[%s11176_s1 + $0x268] sm:$0xff] }
0x1098   :  { %v2615_v26 = vpop.permute.xlu1 %2614 }
0x1099   :  { %2617 = vst.msk [vmem:[#allocation2 + $0x8] sm:$0xff] %vm580_vm5, %v2615_v26  ;;  %v6095_v26 = vld [vmem:[%s11176_s1 + $0x278] sm:$0xff] }
0x109c   :  { %v2625_v47 = vpop.permute.xlu1 %2624 }
0x109e   :  { %v2660_v32 = vld [vmem:[#allocation2] sm:$0xff] }
0x10a0   :  { %v2620_v12 = vpop.permute.xlu1 %2619  ;;  %v2631_v43 = vpop.permute.xlu0 %2630 }
0x10a1   :  { %2622 = vst.msk [vmem:[#allocation2 + $0x8] sm:$0xff] %vm586_vm6, %v2620_v12  ;;  %v3352_v12 = vld [vmem:[%s11185_s10 + $0x88] sm:$0xff] }
0x10a2   :  { %2633 = vst.msk [vmem:[#allocation2 + $0x10] sm:$0xff] %vm580_vm5, %v2631_v43  ;;  %v3335_v43 = vld [vmem:[%s11185_s10] sm:$0xff] }
0x10a3   :  { %2627 = vst.msk [vmem:[#allocation2 + $0x8] sm:$0xff] %vm592_vm7, %v2625_v47  ;;  %v3351_v47 = vld [vmem:[%s11185_s10 + $0x80] sm:$0xff] }
0x10a5   :  { %v2636_v16 = vpop.permute.xlu0 %2635 }
0x10a6   :  { %2638 = vst.msk [vmem:[#allocation2 + $0x10] sm:$0xff] %vm586_vm6, %v2636_v16  ;;  %v9915_v16 = vpack.c.bf16 %v3352_v12, %v3351_v47  ;;  %v3364_v47 = vld [vmem:[%s11185_s10 + $0xe8] sm:$0xff]  ;;  %v3371_v12 = vld [vmem:[%s11185_s10 + $0x120] sm:$0xff] }
0x10a9   :  { %v2647_v44 = vpop.permute.xlu0 %2646 }
0x10aa   :  { %v2661_v7 = vld [vmem:[#allocation2 + $0x8] sm:$0xff]  ;;  %2649 = vst.msk [vmem:[#allocation2 + $0x18] sm:$0xff] %vm580_vm5, %v2647_v44 }
0x10ab   :  { %2792 = vmatprep.mubr.f32.mxu0 %v2661_v7  ;;  %v3336_v44 = vld [vmem:[%s11185_s10 + $0x8] sm:$0xff]  ;;  %v3353_v7 = vld [vmem:[%s11185_s10 + $0x90] sm:$0xff] }
0x10ac   :  { %2793 = vmatmul.mubr.f32.vlgmr.msra.gmra.mrb[70].mxu0 %v2660_v32  ;;  %v3354_v32 = vld [vmem:[%s11185_s10 + $0x98] sm:$0xff] }
0x10ad   :  { %7912 = vmatpush3.bf16.msra.mxu0 %v9631_v57  ;;  %7326 = vmatprep.mubr.msk.f32.mxu0 %vm8390_vm8, %v8391_v63  ;;  %v2641_v50 = vpop.permute.xlu0 %2640  ;;  %v2652_v37 = vpop.permute.xlu1 %2651 }
0x10ae   :  { %7913 = vmatprep.subr.bf16.mxu0 %v8389_v18  ;;  %2643 = vst.msk [vmem:[#allocation2 + $0x10] sm:$0xff] %vm592_vm7, %v2641_v50  ;;  %v9926_v50 = vpack.c.bf16 %v3336_v44, %v3335_v43 }
0x10af   :  { %2654 = vst.msk [vmem:[#allocation2 + $0x18] sm:$0xff] %vm586_vm6, %v2652_v37  ;;  %v9928_v37 = vpack.c.bf16 %v3354_v32, %v3353_v7  ;;  %v3372_v7 = vld [vmem:[%s11185_s10 + $0x128] sm:$0xff]  ;;  %v3347_v32 = vld [vmem:[%s11185_s10 + $0x60] sm:$0xff] }
0x10b1   :  { %7915 = vmatpush3.bf16.msra.mxu0 %v9637_v28  ;;  %v2657_v42 = vpop.permute.xlu1 %2656 }
0x10b2   :  { %7916 = vmatprep.subr.bf16.mxu0 %v8389_v18  ;;  %2659 = vst.msk [vmem:[#allocation2 + $0x18] sm:$0xff] %vm592_vm7, %v2657_v42  ;;  %v3337_v42 = vld [vmem:[%s11185_s10 + $0x10] sm:$0xff] }
0x10b5   :  { %7918 = vmatpush3.bf16.msra.mxu0 %v9648_v10  ;;  %v2662_v24 = vld [vmem:[#allocation2 + $0x10] sm:$0xff] }
0x10b6   :  { %7919 = vmatprep.subr.bf16.mxu0 %v8389_v18 }
0x10b9   :  { %7921 = vmatpush3.bf16.msra.mxu0 %v9658_v5  ;;  %v2663_v57 = vld [vmem:[#allocation2 + $0x18] sm:$0xff] }
0x10ba   :  { %2862 = vmatprep.mubr.f32.mxu1 %v2663_v57  ;;  %v3338_v57 = vld [vmem:[%s11185_s10 + $0x18] sm:$0xff] }
0x10bb   :  { %2863 = vmatmul.mubr.f32.vlgmr.msra.gmra.mrb[34].mxu1 %v2662_v24  ;;  %v9938_v24 = vpack.c.bf16 %v3338_v57, %v3337_v42  ;;  %v3348_v42 = vld [vmem:[%s11185_s10 + $0x68] sm:$0xff]  ;;  %v10083_v57 = vpack.c.bf16 %v3372_v7, %v3371_v12  ;;  %v3395_v12 = vld [vmem:[%s11185_s10 + $0x1e0] sm:$0xff] }
0x10bc   :  { %7924 = vmatpush3.bf16.msra.mxu1 %v9605_v46  ;;  %7337 = vmatprep.mubr.msk.f32.mxu1 %vm8390_vm8, %v8391_v63 }
0x10bd   :  { %7925 = vmatprep.subr.bf16.mxu1 %v8389_v18 }
0x10c0   :  { %7927 = vmatpush3.bf16.msra.mxu1 %v9614_v61 }
0x10c3   :  { %7338 = vmatmul.mubr.msk.f32.vlgmr.msra.gmra.mrb[36].mxu1 %vm574_vm4, %v9693_v62 }
0x10c4   :  { %7342 = vmatprep.mubr.msk.f32.mxu1 %vm380_vm2, %v6080_v29  ;;  %v3386_v29 = vld [vmem:[%s11185_s10 + $0x198] sm:$0xff] }
0x117f   :  { %v6606_v28 = vpop.f32.mrb[70].mxu0 }
0x1180   :  { %v6607_v10 = vpop.f32.mrb[71].mxu0 }
0x1181   :  { %v6608_v15 = vadd.f32 %v6607_v10, %v6606_v28  ;;  %v3355_v28 = vld [vmem:[%s11185_s10 + $0xa0] sm:$0xff]  ;;  %v3356_v10 = vld [vmem:[%s11185_s10 + $0xa8] sm:$0xff] }
0x1183   :  { %v2795_v46 = vadd.f32 %v9823_v36, %v6608_v15  ;;  %v3339_v15 = vld [vmem:[%s11185_s10 + $0x20] sm:$0xff] }
0x118e   :  { %v6641_v5 = vpop.f32.mrb[34].mxu1 }
0x118f   :  { %v6642_v9 = vpop.f32.mrb[35].mxu1 }
0x1190   :  { %v6643_v23 = vadd.f32 %v6642_v9, %v6641_v5  ;;  %v9951_v5 = vpack.c.bf16 %v3356_v10, %v3355_v28  ;;  %v3340_v9 = vld [vmem:[%s11185_s10 + $0x28] sm:$0xff]  ;;  %v10085_v28 = vpack.c.bf16 %v3348_v42, %v3347_v32  ;;  %v3389_v10 = vld [vmem:[%s11185_s10 + $0x1b0] sm:$0xff]  ;;  %v3379_v42 = vld [vmem:[%s11185_s10 + $0x160] sm:$0xff] }
0x1192   :  { %v2865_v41 = vadd.f32 %v6643_v23, %v2795_v46  ;;  %v9956_v46 = vpack.c.bf16 %v3340_v9, %v3339_v15  ;;  %v3357_v23 = vld [vmem:[%s11185_s10 + $0xb0] sm:$0xff]  ;;  %v3390_v15 = vld [vmem:[%s11185_s10 + $0x1b8] sm:$0xff] }
0x1194   :  { %v2868_v55 = vmax.f32 %v2865_v41, 0.0  ;;  %v3358_v41 = vld [vmem:[%s11185_s10 + $0xb8] sm:$0xff] }
0x1196   :  { %v3023_v52 = vpop.f32.mrb[36].mxu1  ;;  %7327 = vmatmul.mubr.msk.f32.vlgmr.msra.gmra.mrb[72].mxu0 %vm225_vm3, %v2868_v55  ;;  %v9966_v55 = vpack.c.bf16 %v3358_v41, %v3357_v23  ;;  %v10096_v23 = vpack.c.bf16 %v3390_v15, %v3389_v10  ;;  %v3365_v41 = vld [vmem:[%s11185_s10 + $0xf0] sm:$0xff]  ;;  %v3380_v10 = vld [vmem:[%s11185_s10 + $0x168] sm:$0xff] }
0x1197   :  { %v7339_v61 = vpop.f32.mrb[37].mxu1 }
0x1198   :  { %v3342_v61 = vld [vmem:[%s11185_s10 + $0x38] sm:$0xff] }
0x1269   :  { %v2946_v62 = vpop.f32.mrb[72].mxu0 }
0x126a   :  { %v2950_v6 = vadd.f32 %v2946_v62, %v8947_v53  ;;  %v7328_v51 = vpop.f32.mrb[73].mxu0 }
0x126b   :  { %v3384_v51 = vld [vmem:[%s11185_s10 + $0x188] sm:$0xff] }
0x126c   :  { %v3027_v19 = vadd.f32 %v3023_v52, %v2950_v6  ;;  %v3341_v52 = vld [vmem:[%s11185_s10 + $0x30] sm:$0xff]  ;;  %v3383_v6 = vld [vmem:[%s11185_s10 + $0x180] sm:$0xff] }
0x126d   :  { %v9974_v62 = vpack.c.bf16 %v3342_v61, %v3341_v52  ;;  %v3366_v52 = vld [vmem:[%s11185_s10 + $0xf8] sm:$0xff]  ;;  %v3373_v61 = vld [vmem:[%s11185_s10 + $0x130] sm:$0xff] }
0x126e   :  { %8296 = vtanh.f32 %v3027_v19  ;;  %v6079_v17 = vmul.f32 -1.442695, %v3027_v19  ;;  %v9984_v19 = vpack.c.bf16 %v3384_v51, %v3383_v6  ;;  %v10108_v51 = vpack.c.bf16 %v3366_v52, %v3365_v41  ;;  %v3397_v41 = vld [vmem:[%s11185_s10 + $0x1f0] sm:$0xff]  ;;  %v3398_v52 = vld [vmem:[%s11185_s10 + $0x1f8] sm:$0xff] }
0x1270   :  { %8298 = vpow2.f32 %v6079_v17  ;;  %v3360_v17 = vld [vmem:[%s11185_s10 + $0xc8] sm:$0xff]  ;;  %7961 = vmatprep.subr.bf16.mxu0 %v9984_v19 }
0x1278   :  { %v8297_v13 = vpop.eup %8296 }
0x1279   :  { %3037 = vrot.lane.b32.xlu1 %v8297_v13, %s8388_s24  ;;  %v3359_v13 = vld [vmem:[%s11185_s10 + $0xc0] sm:$0xff] }
0x127a   :  { %v8299_v56 = vpop.eup %8298 }
0x127b   :  { %v3031_v0 = vadd.f32 1.0, %v8299_v56  ;;  %v3367_v56 = vld [vmem:[%s11185_s10 + $0x100] sm:$0xff] }
0x127d   :  { %8300 = vrcp.f32 %v3031_v0  ;;  %v9995_v0 = vpack.c.bf16 %v3360_v17, %v3359_v13  ;;  %v3374_v13 = vld [vmem:[%s11185_s10 + $0x138] sm:$0xff]  ;;  %v3349_v17 = vld [vmem:[%s11185_s10 + $0x70] sm:$0xff] }
0x1287   :  { %v8301_v22 = vpop.eup %8300 }
0x1288   :  { %v3035_v34 = vmul.f32 %v8301_v22, %v9684_v58  ;;  %v6081_v58 = vld [vmem:[%s11176_s1 + $0x208] sm:$0xff] }
0x12eb   :  { %v3038_v2 = vpop.permute.xlu1 %3037 }
0x12ec   :  { %v3040_v20 = vmul.f32 %v8301_v22, %v3038_v2  ;;  %v3343_v2 = vld [vmem:[%s11185_s10 + $0x40] sm:$0xff] }
0x12ee   :  { %3042 = vrot.lane.b32.xlu0 %v3040_v20, %s8386_s5  ;;  %v3344_v20 = vld [vmem:[%s11185_s10 + $0x48] sm:$0xff] }
0x1360   :  { %v3043_v21 = vpop.permute.xlu0 %3042 }
0x1361   :  { %v9831_v53 = vadd.f32 %v3043_v21, %v3035_v34  ;;  %v10009_v21 = vpack.c.bf16 %v3344_v20, %v3343_v2  ;;  %v3391_v20 = vld [vmem:[%s11185_s10 + $0x1c0] sm:$0xff] }
0x1363   :  { %8302 = vtanh.f32 %v9831_v53 }
0x136d   :  { %v8303_v39 = vpop.eup %8302 }
0x136e   :  { %3048 = vrot.lane.b32.xlu1 %v8303_v39, %s8388_s24  ;;  %v3385_v39 = vld [vmem:[%s11185_s10 + $0x190] sm:$0xff] }
0x13e0   :  { %v3049_v33 = vpop.permute.xlu1 %3048 }
0x13e1   :  { %v3051_v40 = vmul.f32 %v8301_v22, %v3049_v33  ;;  %v3368_v22 = vld [vmem:[%s11185_s10 + $0x108] sm:$0xff]  ;;  %v3361_v33 = vld [vmem:[%s11185_s10 + $0xd0] sm:$0xff] }
0x13e2   :  { %v10007_v34 = vpack.c.bf16 %v3368_v22, %v3367_v56  ;;  %v3350_v56 = vld [vmem:[%s11185_s10 + $0x78] sm:$0xff]  ;;  %v10121_v22 = vpack.c.bf16 %v3374_v13, %v3373_v61  ;;  %v3381_v61 = vld [vmem:[%s11185_s10 + $0x170] sm:$0xff] }
0x13e3   :  { %3053 = vrot.lane.b32.xlu0 %v3051_v40, %s8386_s5  ;;  %v10123_v2 = vpack.c.bf16 %v3350_v56, %v3349_v17  ;;  %v3382_v13 = vld [vmem:[%s11185_s10 + $0x178] sm:$0xff] }
0x13e4   :  { %7963 = vmatpush3.bf16.msra.mxu0 %v10007_v34  ;;  %v10202_v56 = vpack.c.bf16 %v3382_v13, %v3381_v61  ;;  %v3624_v13 = vld [vmem:[%s11184_s9 + $0x10] sm:$0xff] }
0x1455   :  { %v9840_v49 = vpop.permute.xlu0 %3053 }
0x1456   :  { %3056 = vst.msk [vmem:[#allocation3 + $0x18] sm:$0xff] %vm574_vm4, %v9840_v49  ;;  %7340 = vmatprep.subr.mxu1 %v9840_v49 }
0x1457   :  { %7341 = vmatpush3.msra.mxu1 %v9840_v49 }
0x1458   :  { %7343 = vmatmul.mubr.msk.f32.vlgmr.msra.gmra.mrb[38].mxu1 %vm380_vm2, %v6081_v58  ;;  %7929 = vmatprep.subr.bf16.mxu1 %v9915_v16  ;;  %v10023_v58 = vpack.c.bf16 %v3386_v29, %v3385_v39  ;;  %v3392_v39 = vld [vmem:[%s11185_s10 + $0x1c8] sm:$0xff] }
0x1459   :  { %7345 = vmatprep.mubr.msk.f32.mxu1 %vm380_vm2, %v6082_v27  ;;  %7931 = vmatpush3.bf16.msra.mxu1 %v9926_v50  ;;  %v3362_v27 = vld [vmem:[%s11185_s10 + $0xd8] sm:$0xff] }
0x145a   :  { %7933 = vmatprep.subr.bf16.mxu1 %v9928_v37  ;;  %7965 = vmatprep.subr.bf16.mxu0 %v10023_v58 }
0x145c   :  { %7346 = vmatmul.mubr.msk.f32.gmra.mrb[40].mxu1 %vm380_vm2, %v6083_v38  ;;  %v3369_v38 = vld [vmem:[%s11185_s10 + $0x110] sm:$0xff] }
0x145d   :  { %7348 = vmatprep.mubr.msk.f32.mxu1 %vm380_vm2, %v6084_v54  ;;  %7935 = vmatpush3.bf16.msra.mxu1 %v9938_v24  ;;  %v3370_v54 = vld [vmem:[%s11185_s10 + $0x118] sm:$0xff] }
0x145e   :  { %7937 = vmatprep.subr.bf16.mxu1 %v9951_v5 }
0x1460   :  { %7349 = vmatmul.mubr.msk.f32.gmra.mrb[42].mxu1 %vm380_vm2, %v6085_v59 }
0x1461   :  { %7351 = vmatprep.mubr.msk.f32.mxu1 %vm380_vm2, %v6086_v31  ;;  %7939 = vmatpush3.bf16.msra.mxu1 %v9956_v46  ;;  %v10035_v31 = vpack.c.bf16 %v3362_v27, %v3361_v33  ;;  %v10134_v33 = vpack.c.bf16 %v3392_v39, %v3391_v20  ;;  %v3376_v27 = vld [vmem:[%s11185_s10 + $0x148] sm:$0xff] }
0x1462   :  { %7941 = vmatprep.subr.bf16.mxu1 %v9966_v55 }
0x1464   :  { %7352 = vmatmul.mubr.msk.f32.gmra.mrb[44].mxu1 %vm380_vm2, %v6087_v3  ;;  %v10037_v3 = vpack.c.bf16 %v3370_v54, %v3369_v38 }
0x1465   :  { %7354 = vmatprep.mubr.msk.f32.mxu1 %vm380_vm2, %v6088_v25  ;;  %7943 = vmatpush3.bf16.msra.mxu1 %v9974_v62  ;;  %v3345_v25 = vld [vmem:[%s11185_s10 + $0x50] sm:$0xff] }
0x1466   :  { %7945 = vmatprep.subr.bf16.mxu1 %v9995_v0  ;;  %7967 = vmatpush3.bf16.msra.mxu0 %v10037_v3 }
0x1468   :  { %7355 = vmatmul.mubr.msk.f32.gmra.mrb[46].mxu1 %vm380_vm2, %v6089_v45  ;;  %v3346_v45 = vld [vmem:[%s11185_s10 + $0x58] sm:$0xff] }
0x1469   :  { %7357 = vmatprep.mubr.msk.f32.mxu1 %vm380_vm2, %v6090_v4  ;;  %7947 = vmatpush3.bf16.msra.mxu1 %v10009_v21  ;;  %v10047_v4 = vpack.c.bf16 %v3346_v45, %v3345_v25  ;;  %v3394_v25 = vld [vmem:[%s11185_s10 + $0x1d8] sm:$0xff] }
0x146a   :  { %7949 = vmatprep.subr.bf16.mxu1 %v10035_v31 }
0x146c   :  { %7358 = vmatmul.mubr.msk.f32.gmra.mrb[48].mxu1 %vm380_vm2, %v6091_v30  ;;  %v3387_v30 = vld [vmem:[%s11185_s10 + $0x1a0] sm:$0xff] }
0x146d   :  { %7360 = vmatprep.mubr.msk.f32.mxu1 %vm380_vm2, %v6092_v48  ;;  %v3388_v48 = vld [vmem:[%s11185_s10 + $0x1a8] sm:$0xff]  ;;  %7951 = vmatpush3.bf16.msra.mxu1 %v10047_v4 }
0x1470   :  { %7361 = vmatmul.mubr.msk.f32.gmra.mrb[50].mxu1 %vm380_vm2, %v6093_v14 }
0x1471   :  { %7363 = vmatprep.mubr.msk.f32.mxu1 %vm380_vm2, %v6094_v35  ;;  %v10058_v35 = vpack.c.bf16 %v3388_v48, %v3387_v30  ;;  %v3377_v48 = vld [vmem:[%s11185_s10 + $0x150] sm:$0xff] }
0x1473   :  { %7969 = vmatprep.subr.bf16.mxu0 %v10058_v35 }
0x1474   :  { %7364 = vmatmul.mubr.msk.f32.gmra.mrb[52].mxu1 %vm380_vm2, %v6095_v26  ;;  %v3363_v26 = vld [vmem:[%s11185_s10 + $0xe0] sm:$0xff]  ;;  %7971 = vmatpush3.bf16.msra.mxu0 %v10083_v57 }
0x1475   :  { %v10070_v44 = vpack.c.bf16 %v3364_v47, %v3363_v26  ;;  %7973 = vmatprep.subr.bf16.mxu0 %v10096_v23 }
0x1477   :  { %7953 = vmatprep.subr.bf16.mxu1 %v10070_v44 }
0x1478   :  { %7955 = vmatpush3.bf16.msra.mxu1 %v10085_v28  ;;  %7975 = vmatpush3.bf16.msra.mxu0 %v10121_v22 }
0x1479   :  { %7957 = vmatprep.subr.bf16.mxu1 %v10108_v51  ;;  %7977 = vmatprep.subr.bf16.mxu0 %v10134_v33 }
0x147c   :  { %7959 = vmatpush3.bf16.msra.mxu1 %v10123_v2 }
0x147d   :  { %7992 = vmatprep.subr.bf16.mxu1 %v8389_v18 }
0x152b   :  { %v7344_v40 = vpop.f32.mrb[38].mxu1 }
0x152c   :  { %3269 = vrot.lane.b32.xlu0 %v7344_v40, %s8386_s5  ;;  %v3188_v59 = vpop.f32.mrb[39].mxu1  ;;  %v3375_v40 = vld [vmem:[%s11185_s10 + $0x140] sm:$0xff] }
0x152d   :  { %3267 = vst.msk [vmem:[#allocation2] sm:$0xff] %vm574_vm4, %v3188_v59  ;;  %v10143_v54 = vpack.c.bf16 %v3376_v27, %v3375_v40  ;;  %v3393_v59 = vld [vmem:[%s11185_s10 + $0x1d0] sm:$0xff] }
0x152e   :  { %v10154_v30 = vpack.c.bf16 %v3394_v25, %v3393_v59 }
0x152f   :  { %v7347_v14 = vpop.f32.mrb[40].mxu1  ;;  %7979 = vmatpush3.bf16.msra.mxu0 %v10143_v54 }
0x1530   :  { %3279 = vrot.lane.b32.xlu1 %v7347_v14, %s8387_s18  ;;  %v3198_v43 = vpop.f32.mrb[41].mxu1  ;;  %v3378_v14 = vld [vmem:[%s11185_s10 + $0x158] sm:$0xff]  ;;  %7981 = vmatprep.subr.bf16.mxu0 %v10154_v30 }
0x1531   :  { %3274 = vrot.lane.b32.xlu0 %v3198_v43, %s8388_s24  ;;  %v10164_v47 = vpack.c.bf16 %v3378_v14, %v3377_v48  ;;  %v3396_v43 = vld [vmem:[%s11185_s10 + $0x1e8] sm:$0xff] }
0x1532   :  { %v10175_v32 = vpack.c.bf16 %v3396_v43, %v3395_v12 }
0x1533   :  { %v7350_v9 = vpop.f32.mrb[42].mxu1  ;;  %7983 = vmatpush3.bf16.msra.mxu0 %v10164_v47 }
0x1534   :  { %3285 = vrot.lane.b32.xlu1 %v7350_v9, %s8386_s5  ;;  %v3208_v6 = vpop.f32.mrb[43].mxu1  ;;  %v10183_v9 = vpack.c.bf16 %v3380_v10, %v3379_v42  ;;  %7985 = vmatprep.subr.bf16.mxu0 %v10175_v32 }
0x1535   :  { %3283 = vst.msk [vmem:[#allocation2 + $0x8] sm:$0xff] %vm574_vm4, %v3208_v6  ;;  %v10196_v6 = vpack.c.bf16 %v3398_v52, %v3397_v41  ;;  %v3623_v41 = vld [vmem:[%s11184_s9 + $0x8] sm:$0xff] }
0x1537   :  { %v7353_v29 = vpop.f32.mrb[44].mxu1  ;;  %7987 = vmatpush3.bf16.msra.mxu0 %v10183_v9 }
0x1538   :  { %3295 = vrot.lane.b32.xlu1 %v7353_v29, %s8387_s18  ;;  %v3218_v38 = vpop.f32.mrb[45].mxu1  ;;  %7989 = vmatprep.subr.bf16.mxu0 %v10196_v6 }
0x153b   :  { %v7356_v45 = vpop.f32.mrb[46].mxu1  ;;  %7991 = vmatpush3.bf16.msra.mxu0 %v10202_v56 }
0x153c   :  { %3290 = vrot.lane.b32.xlu1 %v3218_v38, %s8388_s24  ;;  %3301 = vrot.lane.b32.xlu0 %v7356_v45, %s8386_s5  ;;  %v3228_v26 = vpop.f32.mrb[47].mxu1 }
0x153d   :  { %3299 = vst.msk [vmem:[#allocation2 + $0x10] sm:$0xff] %vm574_vm4, %v3228_v26  ;;  %8004 = vmatprep.subr.bf16.mxu0 %v8389_v18 }
0x153f   :  { %v7359_v7 = vpop.f32.mrb[48].mxu1 }
0x1540   :  { %v3238_v15 = vpop.f32.mrb[49].mxu1 }
0x1541   :  { %3306 = vrot.lane.b32.xlu0 %v3238_v15, %s8388_s24  ;;  %v3622_v15 = vld [vmem:[%s11184_s9] sm:$0xff] }
0x1542   :  { %v10232_v52 = vpack.c.bf16 %v3623_v41, %v3622_v15 }
0x1543   :  { %v7362_v17 = vpop.f32.mrb[50].mxu1 }
0x1544   :  { %v3248_v20 = vpop.f32.mrb[51].mxu1 }
0x1545   :  { %3315 = vst.msk [vmem:[#allocation2 + $0x18] sm:$0xff] %vm574_vm4, %v3248_v20  ;;  %3317 = vrot.lane.b32.xlu0 %v7362_v17, %s8386_s5  ;;  %v3625_v17 = vld [vmem:[%s11184_s9 + $0x18] sm:$0xff] }
0x1547   :  { %v7365_v39 = vpop.f32.mrb[52].mxu1 }
0x1548   :  { %v3258_v29 = vpop.f32.mrb[53].mxu1 }
0x1549   :  { %3311 = vrot.lane.b32.xlu0 %v7359_v7, %s8387_s18  ;;  %3322 = vrot.lane.b32.xlu1 %v3258_v29, %s8388_s24  ;;  %v3540_v29 = vld [vmem:[%s11183_s8] sm:$0xff] }
0x154d   :  { %3327 = vrot.lane.b32.xlu1 %v7365_v39, %s8387_s18  ;;  %v10241_v39 = vpack.c.bf16 %v3625_v17, %v3624_v13 }
0x159e   :  { %v3270_v40 = vpop.permute.xlu0 %3269 }
0x159f   :  { %3272 = vst.msk [vmem:[#allocation2] sm:$0xff] %vm580_vm5, %v3270_v40  ;;  %v3541_v40 = vld [vmem:[%s11183_s8 + $0x8] sm:$0xff] }
0x15a2   :  { %v3280_v27 = vpop.permute.xlu1 %3279 }
0x15a3   :  { %v3275_v38 = vpop.permute.xlu0 %3274 }
0x15a4   :  { %3277 = vst.msk [vmem:[#allocation2] sm:$0xff] %vm586_vm6, %v3275_v38  ;;  %v10258_v38 = vpack.c.bf16 %v3541_v40, %v3540_v29 }
0x15a5   :  { %3282 = vst.msk [vmem:[#allocation2] sm:$0xff] %vm592_vm7, %v3280_v27  ;;  %v3542_v27 = vld [vmem:[%s11183_s8 + $0x10] sm:$0xff] }
0x15a6   :  { %v3286_v59 = vpop.permute.xlu1 %3285 }
0x15a7   :  { %3288 = vst.msk [vmem:[#allocation2 + $0x8] sm:$0xff] %vm580_vm5, %v3286_v59  ;;  %v3543_v59 = vld [vmem:[%s11183_s8 + $0x18] sm:$0xff] }
0x15aa   :  { %v3296_v25 = vpop.permute.xlu1 %3295 }
0x15ac   :  { %v3331_v43 = vld [vmem:[#allocation2] sm:$0xff] }
0x15ae   :  { %v3291_v45 = vpop.permute.xlu1 %3290  ;;  %v3302_v48 = vpop.permute.xlu0 %3301 }
0x15af   :  { %3293 = vst.msk [vmem:[#allocation2 + $0x8] sm:$0xff] %vm586_vm6, %v3291_v45  ;;  %v3545_v45 = vld [vmem:[%s11183_s8 + $0x28] sm:$0xff] }
0x15b0   :  { %3304 = vst.msk [vmem:[#allocation2 + $0x10] sm:$0xff] %vm580_vm5, %v3302_v48 }
0x15b1   :  { %3298 = vst.msk [vmem:[#allocation2 + $0x8] sm:$0xff] %vm592_vm7, %v3296_v25  ;;  %v3544_v25 = vld [vmem:[%s11183_s8 + $0x20] sm:$0xff] }
0x15b2   :  { %v10275_v48 = vpack.c.bf16 %v3545_v45, %v3544_v25  ;;  %v6118_v25 = vld [vmem:[%s11176_s1 + $0x298] sm:$0xff]  ;;  %v6119_v45 = vld [vmem:[%s11176_s1 + $0x2a0] sm:$0xff] }
0x15b3   :  { %v3307_v14 = vpop.permute.xlu0 %3306 }
0x15b4   :  { %3309 = vst.msk [vmem:[#allocation2 + $0x10] sm:$0xff] %vm586_vm6, %v3307_v14  ;;  %v3546_v14 = vld [vmem:[%s11183_s8 + $0x30] sm:$0xff] }
0x15b7   :  { %v3318_v26 = vpop.permute.xlu0 %3317 }
0x15b8   :  { %v3332_v12 = vld [vmem:[#allocation2 + $0x8] sm:$0xff]  ;;  %3320 = vst.msk [vmem:[#allocation2 + $0x18] sm:$0xff] %vm580_vm5, %v3318_v26  ;;  %v3547_v26 = vld [vmem:[%s11183_s8 + $0x38] sm:$0xff] }
0x15b9   :  { %3463 = vmatprep.mubr.f32.mxu1 %v3332_v12  ;;  %v10285_v12 = vpack.c.bf16 %v3547_v26, %v3546_v14 }
0x15ba   :  { %3464 = vmatmul.mubr.f32.vlgmr.msra.gmra.mrb[54].mxu1 %v3331_v43 }
0x15bb   :  { %7382 = vmatprep.mubr.msk.f32.mxu1 %vm8390_vm8, %v8391_v63  ;;  %v3312_v7 = vpop.permute.xlu0 %3311  ;;  %v3323_v42 = vpop.permute.xlu1 %3322  ;;  %7994 = vmatpush3.bf16.msra.mxu1 %v10258_v38 }
0x15bc   :  { %3314 = vst.msk [vmem:[#allocation2 + $0x10] sm:$0xff] %vm592_vm7, %v3312_v7  ;;  %7995 = vmatprep.subr.bf16.mxu1 %v8389_v18 }
0x15bd   :  { %3325 = vst.msk [vmem:[#allocation2 + $0x18] sm:$0xff] %vm586_vm6, %v3323_v42 }
0x15bf   :  { %v3328_v10 = vpop.permute.xlu1 %3327 }
0x15c0   :  { %3330 = vst.msk [vmem:[#allocation2 + $0x18] sm:$0xff] %vm592_vm7, %v3328_v10 }
0x15c3   :  { %v3333_v20 = vld [vmem:[#allocation2 + $0x10] sm:$0xff] }
0x15c7   :  { %v3334_v61 = vld [vmem:[#allocation2 + $0x18] sm:$0xff] }
0x15c8   :  { %3533 = vmatprep.mubr.f32.mxu0 %v3334_v61 }
0x15c9   :  { %3534 = vmatmul.mubr.f32.vlgmr.msra.gmra.mrb[74].mxu0 %v3333_v20 }
0x15ca   :  { %8006 = vmatpush3.bf16.msra.mxu0 %v10232_v52  ;;  %7393 = vmatprep.mubr.msk.f32.mxu0 %vm8390_vm8, %v8391_v63 }
0x15cb   :  { %8007 = vmatprep.subr.bf16.mxu0 %v8389_v18 }
0x15ce   :  { %8009 = vmatpush3.bf16.msra.mxu0 %v10241_v39 }
0x15d1   :  { %7394 = vmatmul.mubr.msk.f32.vlgmr.msra.gmra.mrb[76].mxu0 %vm574_vm4, %v9840_v49  ;;  %v10264_v49 = vpack.c.bf16 %v3543_v59, %v3542_v27  ;;  %v6117_v59 = vld [vmem:[%s11176_s1 + $0x290] sm:$0xff] }
0x15d3   :  { %7997 = vmatpush3.bf16.msra.mxu1 %v10264_v49 }
0x15d4   :  { %7998 = vmatprep.subr.bf16.mxu1 %v8389_v18 }
0x15d7   :  { %8000 = vmatpush3.bf16.msra.mxu1 %v10275_v48 }
0x15d8   :  { %8001 = vmatprep.subr.bf16.mxu1 %v8389_v18 }
0x15db   :  { %8003 = vmatpush3.bf16.msra.mxu1 %v10285_v12 }
0x15dc   :  { %8043 = vmatprep.subr.bf16.mxu1 %v9984_v19 }
0x168d   :  { %v6707_v43 = vpop.f32.mrb[54].mxu1 }
0x168e   :  { %v6708_v7 = vpop.f32.mrb[55].mxu1 }
0x168f   :  { %v6709_v42 = vadd.f32 %v6708_v7, %v6707_v43 }
0x1691   :  { %v3466_v41 = vadd.f32 %v9823_v36, %v6709_v42 }
0x169c   :  { %v6742_v10 = vpop.f32.mrb[74].mxu0 }
0x169d   :  { %v6743_v15 = vpop.f32.mrb[75].mxu0 }
0x169e   :  { %v6744_v61 = vadd.f32 %v6743_v15, %v6742_v10 }
0x16a0   :  { %v3536_v13 = vadd.f32 %v6744_v61, %v3466_v41 }
0x16a2   :  { %v3539_v17 = vmax.f32 %v3536_v13, 0.0 }
0x16a4   :  { %v3694_v20 = vpop.f32.mrb[76].mxu0  ;;  %7383 = vmatmul.mubr.msk.f32.vlgmr.msra.gmra.mrb[56].mxu1 %vm225_vm3, %v3539_v17 }
0x16a5   :  { %v7395_v29 = vpop.f32.mrb[77].mxu0  ;;  %8045 = vmatpush3.bf16.msra.mxu1 %v10007_v34 }
0x16a6   :  { %8047 = vmatprep.subr.bf16.mxu1 %v10023_v58 }
0x16a9   :  { %8049 = vmatpush3.bf16.msra.mxu1 %v10037_v3 }
0x16aa   :  { %8051 = vmatprep.subr.bf16.mxu1 %v10058_v35 }
0x16ad   :  { %8053 = vmatpush3.bf16.msra.mxu1 %v10083_v57 }
0x16ae   :  { %8055 = vmatprep.subr.bf16.mxu1 %v10096_v23 }
0x16b1   :  { %8057 = vmatpush3.bf16.msra.mxu1 %v10121_v22 }
0x16b2   :  { %8059 = vmatprep.subr.bf16.mxu1 %v10134_v33 }
0x16b5   :  { %8061 = vmatpush3.bf16.msra.mxu1 %v10143_v54 }
0x16b6   :  { %8063 = vmatprep.subr.bf16.mxu1 %v10154_v30 }
0x16b9   :  { %8065 = vmatpush3.bf16.msra.mxu1 %v10164_v47 }
0x16ba   :  { %8067 = vmatprep.subr.bf16.mxu1 %v10175_v32 }
0x16bd   :  { %8069 = vmatpush3.bf16.msra.mxu1 %v10183_v9 }
0x16be   :  { %8071 = vmatprep.subr.bf16.mxu1 %v10196_v6  ;;  %v6115_v6 = vld [vmem:[%s11176_s1 + $0x280] sm:$0xff] }
0x16bf   :  { %7398 = vmatprep.mubr.msk.f32.mxu0 %vm380_vm2, %v6115_v6 }
0x16c1   :  { %8073 = vmatpush3.bf16.msra.mxu1 %v10202_v56 }
0x16c2   :  { %8086 = vmatprep.subr.bf16.mxu1 %v8389_v18 }
0x1777   :  { %v3617_v19 = vpop.f32.mrb[56].mxu1 }
0x1778   :  { %v3621_v34 = vadd.f32 %v3617_v19, %v8956_v1  ;;  %v7384_v58 = vpop.f32.mrb[57].mxu1 }
0x177a   :  { %v3698_v3 = vadd.f32 %v3694_v20, %v3621_v34 }
0x177c   :  { %8304 = vtanh.f32 %v3698_v3  ;;  %v6114_v57 = vmul.f32 -1.442695, %v3698_v3 }
0x177e   :  { %8306 = vpow2.f32 %v6114_v57 }
0x1786   :  { %v8305_v35 = vpop.eup %8304 }
0x1787   :  { %3708 = vrot.lane.b32.xlu1 %v8305_v35, %s8388_s24 }
0x1788   :  { %v8307_v23 = vpop.eup %8306 }
0x1789   :  { %v3702_v22 = vadd.f32 1.0, %v8307_v23 }
0x178b   :  { %8308 = vrcp.f32 %v3702_v22 }
0x1795   :  { %v8309_v33 = vpop.eup %8308 }
0x1796   :  { %v3706_v47 = vmul.f32 %v8309_v33, %v9831_v53  ;;  %v6116_v53 = vld [vmem:[%s11176_s1 + $0x288] sm:$0xff] }
0x17f9   :  { %v3709_v54 = vpop.permute.xlu1 %3708 }
0x17fa   :  { %v3711_v30 = vmul.f32 %v8309_v33, %v3709_v54 }
0x17fc   :  { %3713 = vrot.lane.b32.xlu0 %v3711_v30, %s8386_s5 }
0x186e   :  { %v3714_v32 = vpop.permute.xlu0 %3713 }
0x186f   :  { %v10311_v1 = vadd.f32 %v3714_v32, %v3706_v47 }
0x1871   :  { %8310 = vtanh.f32 %v10311_v1 }
0x187b   :  { %v8311_v9 = vpop.eup %8310 }
0x187c   :  { %3719 = vrot.lane.b32.xlu1 %v8311_v9, %s8388_s24 }
0x18ee   :  { %v3720_v56 = vpop.permute.xlu1 %3719 }
0x18ef   :  { %v3722_v40 = vmul.f32 %v8309_v33, %v3720_v56 }
0x18f1   :  { %3724 = vrot.lane.b32.xlu0 %v3722_v40, %s8386_s5 }
0x1963   :  { %v10320_v27 = vpop.permute.xlu0 %3724 }
0x1964   :  { %3727 = vst.msk [vmem:[#allocation3 + $0x20] sm:$0xff] %vm574_vm4, %v10320_v27  ;;  %7396 = vmatprep.subr.mxu0 %v10320_v27 }
0x1965   :  { %7397 = vmatpush3.msra.mxu0 %v10320_v27 }
0x1966   :  { %7399 = vmatmul.mubr.msk.f32.vlgmr.msra.gmra.mrb[78].mxu0 %vm380_vm2, %v6116_v53  ;;  %8011 = vmatprep.subr.bf16.mxu0 %v9915_v16  ;;  %v6120_v16 = vld [vmem:[%s11176_s1 + $0x2a8] sm:$0xff] }
0x1967   :  { %7401 = vmatprep.mubr.msk.f32.mxu0 %vm380_vm2, %v6117_v59  ;;  %8013 = vmatpush3.bf16.msra.mxu0 %v9926_v50  ;;  %v6121_v50 = vld [vmem:[%s11176_s1 + $0x2b0] sm:$0xff] }
0x1968   :  { %8015 = vmatprep.subr.bf16.mxu0 %v9928_v37  ;;  %v6122_v37 = vld [vmem:[%s11176_s1 + $0x2b8] sm:$0xff] }
0x196a   :  { %7402 = vmatmul.mubr.msk.f32.gmra.mrb[80].mxu0 %vm380_vm2, %v6118_v25 }
0x196b   :  { %7404 = vmatprep.mubr.msk.f32.mxu0 %vm380_vm2, %v6119_v45  ;;  %8017 = vmatpush3.bf16.msra.mxu0 %v9938_v24  ;;  %v6123_v24 = vld [vmem:[%s11176_s1 + $0x2c0] sm:$0xff] }
0x196c   :  { %8019 = vmatprep.subr.bf16.mxu0 %v9951_v5  ;;  %v6124_v5 = vld [vmem:[%s11176_s1 + $0x2c8] sm:$0xff] }
0x196e   :  { %7405 = vmatmul.mubr.msk.f32.gmra.mrb[82].mxu0 %vm380_vm2, %v6120_v16 }
0x196f   :  { %7407 = vmatprep.mubr.msk.f32.mxu0 %vm380_vm2, %v6121_v50  ;;  %8021 = vmatpush3.bf16.msra.mxu0 %v9956_v46  ;;  %v6125_v46 = vld [vmem:[%s11176_s1 + $0x2d0] sm:$0xff] }
0x1970   :  { %8023 = vmatprep.subr.bf16.mxu0 %v9966_v55  ;;  %v6126_v55 = vld [vmem:[%s11176_s1 + $0x2d8] sm:$0xff] }
0x1972   :  { %7408 = vmatmul.mubr.msk.f32.gmra.mrb[84].mxu0 %vm380_vm2, %v6122_v37 }
0x1973   :  { %7410 = vmatprep.mubr.msk.f32.mxu0 %vm380_vm2, %v6123_v24  ;;  %8025 = vmatpush3.bf16.msra.mxu0 %v9974_v62  ;;  %v6127_v62 = vld [vmem:[%s11176_s1 + $0x2e0] sm:$0xff] }
0x1974   :  { %8027 = vmatprep.subr.bf16.mxu0 %v9995_v0  ;;  %v6128_v0 = vld [vmem:[%s11176_s1 + $0x2e8] sm:$0xff] }
0x1976   :  { %7411 = vmatmul.mubr.msk.f32.gmra.mrb[86].mxu0 %vm380_vm2, %v6124_v5 }
0x1977   :  { %7413 = vmatprep.mubr.msk.f32.mxu0 %vm380_vm2, %v6125_v46  ;;  %8029 = vmatpush3.bf16.msra.mxu0 %v10009_v21  ;;  %v6129_v21 = vld [vmem:[%s11176_s1 + $0x2f0] sm:$0xff] }
0x1978   :  { %8031 = vmatprep.subr.bf16.mxu0 %v10035_v31  ;;  %v6130_v31 = vld [vmem:[%s11176_s1 + $0x2f8] sm:$0xff] }
0x197a   :  { %7414 = vmatmul.mubr.msk.f32.gmra.mrb[88].mxu0 %vm380_vm2, %v6126_v55 }
0x197b   :  { %7416 = vmatprep.mubr.msk.f32.mxu0 %vm380_vm2, %v6127_v62  ;;  %8033 = vmatpush3.bf16.msra.mxu0 %v10047_v4 }
0x197c   :  { %8035 = vmatprep.subr.bf16.mxu0 %v10070_v44 }
0x197e   :  { %7417 = vmatmul.mubr.msk.f32.gmra.mrb[90].mxu0 %vm380_vm2, %v6128_v0 }
0x197f   :  { %7419 = vmatprep.mubr.msk.f32.mxu0 %vm380_vm2, %v6129_v21  ;;  %8037 = vmatpush3.bf16.msra.mxu0 %v10085_v28 }
0x1980   :  { %8039 = vmatprep.subr.bf16.mxu0 %v10108_v51 }
0x1982   :  { %7420 = vmatmul.mubr.msk.f32.gmra.mrb[92].mxu0 %vm380_vm2, %v6130_v31  ;;  %v6150_v31 = vld [vmem:[%s11176_s1 + $0x300] sm:$0xff] }
0x1983   :  { %8041 = vmatpush3.bf16.msra.mxu0 %v10123_v2 }
0x1984   :  { %8074 = vmatprep.subr.bf16.mxu0 %v8389_v18 }
0x1a39   :  { %v7400_v4 = vpop.f32.mrb[78].mxu0 }
0x1a3a   :  { %3940 = vrot.lane.b32.xlu0 %v7400_v4, %s8386_s5  ;;  %v3859_v44 = vpop.f32.mrb[79].mxu0 }
0x1a3b   :  { %3938 = vst.msk [vmem:[#allocation2] sm:$0xff] %vm574_vm4, %v3859_v44 }
0x1a3d   :  { %v7403_v14 = vpop.f32.mrb[80].mxu0 }
0x1a3e   :  { %3950 = vrot.lane.b32.xlu1 %v7403_v14, %s8387_s18  ;;  %v3869_v26 = vpop.f32.mrb[81].mxu0 }
0x1a3f   :  { %3945 = vrot.lane.b32.xlu0 %v3869_v26, %s8388_s24  ;;  %v6152_v26 = vld [vmem:[%s11176_s1 + $0x310] sm:$0xff] }
0x1a41   :  { %v7406_v28 = vpop.f32.mrb[82].mxu0 }
0x1a42   :  { %3956 = vrot.lane.b32.xlu1 %v7406_v28, %s8386_s5  ;;  %v3879_v51 = vpop.f32.mrb[83].mxu0  ;;  %v6153_v28 = vld [vmem:[%s11176_s1 + $0x318] sm:$0xff] }
0x1a43   :  { %3954 = vst.msk [vmem:[#allocation2 + $0x8] sm:$0xff] %vm574_vm4, %v3879_v51  ;;  %v6154_v51 = vld [vmem:[%s11176_s1 + $0x320] sm:$0xff] }
0x1a45   :  { %v7409_v2 = vpop.f32.mrb[84].mxu0 }
0x1a46   :  { %3966 = vrot.lane.b32.xlu1 %v7409_v2, %s8387_s18  ;;  %v3889_v43 = vpop.f32.mrb[85].mxu0  ;;  %v6155_v2 = vld [vmem:[%s11176_s1 + $0x328] sm:$0xff] }
0x1a49   :  { %v7412_v7 = vpop.f32.mrb[86].mxu0 }
0x1a4a   :  { %3961 = vrot.lane.b32.xlu1 %v3889_v43, %s8388_s24  ;;  %3972 = vrot.lane.b32.xlu0 %v7412_v7, %s8386_s5  ;;  %v3899_v42 = vpop.f32.mrb[87].mxu0  ;;  %v6156_v43 = vld [vmem:[%s11176_s1 + $0x330] sm:$0xff]  ;;  %v6157_v7 = vld [vmem:[%s11176_s1 + $0x338] sm:$0xff] }
0x1a4b   :  { %3970 = vst.msk [vmem:[#allocation2 + $0x10] sm:$0xff] %vm574_vm4, %v3899_v42  ;;  %v6158_v42 = vld [vmem:[%s11176_s1 + $0x340] sm:$0xff] }
0x1a4d   :  { %v7415_v10 = vpop.f32.mrb[88].mxu0 }
0x1a4e   :  { %v3909_v15 = vpop.f32.mrb[89].mxu0 }
0x1a4f   :  { %3977 = vrot.lane.b32.xlu0 %v3909_v15, %s8388_s24  ;;  %v6160_v15 = vld [vmem:[%s11176_s1 + $0x350] sm:$0xff] }
0x1a51   :  { %v7418_v41 = vpop.f32.mrb[90].mxu0 }
0x1a52   :  { %v3919_v61 = vpop.f32.mrb[91].mxu0 }
0x1a53   :  { %3986 = vst.msk [vmem:[#allocation2 + $0x18] sm:$0xff] %vm574_vm4, %v3919_v61  ;;  %3988 = vrot.lane.b32.xlu0 %v7418_v41, %s8386_s5  ;;  %v6161_v41 = vld [vmem:[%s11176_s1 + $0x358] sm:$0xff]  ;;  %v6162_v61 = vld [vmem:[%s11176_s1 + $0x360] sm:$0xff] }
0x1a55   :  { %v7421_v13 = vpop.f32.mrb[92].mxu0 }
0x1a56   :  { %v3929_v17 = vpop.f32.mrb[93].mxu0 }
0x1a57   :  { %3982 = vrot.lane.b32.xlu0 %v7415_v10, %s8387_s18  ;;  %3993 = vrot.lane.b32.xlu1 %v3929_v17, %s8388_s24  ;;  %v6159_v10 = vld [vmem:[%s11176_s1 + $0x348] sm:$0xff]  ;;  %v6164_v17 = vld [vmem:[%s11176_s1 + $0x370] sm:$0xff] }
0x1a5b   :  { %3998 = vrot.lane.b32.xlu1 %v7421_v13, %s8387_s18  ;;  %v6163_v13 = vld [vmem:[%s11176_s1 + $0x368] sm:$0xff] }
0x1aac   :  { %v3941_v20 = vpop.permute.xlu0 %3940 }
0x1aad   :  { %3943 = vst.msk [vmem:[#allocation2] sm:$0xff] %vm580_vm5, %v3941_v20  ;;  %v6165_v20 = vld [vmem:[%s11176_s1 + $0x378] sm:$0xff] }
0x1ab0   :  { %v3951_v29 = vpop.permute.xlu1 %3950 }
0x1ab1   :  { %v3946_v19 = vpop.permute.xlu0 %3945 }
0x1ab2   :  { %3948 = vst.msk [vmem:[#allocation2] sm:$0xff] %vm586_vm6, %v3946_v19  ;;  %v4694_v19 = vld [vmem:[%s11185_s10 + $0x88] sm:$0xff] }
0x1ab3   :  { %3953 = vst.msk [vmem:[#allocation2] sm:$0xff] %vm592_vm7, %v3951_v29  ;;  %v4693_v29 = vld [vmem:[%s11185_s10 + $0x80] sm:$0xff] }
0x1ab4   :  { %v3957_v34 = vpop.permute.xlu1 %3956 }
0x1ab5   :  { %3959 = vst.msk [vmem:[#allocation2 + $0x8] sm:$0xff] %vm580_vm5, %v3957_v34  ;;  %v4677_v34 = vld [vmem:[%s11185_s10] sm:$0xff] }
0x1ab8   :  { %v3967_v58 = vpop.permute.xlu1 %3966 }
0x1aba   :  { %v4002_v33 = vld [vmem:[#allocation2] sm:$0xff] }
0x1abc   :  { %v3962_v3 = vpop.permute.xlu1 %3961  ;;  %v3973_v35 = vpop.permute.xlu0 %3972 }
0x1abd   :  { %3964 = vst.msk [vmem:[#allocation2 + $0x8] sm:$0xff] %vm586_vm6, %v3962_v3  ;;  %v4678_v3 = vld [vmem:[%s11185_s10 + $0x8] sm:$0xff] }
0x1abe   :  { %3975 = vst.msk [vmem:[#allocation2 + $0x10] sm:$0xff] %vm580_vm5, %v3973_v35  ;;  %v4695_v35 = vld [vmem:[%s11185_s10 + $0x90] sm:$0xff] }
0x1abf   :  { %3969 = vst.msk [vmem:[#allocation2 + $0x8] sm:$0xff] %vm592_vm7, %v3967_v58  ;;  %v10537_v58 = vpack.c.bf16 %v4694_v19, %v4693_v29  ;;  %v4714_v19 = vld [vmem:[%s11185_s10 + $0x128] sm:$0xff] }
0x1ac1   :  { %v3978_v57 = vpop.permute.xlu0 %3977 }
0x1ac2   :  { %3980 = vst.msk [vmem:[#allocation2 + $0x10] sm:$0xff] %vm586_vm6, %v3978_v57  ;;  %v4696_v57 = vld [vmem:[%s11185_s10 + $0x98] sm:$0xff] }
0x1ac5   :  { %v3989_v23 = vpop.permute.xlu0 %3988 }
0x1ac6   :  { %v4003_v22 = vld [vmem:[#allocation2 + $0x8] sm:$0xff]  ;;  %3991 = vst.msk [vmem:[#allocation2 + $0x18] sm:$0xff] %vm580_vm5, %v3989_v23  ;;  %v10548_v23 = vpack.c.bf16 %v4678_v3, %v4677_v34  ;;  %v4689_v34 = vld [vmem:[%s11185_s10 + $0x60] sm:$0xff] }
0x1ac7   :  { %4134 = vmatprep.mubr.f32.mxu0 %v4003_v22  ;;  %v10550_v22 = vpack.c.bf16 %v4696_v57, %v4695_v35  ;;  %v4690_v3 = vld [vmem:[%s11185_s10 + $0x68] sm:$0xff] }
0x1ac8   :  { %4135 = vmatmul.mubr.f32.vlgmr.msra.gmra.mrb[94].mxu0 %v4002_v33  ;;  %v4679_v33 = vld [vmem:[%s11185_s10 + $0x10] sm:$0xff]  ;;  %v10707_v57 = vpack.c.bf16 %v4690_v3, %v4689_v34 }
0x1ac9   :  { %8076 = vmatpush3.bf16.msra.mxu0 %v10258_v38  ;;  %7438 = vmatprep.mubr.msk.f32.mxu0 %vm8390_vm8, %v8391_v63  ;;  %v3983_v54 = vpop.permute.xlu0 %3982  ;;  %v3994_v30 = vpop.permute.xlu1 %3993 }
0x1aca   :  { %8077 = vmatprep.subr.bf16.mxu0 %v8389_v18  ;;  %3985 = vst.msk [vmem:[#allocation2 + $0x10] sm:$0xff] %vm592_vm7, %v3983_v54  ;;  %v4680_v54 = vld [vmem:[%s11185_s10 + $0x18] sm:$0xff] }
0x1acb   :  { %3996 = vst.msk [vmem:[#allocation2 + $0x18] sm:$0xff] %vm586_vm6, %v3994_v30  ;;  %v10560_v30 = vpack.c.bf16 %v4680_v54, %v4679_v33  ;;  %v4731_v33 = vld [vmem:[%s11185_s10 + $0x1b0] sm:$0xff]  ;;  %v4732_v54 = vld [vmem:[%s11185_s10 + $0x1b8] sm:$0xff] }
0x1acd   :  { %8079 = vmatpush3.bf16.msra.mxu0 %v10264_v49  ;;  %v3999_v47 = vpop.permute.xlu1 %3998 }
0x1ace   :  { %8080 = vmatprep.subr.bf16.mxu0 %v8389_v18  ;;  %4001 = vst.msk [vmem:[#allocation2 + $0x18] sm:$0xff] %vm592_vm7, %v3999_v47  ;;  %v4697_v47 = vld [vmem:[%s11185_s10 + $0xa0] sm:$0xff] }
0x1ad1   :  { %8082 = vmatpush3.bf16.msra.mxu0 %v10275_v48  ;;  %v4004_v32 = vld [vmem:[#allocation2 + $0x10] sm:$0xff] }
0x1ad2   :  { %8083 = vmatprep.subr.bf16.mxu0 %v8389_v18 }
0x1ad5   :  { %8085 = vmatpush3.bf16.msra.mxu0 %v10285_v12  ;;  %v4005_v38 = vld [vmem:[#allocation2 + $0x18] sm:$0xff] }
0x1ad6   :  { %4204 = vmatprep.mubr.f32.mxu1 %v4005_v38  ;;  %v4698_v38 = vld [vmem:[%s11185_s10 + $0xa8] sm:$0xff] }
0x1ad7   :  { %4205 = vmatmul.mubr.f32.vlgmr.msra.gmra.mrb[58].mxu1 %v4004_v32  ;;  %v4681_v32 = vld [vmem:[%s11185_s10 + $0x20] sm:$0xff] }
0x1ad8   :  { %8088 = vmatpush3.bf16.msra.mxu1 %v10232_v52  ;;  %7449 = vmatprep.mubr.msk.f32.mxu1 %vm8390_vm8, %v8391_v63 }
0x1ad9   :  { %8089 = vmatprep.subr.bf16.mxu1 %v8389_v18 }
0x1adc   :  { %8091 = vmatpush3.bf16.msra.mxu1 %v10241_v39 }
0x1adf   :  { %7450 = vmatmul.mubr.msk.f32.vlgmr.msra.gmra.mrb[60].mxu1 %vm574_vm4, %v10320_v27 }
0x1ae0   :  { %7454 = vmatprep.mubr.msk.f32.mxu1 %vm380_vm2, %v6150_v31 }
0x1b9b   :  { %v6808_v49 = vpop.f32.mrb[94].mxu0 }
0x1b9c   :  { %v6809_v48 = vpop.f32.mrb[95].mxu0 }
0x1b9d   :  { %v6810_v9 = vadd.f32 %v6809_v48, %v6808_v49  ;;  %v10573_v49 = vpack.c.bf16 %v4698_v38, %v4697_v47  ;;  %v4682_v48 = vld [vmem:[%s11185_s10 + $0x28] sm:$0xff]  ;;  %v10718_v38 = vpack.c.bf16 %v4732_v54, %v4731_v33  ;;  %v4739_v33 = vld [vmem:[%s11185_s10 + $0x1f0] sm:$0xff]  ;;  %v4740_v54 = vld [vmem:[%s11185_s10 + $0x1f8] sm:$0xff] }
0x1b9f   :  { %v4137_v56 = vadd.f32 %v9823_v36, %v6810_v9  ;;  %v10578_v9 = vpack.c.bf16 %v4682_v48, %v4681_v32  ;;  %v4707_v32 = vld [vmem:[%s11185_s10 + $0xf0] sm:$0xff]  ;;  %v4708_v48 = vld [vmem:[%s11185_s10 + $0xf8] sm:$0xff] }
0x1baa   :  { %v6843_v12 = vpop.f32.mrb[58].mxu1 }
0x1bab   :  { %v6844_v6 = vpop.f32.mrb[59].mxu1 }
0x1bac   :  { %v6845_v40 = vadd.f32 %v6844_v6, %v6843_v12  ;;  %v4699_v12 = vld [vmem:[%s11185_s10 + $0xb0] sm:$0xff]  ;;  %v4700_v6 = vld [vmem:[%s11185_s10 + $0xb8] sm:$0xff] }
0x1bae   :  { %v4207_v53 = vadd.f32 %v6845_v40, %v4137_v56  ;;  %v10588_v56 = vpack.c.bf16 %v4700_v6, %v4699_v12  ;;  %v4683_v40 = vld [vmem:[%s11185_s10 + $0x30] sm:$0xff] }
0x1baf   :  { %v4715_v12 = vld [vmem:[%s11185_s10 + $0x130] sm:$0xff] }
0x1bb0   :  { %v4210_v52 = vmax.f32 %v4207_v53, 0.0  ;;  %v4684_v53 = vld [vmem:[%s11185_s10 + $0x38] sm:$0xff] }
0x1bb2   :  { %v4365_v59 = vpop.f32.mrb[60].mxu1  ;;  %7439 = vmatmul.mubr.msk.f32.vlgmr.msra.gmra.mrb[96].mxu0 %vm225_vm3, %v4210_v52  ;;  %v10596_v52 = vpack.c.bf16 %v4684_v53, %v4683_v40  ;;  %v10730_v40 = vpack.c.bf16 %v4708_v48, %v4707_v32  ;;  %v4716_v53 = vld [vmem:[%s11185_s10 + $0x138] sm:$0xff]  ;;  %v10818_v32 = vpack.c.bf16 %v4740_v54, %v4739_v33  ;;  %v4966_v33 = vld [vmem:[%s11184_s9 + $0x10] sm:$0xff] }
0x1bb3   :  { %v7451_v25 = vpop.f32.mrb[61].mxu1  ;;  %v4724_v48 = vld [vmem:[%s11185_s10 + $0x178] sm:$0xff] }
0x1bb4   :  { %v4726_v25 = vld [vmem:[%s11185_s10 + $0x188] sm:$0xff]  ;;  %v4967_v54 = vld [vmem:[%s11184_s9 + $0x18] sm:$0xff] }
0x1c85   :  { %v4288_v45 = vpop.f32.mrb[96].mxu0 }
0x1c86   :  { %v4292_v39 = vadd.f32 %v4288_v45, %v8953_v60  ;;  %v7440_v16 = vpop.f32.mrb[97].mxu0 }
0x1c87   :  { %v4702_v16 = vld [vmem:[%s11185_s10 + $0xc8] sm:$0xff] }
0x1c88   :  { %v4369_v50 = vadd.f32 %v4365_v59, %v4292_v39  ;;  %v4725_v59 = vld [vmem:[%s11185_s10 + $0x180] sm:$0xff] }
0x1c89   :  { %v10606_v45 = vpack.c.bf16 %v4726_v25, %v4725_v59  ;;  %v4701_v39 = vld [vmem:[%s11185_s10 + $0xc0] sm:$0xff]  ;;  %v4691_v59 = vld [vmem:[%s11185_s10 + $0x70] sm:$0xff]  ;;  %v4692_v25 = vld [vmem:[%s11185_s10 + $0x78] sm:$0xff] }
0x1c8a   :  { %8312 = vtanh.f32 %v4369_v50  ;;  %v6149_v37 = vmul.f32 -1.442695, %v4369_v50  ;;  %v4709_v50 = vld [vmem:[%s11185_s10 + $0x100] sm:$0xff] }
0x1c8b   :  { %8125 = vmatprep.subr.bf16.mxu0 %v10606_v45 }
0x1c8c   :  { %8314 = vpow2.f32 %v6149_v37  ;;  %v4710_v37 = vld [vmem:[%s11185_s10 + $0x108] sm:$0xff] }
0x1c94   :  { %v8313_v27 = vpop.eup %8312 }
0x1c95   :  { %4379 = vrot.lane.b32.xlu1 %v8313_v27, %s8388_s24  ;;  %v10617_v27 = vpack.c.bf16 %v4702_v16, %v4701_v39  ;;  %v10743_v39 = vpack.c.bf16 %v4716_v53, %v4715_v12  ;;  %v10745_v16 = vpack.c.bf16 %v4692_v25, %v4691_v59 }
0x1c96   :  { %v8315_v24 = vpop.eup %8314 }
0x1c97   :  { %v4373_v36 = vadd.f32 1.0, %v8315_v24  ;;  %v4685_v24 = vld [vmem:[%s11185_s10 + $0x40] sm:$0xff] }
0x1c99   :  { %8316 = vrcp.f32 %v4373_v36  ;;  %v4686_v36 = vld [vmem:[%s11185_s10 + $0x48] sm:$0xff] }
0x1ca3   :  { %v8317_v5 = vpop.eup %8316 }
0x1ca4   :  { %v4377_v62 = vmul.f32 %v8317_v5, %v10311_v1  ;;  %v6151_v1 = vld [vmem:[%s11176_s1 + $0x308] sm:$0xff] }
0x1d07   :  { %v4380_v46 = vpop.permute.xlu1 %4379 }
0x1d08   :  { %v4382_v55 = vmul.f32 %v8317_v5, %v4380_v46  ;;  %v10631_v46 = vpack.c.bf16 %v4686_v36, %v4685_v24 }
0x1d0a   :  { %4384 = vrot.lane.b32.xlu0 %v4382_v55, %s8386_s5  ;;  %v4727_v55 = vld [vmem:[%s11185_s10 + $0x190] sm:$0xff] }
0x1d7c   :  { %v4385_v0 = vpop.permute.xlu0 %4384 }
0x1d7d   :  { %v10453_v60 = vadd.f32 %v4385_v0, %v4377_v62  ;;  %v4728_v62 = vld [vmem:[%s11185_s10 + $0x198] sm:$0xff]  ;;  %v4703_v0 = vld [vmem:[%s11185_s10 + $0xd0] sm:$0xff] }
0x1d7e   :  { %v10645_v31 = vpack.c.bf16 %v4728_v62, %v4727_v55  ;;  %v4717_v55 = vld [vmem:[%s11185_s10 + $0x140] sm:$0xff]  ;;  %v4718_v62 = vld [vmem:[%s11185_s10 + $0x148] sm:$0xff] }
0x1d7f   :  { %8318 = vtanh.f32 %v10453_v60 }
0x1d89   :  { %v8319_v21 = vpop.eup %8318 }
0x1d8a   :  { %4390 = vrot.lane.b32.xlu1 %v8319_v21, %s8388_s24 }
0x1dfc   :  { %v4391_v4 = vpop.permute.xlu1 %4390 }
0x1dfd   :  { %v4393_v44 = vmul.f32 %v8317_v5, %v4391_v4  ;;  %v10629_v5 = vpack.c.bf16 %v4710_v37, %v4709_v50  ;;  %v4704_v4 = vld [vmem:[%s11185_s10 + $0xd8] sm:$0xff]  ;;  %v4733_v50 = vld [vmem:[%s11185_s10 + $0x1c0] sm:$0xff]  ;;  %v4734_v37 = vld [vmem:[%s11185_s10 + $0x1c8] sm:$0xff] }
0x1dfe   :  { %v10756_v36 = vpack.c.bf16 %v4734_v37, %v4733_v50 }
0x1dff   :  { %4395 = vrot.lane.b32.xlu0 %v4393_v44, %s8386_s5  ;;  %8127 = vmatpush3.bf16.msra.mxu0 %v10629_v5  ;;  %v4711_v44 = vld [vmem:[%s11185_s10 + $0x110] sm:$0xff] }
0x1e00   :  { %8129 = vmatprep.subr.bf16.mxu0 %v10645_v31 }
0x1e71   :  { %v10462_v14 = vpop.permute.xlu0 %4395 }
0x1e72   :  { %4398 = vst.msk [vmem:[#allocation3 + $0x28] sm:$0xff] %vm574_vm4, %v10462_v14  ;;  %7452 = vmatprep.subr.mxu1 %v10462_v14 }
0x1e73   :  { %7453 = vmatpush3.msra.mxu1 %v10462_v14 }
0x1e74   :  { %7455 = vmatmul.mubr.msk.f32.vlgmr.msra.gmra.mrb[62].mxu1 %vm380_vm2, %v6151_v1  ;;  %8093 = vmatprep.subr.bf16.mxu1 %v10537_v58  ;;  %v4712_v1 = vld [vmem:[%s11185_s10 + $0x118] sm:$0xff] }
0x1e75   :  { %7457 = vmatprep.mubr.msk.f32.mxu1 %vm380_vm2, %v6152_v26  ;;  %8095 = vmatpush3.bf16.msra.mxu1 %v10548_v23 }
0x1e76   :  { %8097 = vmatprep.subr.bf16.mxu1 %v10550_v22 }
0x1e78   :  { %7458 = vmatmul.mubr.msk.f32.gmra.mrb[64].mxu1 %vm380_vm2, %v6153_v28  ;;  %v10657_v28 = vpack.c.bf16 %v4704_v4, %v4703_v0  ;;  %v4735_v4 = vld [vmem:[%s11185_s10 + $0x1d0] sm:$0xff] }
0x1e79   :  { %7460 = vmatprep.mubr.msk.f32.mxu1 %vm380_vm2, %v6154_v51  ;;  %8099 = vmatpush3.bf16.msra.mxu1 %v10560_v30  ;;  %v10659_v51 = vpack.c.bf16 %v4712_v1, %v4711_v44  ;;  %v4736_v44 = vld [vmem:[%s11185_s10 + $0x1d8] sm:$0xff] }
0x1e7a   :  { %8101 = vmatprep.subr.bf16.mxu1 %v10573_v49 }
0x1e7b   :  { %8131 = vmatpush3.bf16.msra.mxu0 %v10659_v51 }
0x1e7c   :  { %7461 = vmatmul.mubr.msk.f32.gmra.mrb[66].mxu1 %vm380_vm2, %v6155_v2  ;;  %v4687_v2 = vld [vmem:[%s11185_s10 + $0x50] sm:$0xff] }
0x1e7d   :  { %7463 = vmatprep.mubr.msk.f32.mxu1 %vm380_vm2, %v6156_v43  ;;  %8103 = vmatpush3.bf16.msra.mxu1 %v10578_v9  ;;  %v4688_v43 = vld [vmem:[%s11185_s10 + $0x58] sm:$0xff] }
0x1e7e   :  { %8105 = vmatprep.subr.bf16.mxu1 %v10588_v56 }
0x1e80   :  { %7464 = vmatmul.mubr.msk.f32.gmra.mrb[68].mxu1 %vm380_vm2, %v6157_v7  ;;  %v10669_v7 = vpack.c.bf16 %v4688_v43, %v4687_v2  ;;  %v4719_v2 = vld [vmem:[%s11185_s10 + $0x150] sm:$0xff]  ;;  %v4720_v43 = vld [vmem:[%s11185_s10 + $0x158] sm:$0xff] }
0x1e81   :  { %7466 = vmatprep.mubr.msk.f32.mxu1 %vm380_vm2, %v6158_v42  ;;  %8107 = vmatpush3.bf16.msra.mxu1 %v10596_v52  ;;  %v4729_v42 = vld [vmem:[%s11185_s10 + $0x1a0] sm:$0xff] }
0x1e82   :  { %8109 = vmatprep.subr.bf16.mxu1 %v10617_v27 }
0x1e84   :  { %7467 = vmatmul.mubr.msk.f32.gmra.mrb[70].mxu1 %vm380_vm2, %v6159_v10  ;;  %v4730_v10 = vld [vmem:[%s11185_s10 + $0x1a8] sm:$0xff] }
0x1e85   :  { %7469 = vmatprep.mubr.msk.f32.mxu1 %vm380_vm2, %v6160_v15  ;;  %8111 = vmatpush3.bf16.msra.mxu1 %v10631_v46 }
0x1e86   :  { %8113 = vmatprep.subr.bf16.mxu1 %v10657_v28 }
0x1e88   :  { %7470 = vmatmul.mubr.msk.f32.gmra.mrb[72].mxu1 %vm380_vm2, %v6161_v41  ;;  %v10680_v41 = vpack.c.bf16 %v4730_v10, %v4729_v42  ;;  %v10786_v10 = vpack.c.bf16 %v4720_v43, %v4719_v2 }
0x1e89   :  { %7472 = vmatprep.mubr.msk.f32.mxu1 %vm380_vm2, %v6162_v61  ;;  %8115 = vmatpush3.bf16.msra.mxu1 %v10669_v7  ;;  %v4705_v61 = vld [vmem:[%s11185_s10 + $0xe0] sm:$0xff] }
0x1e8a   :  { %8133 = vmatprep.subr.bf16.mxu0 %v10680_v41 }
0x1e8c   :  { %7473 = vmatmul.mubr.msk.f32.gmra.mrb[74].mxu1 %vm380_vm2, %v6163_v13  ;;  %v4706_v13 = vld [vmem:[%s11185_s10 + $0xe8] sm:$0xff] }
0x1e8d   :  { %7475 = vmatprep.mubr.msk.f32.mxu1 %vm380_vm2, %v6164_v17  ;;  %v4713_v17 = vld [vmem:[%s11185_s10 + $0x120] sm:$0xff]  ;;  %v10692_v29 = vpack.c.bf16 %v4706_v13, %v4705_v61  ;;  %v4738_v61 = vld [vmem:[%s11185_s10 + $0x1e8] sm:$0xff] }
0x1e8e   :  { %v10705_v35 = vpack.c.bf16 %v4714_v19, %v4713_v17  ;;  %v4722_v19 = vld [vmem:[%s11185_s10 + $0x168] sm:$0xff] }
0x1e8f   :  { %8117 = vmatprep.subr.bf16.mxu1 %v10692_v29 }
0x1e90   :  { %7476 = vmatmul.mubr.msk.f32.gmra.mrb[76].mxu1 %vm380_vm2, %v6165_v20  ;;  %8135 = vmatpush3.bf16.msra.mxu0 %v10705_v35 }
0x1e91   :  { %8119 = vmatpush3.bf16.msra.mxu1 %v10707_v57  ;;  %8137 = vmatprep.subr.bf16.mxu0 %v10718_v38 }
0x1e92   :  { %8121 = vmatprep.subr.bf16.mxu1 %v10730_v40 }
0x1e94   :  { %8139 = vmatpush3.bf16.msra.mxu0 %v10743_v39 }
0x1e95   :  { %8123 = vmatpush3.bf16.msra.mxu1 %v10745_v16  ;;  %8141 = vmatprep.subr.bf16.mxu0 %v10756_v36 }
0x1e96   :  { %8156 = vmatprep.subr.bf16.mxu1 %v8389_v18 }
0x1f47   :  { %v7456_v21 = vpop.f32.mrb[62].mxu1 }
0x1f48   :  { %4611 = vrot.lane.b32.xlu0 %v7456_v21, %s8386_s5  ;;  %v4530_v26 = vpop.f32.mrb[63].mxu1  ;;  %v10765_v21 = vpack.c.bf16 %v4718_v62, %v4717_v55 }
0x1f49   :  { %4609 = vst.msk [vmem:[#allocation2] sm:$0xff] %vm574_vm4, %v4530_v26  ;;  %v10776_v26 = vpack.c.bf16 %v4736_v44, %v4735_v4 }
0x1f4a   :  { %8143 = vmatpush3.bf16.msra.mxu0 %v10765_v21 }
0x1f4b   :  { %v7459_v15 = vpop.f32.mrb[64].mxu1  ;;  %8145 = vmatprep.subr.bf16.mxu0 %v10776_v26 }
0x1f4c   :  { %4621 = vrot.lane.b32.xlu1 %v7459_v15, %s8387_s18  ;;  %v4540_v20 = vpop.f32.mrb[65].mxu1  ;;  %v4737_v15 = vld [vmem:[%s11185_s10 + $0x1e0] sm:$0xff] }
0x1f4d   :  { %4616 = vrot.lane.b32.xlu0 %v4540_v20, %s8388_s24  ;;  %v10797_v17 = vpack.c.bf16 %v4738_v61, %v4737_v15  ;;  %v4721_v20 = vld [vmem:[%s11185_s10 + $0x160] sm:$0xff] }
0x1f4e   :  { %8147 = vmatpush3.bf16.msra.mxu0 %v10786_v10  ;;  %v10805_v3 = vpack.c.bf16 %v4722_v19, %v4721_v20  ;;  %v4965_v20 = vld [vmem:[%s11184_s9 + $0x8] sm:$0xff] }
0x1f4f   :  { %v7462_v47 = vpop.f32.mrb[66].mxu1  ;;  %8149 = vmatprep.subr.bf16.mxu0 %v10797_v17 }
0x1f50   :  { %4627 = vrot.lane.b32.xlu1 %v7462_v47, %s8386_s5  ;;  %v4550_v6 = vpop.f32.mrb[67].mxu1  ;;  %v4723_v47 = vld [vmem:[%s11185_s10 + $0x170] sm:$0xff] }
0x1f51   :  { %4625 = vst.msk [vmem:[#allocation2 + $0x8] sm:$0xff] %vm574_vm4, %v4550_v6  ;;  %v10824_v6 = vpack.c.bf16 %v4724_v48, %v4723_v47  ;;  %v10863_v48 = vpack.c.bf16 %v4967_v54, %v4966_v33 }
0x1f52   :  { %8151 = vmatpush3.bf16.msra.mxu0 %v10805_v3 }
0x1f53   :  { %v7465_v24 = vpop.f32.mrb[68].mxu1  ;;  %8153 = vmatprep.subr.bf16.mxu0 %v10818_v32 }
0x1f54   :  { %4637 = vrot.lane.b32.xlu1 %v7465_v24, %s8387_s18  ;;  %v4560_v0 = vpop.f32.mrb[69].mxu1 }
0x1f56   :  { %8155 = vmatpush3.bf16.msra.mxu0 %v10824_v6 }
0x1f57   :  { %v7468_v1 = vpop.f32.mrb[70].mxu1  ;;  %8168 = vmatprep.subr.bf16.mxu0 %v8389_v18 }
0x1f58   :  { %4632 = vrot.lane.b32.xlu1 %v4560_v0, %s8388_s24  ;;  %4643 = vrot.lane.b32.xlu0 %v7468_v1, %s8386_s5  ;;  %v4570_v42 = vpop.f32.mrb[71].mxu1 }
0x1f59   :  { %4641 = vst.msk [vmem:[#allocation2 + $0x10] sm:$0xff] %vm574_vm4, %v4570_v42 }
0x1f5b   :  { %v7471_v13 = vpop.f32.mrb[72].mxu1 }
0x1f5c   :  { %v4580_v34 = vpop.f32.mrb[73].mxu1 }
0x1f5d   :  { %4648 = vrot.lane.b32.xlu0 %v4580_v34, %s8388_s24 }
0x1f5f   :  { %v7474_v12 = vpop.f32.mrb[74].mxu1 }
0x1f60   :  { %v4590_v53 = vpop.f32.mrb[75].mxu1 }
0x1f61   :  { %4657 = vst.msk [vmem:[#allocation2 + $0x18] sm:$0xff] %vm574_vm4, %v4590_v53  ;;  %4659 = vrot.lane.b32.xlu0 %v7474_v12, %s8386_s5  ;;  %v4882_v12 = vld [vmem:[%s11183_s8] sm:$0xff]  ;;  %v4883_v53 = vld [vmem:[%s11183_s8 + $0x8] sm:$0xff] }
0x1f63   :  { %v7477_v59 = vpop.f32.mrb[76].mxu1 }
0x1f64   :  { %v4600_v25 = vpop.f32.mrb[77].mxu1 }
0x1f65   :  { %4653 = vrot.lane.b32.xlu0 %v7471_v13, %s8387_s18  ;;  %4664 = vrot.lane.b32.xlu1 %v4600_v25, %s8388_s24  ;;  %v4964_v13 = vld [vmem:[%s11184_s9] sm:$0xff]  ;;  %v10880_v25 = vpack.c.bf16 %v4883_v53, %v4882_v12  ;;  %v6187_v53 = vld [vmem:[%s11176_s1 + $0x390] sm:$0xff] }
0x1f66   :  { %v10854_v19 = vpack.c.bf16 %v4965_v20, %v4964_v13 }
0x1f69   :  { %4669 = vrot.lane.b32.xlu1 %v7477_v59, %s8387_s18  ;;  %v4884_v59 = vld [vmem:[%s11183_s8 + $0x10] sm:$0xff] }
0x1fba   :  { %v4612_v50 = vpop.permute.xlu0 %4611 }
0x1fbb   :  { %4614 = vst.msk [vmem:[#allocation2] sm:$0xff] %vm580_vm5, %v4612_v50  ;;  %v4885_v50 = vld [vmem:[%s11183_s8 + $0x18] sm:$0xff] }
0x1fbe   :  { %v4622_v37 = vpop.permute.xlu1 %4621 }
0x1fbf   :  { %v4617_v24 = vpop.permute.xlu0 %4616 }
0x1fc0   :  { %4619 = vst.msk [vmem:[#allocation2] sm:$0xff] %vm586_vm6, %v4617_v24  ;;  %v4887_v24 = vld [vmem:[%s11183_s8 + $0x28] sm:$0xff] }
0x1fc1   :  { %4624 = vst.msk [vmem:[#allocation2] sm:$0xff] %vm592_vm7, %v4622_v37  ;;  %v4886_v37 = vld [vmem:[%s11183_s8 + $0x20] sm:$0xff] }
0x1fc2   :  { %v4628_v55 = vpop.permute.xlu1 %4627 }
0x1fc3   :  { %4630 = vst.msk [vmem:[#allocation2 + $0x8] sm:$0xff] %vm580_vm5, %v4628_v55  ;;  %v10897_v55 = vpack.c.bf16 %v4887_v24, %v4886_v37 }
0x1fc6   :  { %v4638_v62 = vpop.permute.xlu1 %4637 }
0x1fc8   :  { %v4673_v43 = vld [vmem:[#allocation2] sm:$0xff] }
0x1fca   :  { %v4633_v0 = vpop.permute.xlu1 %4632  ;;  %v4644_v4 = vpop.permute.xlu0 %4643 }
0x1fcb   :  { %4635 = vst.msk [vmem:[#allocation2 + $0x8] sm:$0xff] %vm586_vm6, %v4633_v0  ;;  %v4889_v0 = vld [vmem:[%s11183_s8 + $0x38] sm:$0xff] }
0x1fcc   :  { %4646 = vst.msk [vmem:[#allocation2 + $0x10] sm:$0xff] %vm580_vm5, %v4644_v4 }
0x1fcd   :  { %4640 = vst.msk [vmem:[#allocation2 + $0x8] sm:$0xff] %vm592_vm7, %v4638_v62  ;;  %v4888_v62 = vld [vmem:[%s11183_s8 + $0x30] sm:$0xff] }
0x1fce   :  { %v10907_v4 = vpack.c.bf16 %v4889_v0, %v4888_v62 }
0x1fcf   :  { %v4649_v44 = vpop.permute.xlu0 %4648 }
0x1fd0   :  { %4651 = vst.msk [vmem:[#allocation2 + $0x10] sm:$0xff] %vm586_vm6, %v4649_v44 }
0x1fd3   :  { %v4660_v1 = vpop.permute.xlu0 %4659 }
0x1fd4   :  { %v4674_v2 = vld [vmem:[#allocation2 + $0x8] sm:$0xff]  ;;  %4662 = vst.msk [vmem:[#allocation2 + $0x18] sm:$0xff] %vm580_vm5, %v4660_v1 }
0x1fd5   :  { %4805 = vmatprep.mubr.f32.mxu1 %v4674_v2 }
0x1fd6   :  { %4806 = vmatmul.mubr.f32.vlgmr.msra.gmra.mrb[78].mxu1 %v4673_v43 }
0x1fd7   :  { %7494 = vmatprep.mubr.msk.f32.mxu1 %vm8390_vm8, %v8391_v63  ;;  %v4654_v42 = vpop.permute.xlu0 %4653  ;;  %v4665_v15 = vpop.permute.xlu1 %4664  ;;  %8158 = vmatpush3.bf16.msra.mxu1 %v10880_v25 }
0x1fd8   :  { %4656 = vst.msk [vmem:[#allocation2 + $0x10] sm:$0xff] %vm592_vm7, %v4654_v42  ;;  %8159 = vmatprep.subr.bf16.mxu1 %v8389_v18 }
0x1fd9   :  { %4667 = vst.msk [vmem:[#allocation2 + $0x18] sm:$0xff] %vm586_vm6, %v4665_v15  ;;  %v10914_v15 = vld [vmem:[%s11186_s11] ss:$0 sm:$0xff] }
0x1fdb   :  { %v4670_v61 = vpop.permute.xlu1 %4669 }
0x1fdc   :  { %4672 = vst.msk [vmem:[#allocation2 + $0x18] sm:$0xff] %vm592_vm7, %v4670_v61 }
0x1fdf   :  { %v4675_v47 = vld [vmem:[#allocation2 + $0x10] sm:$0xff] }
0x1fe3   :  { %v4676_v34 = vld [vmem:[#allocation2 + $0x18] sm:$0xff] }
0x1fe4   :  { %4875 = vmatprep.mubr.f32.mxu0 %v4676_v34 }
0x1fe5   :  { %4876 = vmatmul.mubr.f32.vlgmr.msra.gmra.mrb[98].mxu0 %v4675_v47 }
0x1fe6   :  { %8170 = vmatpush3.bf16.msra.mxu0 %v10854_v19  ;;  %7505 = vmatprep.mubr.msk.f32.mxu0 %vm8390_vm8, %v8391_v63 }
0x1fe7   :  { %8171 = vmatprep.subr.bf16.mxu0 %v8389_v18 }
0x1fea   :  { %8173 = vmatpush3.bf16.msra.mxu0 %v10863_v48 }
0x1fed   :  { %7506 = vmatmul.mubr.msk.f32.vlgmr.msra.gmra.mrb[100].mxu0 %vm574_vm4, %v10462_v14  ;;  %v10886_v14 = vpack.c.bf16 %v4885_v50, %v4884_v59  ;;  %v6188_v59 = vld [vmem:[%s11176_s1 + $0x398] sm:$0xff]  ;;  %v6189_v50 = vld [vmem:[%s11176_s1 + $0x3a0] sm:$0xff] }
0x1fef   :  { %8161 = vmatpush3.bf16.msra.mxu1 %v10886_v14 }
0x1ff0   :  { %8162 = vmatprep.subr.bf16.mxu1 %v8389_v18 }
0x1ff3   :  { %8164 = vmatpush3.bf16.msra.mxu1 %v10897_v55 }
0x1ff4   :  { %8165 = vmatprep.subr.bf16.mxu1 %v8389_v18 }
0x1ff7   :  { %8167 = vmatpush3.bf16.msra.mxu1 %v10907_v4 }
0x1ff8   :  { %8207 = vmatprep.subr.bf16.mxu1 %v10606_v45 }
0x20a9   :  { %v6909_v44 = vpop.f32.mrb[78].mxu1 }
0x20aa   :  { %v6910_v1 = vpop.f32.mrb[79].mxu1 }
0x20ab   :  { %v6911_v2 = vadd.f32 %v6910_v1, %v6909_v44 }
0x20ad   :  { %v4808_v61 = vadd.f32 %v10914_v15, %v6911_v2 }
0x20b8   :  { %v6944_v43 = vpop.f32.mrb[98].mxu0 }
0x20b9   :  { %v6945_v42 = vpop.f32.mrb[99].mxu0 }
0x20ba   :  { %v6946_v13 = vadd.f32 %v6945_v42, %v6944_v43 }
0x20bc   :  { %v4878_v20 = vadd.f32 %v6946_v13, %v4808_v61 }
0x20be   :  { %v4881_v34 = vmax.f32 %v4878_v20, 0.0 }
0x20c0   :  { %v5036_v33 = vpop.f32.mrb[100].mxu0  ;;  %7495 = vmatmul.mubr.msk.f32.vlgmr.msra.gmra.mrb[80].mxu1 %vm225_vm3, %v4881_v34 }
0x20c1   :  { %v7507_v54 = vpop.f32.mrb[101].mxu0  ;;  %8209 = vmatpush3.bf16.msra.mxu1 %v10629_v5 }
0x20c2   :  { %8211 = vmatprep.subr.bf16.mxu1 %v10645_v31 }
0x20c5   :  { %8213 = vmatpush3.bf16.msra.mxu1 %v10659_v51 }
0x20c6   :  { %8215 = vmatprep.subr.bf16.mxu1 %v10680_v41 }
0x20c9   :  { %8217 = vmatpush3.bf16.msra.mxu1 %v10705_v35 }
0x20ca   :  { %8219 = vmatprep.subr.bf16.mxu1 %v10718_v38 }
0x20cd   :  { %8221 = vmatpush3.bf16.msra.mxu1 %v10743_v39 }
0x20ce   :  { %8223 = vmatprep.subr.bf16.mxu1 %v10756_v36 }
0x20d1   :  { %8225 = vmatpush3.bf16.msra.mxu1 %v10765_v21 }
0x20d2   :  { %8227 = vmatprep.subr.bf16.mxu1 %v10776_v26 }
0x20d5   :  { %8229 = vmatpush3.bf16.msra.mxu1 %v10786_v10 }
0x20d6   :  { %8231 = vmatprep.subr.bf16.mxu1 %v10797_v17 }
0x20d9   :  { %8233 = vmatpush3.bf16.msra.mxu1 %v10805_v3 }
0x20da   :  { %8235 = vmatprep.subr.bf16.mxu1 %v10818_v32  ;;  %v6185_v32 = vld [vmem:[%s11176_s1 + $0x380] sm:$0xff] }
0x20db   :  { %7510 = vmatprep.mubr.msk.f32.mxu0 %vm380_vm2, %v6185_v32  ;;  %v5744_v32 = vld [vmem:[#allocation3 + $0x18] sm:$0xff] }
0x20dd   :  { %8237 = vmatpush3.bf16.msra.mxu1 %v10824_v6 }
0x20de   :  { %8250 = vmatprep.subr.bf16.mxu1 %v8389_v18 }
0x2193   :  { %v4959_v45 = vpop.f32.mrb[80].mxu1 }
0x2194   :  { %v4963_v5 = vadd.f32 %v4959_v45, %v8962_v11  ;;  %v7496_v31 = vpop.f32.mrb[81].mxu1 }
0x2196   :  { %v5040_v51 = vadd.f32 %v5036_v33, %v4963_v5 }
0x2198   :  { %8320 = vtanh.f32 %v5040_v51  ;;  %v6184_v35 = vmul.f32 -1.442695, %v5040_v51 }
0x219a   :  { %8322 = vpow2.f32 %v6184_v35 }
0x21a2   :  { %v8321_v41 = vpop.eup %8320 }
0x21a3   :  { %5050 = vrot.lane.b32.xlu1 %v8321_v41, %s8388_s24 }
0x21a4   :  { %v8323_v38 = vpop.eup %8322 }
0x21a5   :  { %v5044_v39 = vadd.f32 1.0, %v8323_v38 }
0x21a7   :  { %8324 = vrcp.f32 %v5044_v39 }
0x21b1   :  { %v8325_v36 = vpop.eup %8324 }
0x21b2   :  { %v5048_v10 = vmul.f32 %v8325_v36, %v10453_v60  ;;  %v6186_v60 = vld [vmem:[%s11176_s1 + $0x388] sm:$0xff] }
0x2215   :  { %v5051_v21 = vpop.permute.xlu1 %5050 }
0x2216   :  { %v5053_v26 = vmul.f32 %v8325_v36, %v5051_v21 }
0x2218   :  { %5055 = vrot.lane.b32.xlu0 %v5053_v26, %s8386_s5 }
0x228a   :  { %v5056_v17 = vpop.permute.xlu0 %5055 }
0x228b   :  { %v10938_v11 = vadd.f32 %v5056_v17, %v5048_v10  ;;  %v5749_v10 = vld [vmem:[%s11187_s12] sm:$0xff]  ;;  %v5752_v17 = vld [vmem:[%s11187_s12 + $0x18] sm:$0xff] }
0x228d   :  { %8326 = vtanh.f32 %v10938_v11 }
0x2297   :  { %v8327_v3 = vpop.eup %8326 }
0x2298   :  { %5061 = vrot.lane.b32.xlu1 %v8327_v3, %s8388_s24 }
0x230a   :  { %v5062_v6 = vpop.permute.xlu1 %5061 }
0x230b   :  { %v5064_v47 = vmul.f32 %v8325_v36, %v5062_v6  ;;  %v5746_v6 = vld [vmem:[#allocation3 + $0x28] sm:$0xff] }
0x230d   :  { %5066 = vrot.lane.b32.xlu0 %v5064_v47, %s8386_s5 }
0x237f   :  { %v10947_v12 = vpop.permute.xlu0 %5066 }
0x2380   :  { %5069 = vst.msk [vmem:[#allocation3 + $0x30] sm:$0xff] %vm574_vm4, %v10947_v12  ;;  %7508 = vmatprep.subr.mxu0 %v10947_v12 }
0x2381   :  { %7509 = vmatpush3.msra.mxu0 %v10947_v12 }
0x2382   :  { %7511 = vmatmul.mubr.msk.f32.vlgmr.msra.gmra.mrb[102].mxu0 %vm380_vm2, %v6186_v60  ;;  %8175 = vmatprep.subr.bf16.mxu0 %v10537_v58  ;;  %v6190_v58 = vld [vmem:[%s11176_s1 + $0x3a8] sm:$0xff] }
0x2383   :  { %7513 = vmatprep.mubr.msk.f32.mxu0 %vm380_vm2, %v6187_v53  ;;  %8177 = vmatpush3.bf16.msra.mxu0 %v10548_v23  ;;  %v6191_v23 = vld [vmem:[%s11176_s1 + $0x3b0] sm:$0xff] }
0x2384   :  { %8179 = vmatprep.subr.bf16.mxu0 %v10550_v22  ;;  %v6192_v22 = vld [vmem:[%s11176_s1 + $0x3b8] sm:$0xff] }
0x2386   :  { %7514 = vmatmul.mubr.msk.f32.gmra.mrb[104].mxu0 %vm380_vm2, %v6188_v59 }
0x2387   :  { %7516 = vmatprep.mubr.msk.f32.mxu0 %vm380_vm2, %v6189_v50  ;;  %8181 = vmatpush3.bf16.msra.mxu0 %v10560_v30  ;;  %v6193_v30 = vld [vmem:[%s11176_s1 + $0x3c0] sm:$0xff]  ;;  %v5747_v47 = vld [vmem:[#allocation3 + $0x30] sm:$0xff] }
0x2388   :  { %8183 = vmatprep.subr.bf16.mxu0 %v10573_v49  ;;  %v6194_v49 = vld [vmem:[%s11176_s1 + $0x3c8] sm:$0xff] }
0x238a   :  { %7517 = vmatmul.mubr.msk.f32.gmra.mrb[106].mxu0 %vm380_vm2, %v6190_v58 }
0x238b   :  { %7519 = vmatprep.mubr.msk.f32.mxu0 %vm380_vm2, %v6191_v23  ;;  %8185 = vmatpush3.bf16.msra.mxu0 %v10578_v9  ;;  %v6195_v9 = vld [vmem:[%s11176_s1 + $0x3d0] sm:$0xff] }
0x238c   :  { %8187 = vmatprep.subr.bf16.mxu0 %v10588_v56  ;;  %v6196_v56 = vld [vmem:[%s11176_s1 + $0x3d8] sm:$0xff] }
0x238e   :  { %7520 = vmatmul.mubr.msk.f32.gmra.mrb[108].mxu0 %vm380_vm2, %v6192_v22 }
0x238f   :  { %7522 = vmatprep.mubr.msk.f32.mxu0 %vm380_vm2, %v6193_v30  ;;  %8189 = vmatpush3.bf16.msra.mxu0 %v10596_v52  ;;  %v6197_v52 = vld [vmem:[%s11176_s1 + $0x3e0] sm:$0xff] }
0x2390   :  { %8191 = vmatprep.subr.bf16.mxu0 %v10617_v27  ;;  %v6198_v27 = vld [vmem:[%s11176_s1 + $0x3e8] sm:$0xff] }
0x2392   :  { %7523 = vmatmul.mubr.msk.f32.gmra.mrb[110].mxu0 %vm380_vm2, %v6194_v49 }
0x2393   :  { %7525 = vmatprep.mubr.msk.f32.mxu0 %vm380_vm2, %v6195_v9  ;;  %8193 = vmatpush3.bf16.msra.mxu0 %v10631_v46  ;;  %v6199_v46 = vld [vmem:[%s11176_s1 + $0x3f0] sm:$0xff] }
0x2394   :  { %8195 = vmatprep.subr.bf16.mxu0 %v10657_v28  ;;  %v6200_v28 = vld [vmem:[%s11176_s1 + $0x3f8] sm:$0xff] }
0x2396   :  { %7526 = vmatmul.mubr.msk.f32.gmra.mrb[112].mxu0 %vm380_vm2, %v6196_v56  ;;  %v11098_v56 = vld [vmem:[%s11188_s13] ss:$0 sm:$0xff] }
0x2397   :  { %7528 = vmatprep.mubr.msk.f32.mxu0 %vm380_vm2, %v6197_v52  ;;  %8197 = vmatpush3.bf16.msra.mxu0 %v10669_v7 }
0x2398   :  { %8199 = vmatprep.subr.bf16.mxu0 %v10692_v29 }
0x239a   :  { %7529 = vmatmul.mubr.msk.f32.gmra.mrb[114].mxu0 %vm380_vm2, %v6198_v27 }
0x239b   :  { %7531 = vmatprep.mubr.msk.f32.mxu0 %vm380_vm2, %v6199_v46  ;;  %8201 = vmatpush3.bf16.msra.mxu0 %v10707_v57 }
0x239c   :  { %8203 = vmatprep.subr.bf16.mxu0 %v10730_v40 }
0x239e   :  { %7532 = vmatmul.mubr.msk.f32.gmra.mrb[116].mxu0 %vm380_vm2, %v6200_v28 }
0x239f   :  { %8205 = vmatpush3.bf16.msra.mxu0 %v10745_v16 }
0x23a0   :  { %8238 = vmatprep.subr.bf16.mxu0 %v8389_v18 }
0x2455   :  { %v7512_v7 = vpop.f32.mrb[102].mxu0 }
0x2456   :  { %5282 = vrot.lane.b32.xlu0 %v7512_v7, %s8386_s5  ;;  %v5201_v29 = vpop.f32.mrb[103].mxu0 }
0x2457   :  { %5280 = vst.msk [vmem:[#allocation2] sm:$0xff] %vm574_vm4, %v5201_v29 }
0x2459   :  { %v7515_v37 = vpop.f32.mrb[104].mxu0 }
0x245a   :  { %5292 = vrot.lane.b32.xlu1 %v7515_v37, %s8387_s18  ;;  %v5211_v24 = vpop.f32.mrb[105].mxu0 }
0x245b   :  { %5287 = vrot.lane.b32.xlu0 %v5211_v24, %s8388_s24 }
0x245d   :  { %v7518_v57 = vpop.f32.mrb[106].mxu0 }
0x245e   :  { %5298 = vrot.lane.b32.xlu1 %v7518_v57, %s8386_s5  ;;  %v5221_v40 = vpop.f32.mrb[107].mxu0 }
0x245f   :  { %5296 = vst.msk [vmem:[#allocation2 + $0x8] sm:$0xff] %vm574_vm4, %v5221_v40 }
0x2461   :  { %v7521_v16 = vpop.f32.mrb[108].mxu0 }
0x2462   :  { %5308 = vrot.lane.b32.xlu1 %v7521_v16, %s8387_s18  ;;  %v5231_v62 = vpop.f32.mrb[109].mxu0 }
0x2465   :  { %v7524_v0 = vpop.f32.mrb[110].mxu0 }
0x2466   :  { %5303 = vrot.lane.b32.xlu1 %v5231_v62, %s8388_s24  ;;  %5314 = vrot.lane.b32.xlu0 %v7524_v0, %s8386_s5  ;;  %v5241_v44 = vpop.f32.mrb[111].mxu0 }
0x2467   :  { %5312 = vst.msk [vmem:[#allocation2 + $0x10] sm:$0xff] %vm574_vm4, %v5241_v44 }
0x2469   :  { %v7527_v1 = vpop.f32.mrb[112].mxu0 }
0x246a   :  { %v5251_v2 = vpop.f32.mrb[113].mxu0 }
0x246b   :  { %5319 = vrot.lane.b32.xlu0 %v5251_v2, %s8388_s24 }
0x246d   :  { %v7530_v43 = vpop.f32.mrb[114].mxu0 }
0x246e   :  { %v5261_v42 = vpop.f32.mrb[115].mxu0 }
0x246f   :  { %5330 = vrot.lane.b32.xlu0 %v7530_v43, %s8386_s5  ;;  %5328 = vst.msk [vmem:[#allocation2 + $0x18] sm:$0xff] %vm574_vm4, %v5261_v42 }
0x2471   :  { %v7533_v61 = vpop.f32.mrb[116].mxu0 }
0x2472   :  { %v5271_v13 = vpop.f32.mrb[117].mxu0 }
0x2473   :  { %5324 = vrot.lane.b32.xlu0 %v7527_v1, %s8387_s18  ;;  %5335 = vrot.lane.b32.xlu1 %v5271_v13, %s8388_s24 }
0x2477   :  { %5340 = vrot.lane.b32.xlu1 %v7533_v61, %s8387_s18 }
0x24c8   :  { %v5283_v20 = vpop.permute.xlu0 %5282 }
0x24c9   :  { %5285 = vst.msk [vmem:[#allocation2] sm:$0xff] %vm580_vm5, %v5283_v20 }
0x24cc   :  { %v5293_v34 = vpop.permute.xlu1 %5292 }
0x24cd   :  { %v5288_v33 = vpop.permute.xlu0 %5287 }
0x24ce   :  { %5290 = vst.msk [vmem:[#allocation2] sm:$0xff] %vm586_vm6, %v5288_v33 }
0x24cf   :  { %5295 = vst.msk [vmem:[#allocation2] sm:$0xff] %vm592_vm7, %v5293_v34 }
0x24d0   :  { %v5299_v54 = vpop.permute.xlu1 %5298 }
0x24d1   :  { %5301 = vst.msk [vmem:[#allocation2 + $0x8] sm:$0xff] %vm580_vm5, %v5299_v54 }
0x24d4   :  { %v5309_v45 = vpop.permute.xlu1 %5308 }
0x24d6   :  { %v5344_v38 = vld [vmem:[#allocation2] sm:$0xff] }
0x24d8   :  { %v5304_v5 = vpop.permute.xlu1 %5303  ;;  %v5315_v31 = vpop.permute.xlu0 %5314 }
0x24d9   :  { %5306 = vst.msk [vmem:[#allocation2 + $0x8] sm:$0xff] %vm586_vm6, %v5304_v5 }
0x24da   :  { %5317 = vst.msk [vmem:[#allocation2 + $0x10] sm:$0xff] %vm580_vm5, %v5315_v31 }
0x24db   :  { %5311 = vst.msk [vmem:[#allocation2 + $0x8] sm:$0xff] %vm592_vm7, %v5309_v45 }
0x24dd   :  { %v5320_v51 = vpop.permute.xlu0 %5319 }
0x24de   :  { %5322 = vst.msk [vmem:[#allocation2 + $0x10] sm:$0xff] %vm586_vm6, %v5320_v51 }
0x24e1   :  { %v5331_v41 = vpop.permute.xlu0 %5330 }
0x24e2   :  { %v5345_v35 = vld [vmem:[#allocation2 + $0x8] sm:$0xff]  ;;  %5333 = vst.msk [vmem:[#allocation2 + $0x18] sm:$0xff] %vm580_vm5, %v5331_v41 }
0x24e3   :  { %5476 = vmatprep.mubr.f32.mxu0 %v5345_v35 }
0x24e4   :  { %5477 = vmatmul.mubr.f32.vlgmr.msra.gmra.mrb[118].mxu0 %v5344_v38 }
0x24e5   :  { %8240 = vmatpush3.bf16.msra.mxu0 %v10880_v25  ;;  %7550 = vmatprep.mubr.msk.f32.mxu0 %vm8390_vm8, %v8391_v63  ;;  %v5325_v39 = vpop.permute.xlu0 %5324  ;;  %v5336_v36 = vpop.permute.xlu1 %5335 }
0x24e6   :  { %8241 = vmatprep.subr.bf16.mxu0 %v8389_v18  ;;  %5327 = vst.msk [vmem:[#allocation2 + $0x10] sm:$0xff] %vm592_vm7, %v5325_v39 }
0x24e7   :  { %5338 = vst.msk [vmem:[#allocation2 + $0x18] sm:$0xff] %vm586_vm6, %v5336_v36 }
0x24e9   :  { %8243 = vmatpush3.bf16.msra.mxu0 %v10886_v14  ;;  %v5341_v21 = vpop.permute.xlu1 %5340  ;;  %v5750_v14 = vld [vmem:[%s11187_s12 + $0x8] sm:$0xff] }
0x24ea   :  { %8244 = vmatprep.subr.bf16.mxu0 %v8389_v18  ;;  %5343 = vst.msk [vmem:[#allocation2 + $0x18] sm:$0xff] %vm592_vm7, %v5341_v21 }
0x24ed   :  { %8246 = vmatpush3.bf16.msra.mxu0 %v10897_v55  ;;  %v5346_v26 = vld [vmem:[#allocation2 + $0x10] sm:$0xff]  ;;  %v8256_v55 = vpack.c.bf16 %v5750_v14, %v5749_v10 }
0x24ee   :  { %8247 = vmatprep.subr.bf16.mxu0 %v8389_v18 }
0x24f1   :  { %8249 = vmatpush3.bf16.msra.mxu0 %v10907_v4  ;;  %v5347_v25 = vld [vmem:[#allocation2 + $0x18] sm:$0xff]  ;;  %v5751_v4 = vld [vmem:[%s11187_s12 + $0x10] sm:$0xff] }
0x24f2   :  { %5546 = vmatprep.mubr.f32.mxu1 %v5347_v25  ;;  %v8260_v3 = vpack.c.bf16 %v5752_v17, %v5751_v4 }
0x24f3   :  { %5547 = vmatmul.mubr.f32.vlgmr.msra.gmra.mrb[82].mxu1 %v5346_v26 }
0x24f4   :  { %8252 = vmatpush3.bf16.msra.mxu1 %v10854_v19  ;;  %7561 = vmatprep.mubr.msk.f32.mxu1 %vm8390_vm8, %v8391_v63  ;;  %v5741_v19 = vld [vmem:[#allocation3] sm:$0xff]  ;;  %v5743_v63 = vld [vmem:[#allocation3 + $0x10] sm:$0xff] }
0x24f5   :  { %8253 = vmatprep.subr.bf16.mxu1 %v8389_v18  ;;  %v5742_v18 = vld [vmem:[#allocation3 + $0x8] sm:$0xff] }
0x24f8   :  { %8255 = vmatpush3.bf16.msra.mxu1 %v10863_v48  ;;  %v5745_v48 = vld [vmem:[#allocation3 + $0x20] sm:$0xff] }
0x24f9   :  { %8257 = vmatprep.subr.bf16.mxu1 %v8256_v55 }
0x24fb   :  { %7562 = vmatmul.mubr.msk.f32.vlgmr.msra.gmra.mrb[84].mxu1 %vm574_vm4, %v10947_v12 }
0x24fc   :  { %8259 = vmatpush3.bf16.msra.mxu1 %v8256_v55  ;;  %7572 = vmatprep.mubr.msk.f32.mxu1 %vm574_vm4, %v5741_v19 }
0x24fd   :  { %8261 = vmatprep.subr.bf16.mxu1 %v8260_v3 }
0x2500   :  { %8263 = vmatpush3.bf16.msra.mxu1 %v8260_v3 }
0x2503   :  { %7573 = vmatmul.mubr.msk.f32.vlgmr.msra.gmra.mrb[86].mxu1 %vm574_vm4, %v5742_v18 }
0x2504   :  { %7575 = vmatprep.mubr.msk.f32.mxu1 %vm574_vm4, %v5743_v63 }
0x2507   :  { %7576 = vmatmul.mubr.msk.f32.gmra.mrb[88].mxu1 %vm574_vm4, %v5744_v32 }
0x2508   :  { %7578 = vmatprep.mubr.msk.f32.mxu1 %vm574_vm4, %v5745_v48 }
0x250b   :  { %7579 = vmatmul.mubr.msk.f32.gmra.mrb[90].mxu1 %vm574_vm4, %v5746_v6 }
0x250c   :  { %7581 = vmatprep.mubr.msk.f32.mxu1 %vm574_vm4, %v5747_v47 }
0x25b7   :  { %v7010_v12 = vpop.f32.mrb[118].mxu0 }
0x25b8   :  { %v7011_v60 = vpop.f32.mrb[119].mxu0 }
0x25b9   :  { %v7012_v53 = vadd.f32 %v7011_v60, %v7010_v12 }
0x25bb   :  { %v5479_v58 = vadd.f32 %v10914_v15, %v7012_v53 }
0x25c6   :  { %v7045_v59 = vpop.f32.mrb[82].mxu1 }
0x25c7   :  { %v7046_v50 = vpop.f32.mrb[83].mxu1 }
0x25c8   :  { %v7047_v23 = vadd.f32 %v7046_v50, %v7045_v59 }
0x25ca   :  { %v5549_v22 = vadd.f32 %v7047_v23, %v5479_v58 }
0x25cc   :  { %v5552_v30 = vmax.f32 %v5549_v22, 0.0 }
0x25ce   :  { %v5707_v49 = vpop.f32.mrb[84].mxu1  ;;  %7551 = vmatmul.mubr.msk.f32.vlgmr.msra.gmra.mrb[120].mxu0 %vm225_vm3, %v5552_v30 }
0x25cf   :  { %v7563_v9 = vpop.f32.mrb[85].mxu1 }
0x25d6   :  { %v7574_v52 = vpop.f32.mrb[86].mxu1 }
0x25d7   :  { %v5856_v27 = vadd.f32 %v7574_v52, %v11098_v56  ;;  %v5850_v46 = vpop.f32.mrb[87].mxu1 }
0x25d8   :  { %v5851_v28 = vadd.f32 %v11098_v56, %v5850_v46 }
0x25d9   :  { %5891 = vst.msk [vmem:[%s11189_s14 + $0x8] sm:$0xff] %vm5889_vm9, %v5856_v27 }
0x25da   :  { %5890 = vst.msk [vmem:[%s11189_s14] sm:$0xff] %vm5889_vm9, %v5851_v28  ;;  %v7577_v15 = vpop.f32.mrb[88].mxu1 }
0x25db   :  { %v5866_v7 = vadd.f32 %v7577_v15, %v11098_v56  ;;  %v5860_v29 = vpop.f32.mrb[89].mxu1 }
0x25dc   :  { %v5861_v37 = vadd.f32 %v11098_v56, %v5860_v29 }
0x25dd   :  { %5893 = vst.msk [vmem:[%s11189_s14 + $0x18] sm:$0xff] %vm5889_vm9, %v5866_v7 }
0x25de   :  { %5892 = vst.msk [vmem:[%s11189_s14 + $0x10] sm:$0xff] %vm5889_vm9, %v5861_v37  ;;  %v7580_v24 = vpop.f32.mrb[90].mxu1 }
0x25df   :  { %v5876_v57 = vadd.f32 %v7580_v24, %v11098_v56  ;;  %v5870_v40 = vpop.f32.mrb[91].mxu1 }
0x25e0   :  { %v5871_v16 = vadd.f32 %v11098_v56, %v5870_v40 }
0x25e1   :  { %5895 = vst.msk [vmem:[%s11189_s14 + $0x28] sm:$0xff] %vm5889_vm9, %v5876_v57 }
0x25e2   :  { %5894 = vst.msk [vmem:[%s11189_s14 + $0x20] sm:$0xff] %vm5889_vm9, %v5871_v16 }
0x26a1   :  { %v5630_v62 = vpop.f32.mrb[120].mxu0 }
0x26a2   :  { %v5634_v0 = vadd.f32 %v5630_v62, %v8959_v8  ;;  %v7552_v44 = vpop.f32.mrb[121].mxu0 }
0x26a4   :  { %v5711_v1 = vadd.f32 %v5707_v49, %v5634_v0 }
0x26a6   :  { %8328 = vtanh.f32 %v5711_v1  ;;  %v6219_v43 = vmul.f32 -1.442695, %v5711_v1 }
0x26a8   :  { %8330 = vpow2.f32 %v6219_v43 }
0x26b0   :  { %v8329_v2 = vpop.eup %8328 }
0x26b1   :  { %5721 = vrot.lane.b32.xlu1 %v8329_v2, %s8388_s24 }
0x26b2   :  { %v8331_v42 = vpop.eup %8330 }
0x26b3   :  { %v5715_v61 = vadd.f32 1.0, %v8331_v42 }
0x26b5   :  { %8332 = vrcp.f32 %v5715_v61 }
0x26bf   :  { %v8333_v13 = vpop.eup %8332 }
0x26c0   :  { %v5719_v33 = vmul.f32 %v8333_v13, %v10938_v11 }
0x2723   :  { %v5722_v20 = vpop.permute.xlu1 %5721 }
0x2724   :  { %v5724_v34 = vmul.f32 %v8333_v13, %v5722_v20 }
0x2726   :  { %5726 = vrot.lane.b32.xlu0 %v5724_v34, %s8386_s5 }
0x2798   :  { %v5727_v54 = vpop.permute.xlu0 %5726 }
0x2799   :  { %v5729_v8 = vadd.f32 %v5727_v54, %v5719_v33 }
0x279b   :  { %8334 = vtanh.f32 %v5729_v8 }
0x27a5   :  { %v8335_v45 = vpop.eup %8334 }
0x27a6   :  { %5732 = vrot.lane.b32.xlu1 %v8335_v45, %s8388_s24  ;;  %s8393_s24 = smov [#allocation6]  }
0x27a7   :  { %s5922_s7 = sshll.u32 %s8393_s24, 4  ;;  %s5923_s7 = int_to_ptr.vmem [resolvable:$true] %s5922_s7 }
0x27aa   :  { %5900 = vrot.lane.b32.xlu1 %v5729_v8, %s8387_s18  ;;  %s8338_s18 = scalar_lea.vmem %s5913_s17, 128 }
0x27ab   :  { %p8339_p0 = scmp.ne.s32.totalorder %s5913_s17, %s8338_s18  ;;  %p8344_p2 = scmp.lt.s32.totalorder %s8338_s18, %s8338_s18 }
0x27ad   :  { %p8345_p3 = por %p8344_p2, %p8343_p1 }
0x27af   :  { %p8346_p4 = pnand %p8345_p3, %p8339_p0 }
0x2818   :  { %v5733_v5 = vpop.permute.xlu1 %5732 }
0x2819   :  { %v5735_v31 = vmul.f32 %v8333_v13, %v5733_v5 }
0x281b   :  { %5737 = vrot.lane.b32.xlu0 %v5735_v31, %s8386_s5 }
0x281c   :  { %v5901_v51 = vpop.permute.xlu1 %5900 }
0x281d   :  { %5903 = vst.msk [vmem:[#allocation6] sm:$0xff] %vm574_vm4, %v5901_v51 }
0x288d   :  { %v5738_v41 = vpop.permute.xlu0 %5737 }
0x288e   :  { %5740 = vst.msk [vmem:[#allocation3 + $0x38] sm:$0xff] %vm574_vm4, %v5738_v41  ;;  %5898 = vst.msk [vmem:[#allocation4] sm:$0xff] %vm574_vm4, %v5738_v41 }
0x2895   :  { %v5748_v11 = vld [vmem:[#allocation3 + $0x38] sm:$0xff] }
0x2896   :  { %7582 = vmatmul.mubr.msk.f32.gmra.mrb[92].mxu1 %vm574_vm4, %v5748_v11 }
0x2897   :  { %8349 = shalt.err (!%p8346_p4)
}
0x2898   :  { %s8350_s2 = scalar_lea.hbm %s11190_s15, 128 }
0x2899   :  { %p8351_p5 = scmp.ne.s32.totalorder %s11190_s15, %s8350_s2  ;;  %p8354_p6 = scmp.lt.u32.totalorder %s8350_s2, %s11190_s15 }
0x289b   :  { %p8356_p7 = pnand %p8354_p6, %p8351_p5 }
0x289d   :  { %8359 = shalt.err (!%p8356_p7)
}
0x289e   :  { %5915 = dma.vmem_to_hbm [thread:$0]  %s5913_s17, 128, %s11190_s15, [#allocation5]  }
0x289f   :  { %s8360_s12 = scalar_lea.vmem %s5923_s7, 128  ;;  %p8365_p9 = scmp.lt.s32.totalorder %s5923_s7, %s5923_s7 }
0x28a0   :  { %p8361_p8 = scmp.ne.s32.totalorder %s5923_s7, %s8360_s12  ;;  %p8366_p10 = scmp.lt.s32.totalorder %s8360_s12, %s8360_s12 }
0x28a2   :  { %p8367_p11 = por %p8366_p10, %p8365_p9 }
0x28a4   :  { %p8368_p12 = pnand %p8367_p11, %p8361_p8 }
0x28a6   :  { %8371 = shalt.err (!%p8368_p12)
}
0x28a7   :  { %s8372_s25 = scalar_lea.hbm %s11191_s16, 128 }
0x28a8   :  { %p8373_p13 = scmp.ne.s32.totalorder %s11191_s16, %s8372_s25  ;;  %p8376_p0 = scmp.lt.u32.totalorder %s8372_s25, %s11191_s16 }
0x28aa   :  { %p8378_p1 = pnand %p8376_p0, %p8373_p13 }
0x28ac   :  { %8381 = shalt.err (!%p8378_p1)
}
0x28ad   :  { %5925 = dma.vmem_to_hbm [thread:$0]  %s5923_s7, 128, %s11191_s16, [#allocation7]  }
0x2969   :  { %v7583_v35 = vpop.f32.mrb[92].mxu1 }
0x296a   :  { %v5886_v38 = vadd.f32 %v7583_v35, %v11098_v56  ;;  %v5880_v39 = vpop.f32.mrb[93].mxu1 }
0x296b   :  { %v5881_v36 = vadd.f32 %v11098_v56, %v5880_v39 }
0x296c   :  { %5897 = vst.msk [vmem:[%s11189_s14 + $0x38] sm:$0xff] %vm5889_vm9, %v5886_v38 }
0x296d   :  { %5896 = vst.msk [vmem:[%s11189_s14 + $0x30] sm:$0xff] %vm5889_vm9, %v5881_v36 }
0x296e   :  { %8382 = dma.done.wait [#allocation5], 128  }
0x296f   :  { %8383 = vsyncadd [#allocation5], 4294967168 }
0x2970   :  { %8384 = dma.done.wait [#allocation7], 128  }
0x2971   :  { %8385 = vsyncadd [#allocation7], 4294967168 }
0x2972   :  { %5934 = vsyncpa [#allocation5], 1 }
0x2973   :  { %5935 = vsyncpa [#allocation7], 1 }

</bundles_post_ra>
